<compile_context>
chip_gen: v7x
topology: tpu7x:2x2x1
jax: 0.10.0
libtpu: 0.0.40
codegen_flags: <defaults>
</compile_context>

<pallas_src>
import functools

import jax
import jax.numpy as jnp
from jax import lax
from jax.experimental import pallas as pl
from jax.experimental.pallas import tpu as pltpu

NUM_GROUPS = 32        # Normalize(C) == GroupNorm(32, C, eps=1e-6, affine=True)
GN_EPS = 1e-6

_VMEM_CAP_CACHE = None


def _vmem_capacity_bytes():
    """Physical per-core VMEM (best effort); conservative 64 MiB fallback."""
    global _VMEM_CAP_CACHE
    if _VMEM_CAP_CACHE is None:
        cap = None
        try:
            info = pltpu.get_tpu_info()
            for name in ("vmem_capacity_bytes", "vmem_size_bytes", "vmem_bytes"):
                val = getattr(info, name, None)
                if val:
                    cap = int(val)
                    break
        except Exception:
            cap = None
        _VMEM_CAP_CACHE = cap if cap else 64 * 1024 * 1024
    return _VMEM_CAP_CACHE


def _vmem_limit_bytes():
    # ~56 MiB on v7x (64 MiB physical), ~100 MiB on v5e/v6e (128 MiB physical).
    return min((_vmem_capacity_bytes() * 7) // 8, 100 * 1024 * 1024)


def _pick_tile(n, target, quantum):
    """Largest multiple of `quantum` <= target that divides n (or n itself)."""
    if n <= target:
        return n
    t = (min(target, n) // quantum) * quantum
    while t >= quantum:
        if n % t == 0:
            return t
        t -= quantum
    return n


# ----------------------- kernel 1: GroupNorm statistics ------------------------
def _gn_stats_kernel(x_ref, sum_ref, ss_ref):
    """Per-channel sum / sum-of-squares over token tiles (split for megacore)."""
    @pl.when(pl.program_id(2) == 0)
    def _():
        sum_ref[...] = jnp.zeros_like(sum_ref)
        ss_ref[...] = jnp.zeros_like(ss_ref)

    x = x_ref[0].astype(jnp.float32)                        # (TN, C)
    sum_ref[0, 0] += jnp.sum(x, axis=0, keepdims=True)      # (1, C)
    ss_ref[0, 0] += jnp.sum(x * x, axis=0, keepdims=True)   # (1, C)


# ------------------ kernel 2: GN apply + fused QKV projection ------------------
def _gn_qkv_kernel(x_ref, scale_ref, shift_ref, wqkv_ref, bqkv_ref,
                   q_ref, k_ref, v_ref, *, c):
    h = x_ref[0].astype(jnp.float32) * scale_ref[0] + shift_ref[0]      # (TN, C)
    hm = h.astype(wqkv_ref.dtype)
    qkv = jnp.dot(hm, wqkv_ref[...],
                  preferred_element_type=jnp.float32) + bqkv_ref[...]   # (TN, 3C)
    # Softmax scale C^-0.5 is pre-folded into the Q columns of wqkv / bqkv.
    q_ref[0] = qkv[:, :c].astype(q_ref.dtype)
    k_ref[0] = qkv[:, c:2 * c].astype(k_ref.dtype)
    v_ref[0] = qkv[:, 2 * c:].astype(v_ref.dtype)


# -------------- pass 3 finalize: proj_out (channel-major) + residual -----------
def _attn_finalize(acc, l, x_res_cm, wp_oi, bp_col, out_dtype):
    # Deferred softmax normalization: O(TQ*C) instead of O(TQ*TKV).
    inv_l = pl.reciprocal(l, approx=True)
    a = (acc * inv_l).astype(wp_oi.dtype)                               # (TQ, C)
    # projT[o, t] = sum_i Wp[o, i] * a[t, i] -- NT-form dot_general gives the
    # channel-major result directly, so the NCHW output needs no transpose.
    projT = lax.dot_general(wp_oi, a, (((1,), (1,)), ((), ())),
                            preferred_element_type=jnp.float32)         # (C, TQ)
    return (x_res_cm.astype(jnp.float32) + projT + bp_col).astype(out_dtype)


# ---------- kernel 3a: flash attention, K/V resident in VMEM (default) ---------
def _attn_resident_kernel(q_ref, k_ref, v_ref, x_ref, wp_ref, bp_ref, o_ref,
                          acc_sc, *, tkv):
    q = q_ref[0]                                  # (TQ, C), Q pre-scaled by C^-0.5
    n_kv = k_ref.shape[1] // tkv
    tq_len = q_ref.shape[1]
    acc_sc[...] = jnp.zeros_like(acc_sc)

    def body(j, carry):
        m_prev, l_prev = carry
        start = j * tkv
        if tkv % 128 == 0:
            start = pl.multiple_of(start, 128)
        k = k_ref[0, pl.ds(start, tkv), :]        # (TKV, C) slice of resident K
        v = v_ref[0, pl.ds(start, tkv), :]
        s = lax.dot_general(q, k, (((1,), (1,)), ((), ())),
                            preferred_element_type=jnp.float32)          # (TQ, TKV)
        m_new = jnp.maximum(m_prev, jnp.max(s, axis=-1, keepdims=True))
        alpha = jnp.exp(m_prev - m_new)
        p = jnp.exp(s - m_new)
        l_new = alpha * l_prev + jnp.sum(p, axis=-1, keepdims=True)
        acc_sc[...] = alpha * acc_sc[...] + jnp.dot(
            p.astype(v.dtype), v, preferred_element_type=jnp.float32)
        return m_new, l_new

    m0 = jnp.full((tq_len, 1), -jnp.inf, dtype=jnp.float32)
    l0 = jnp.zeros((tq_len, 1), dtype=jnp.float32)
    _, l = lax.fori_loop(0, n_kv, body, (m0, l0))
    o_ref[0] = _attn_finalize(acc_sc[...], l, x_ref[0], wp_ref[...], bp_ref[...],
                              o_ref.dtype)


# ------------ kernel 3b: streaming fallback (kv grid axis, huge N) --------------
def _attn_stream_kernel(q_ref, k_ref, v_ref, x_ref, wp_ref, bp_ref, o_ref,
                        m_sc, l_sc, acc_sc):
    kv = pl.program_id(2)

    @pl.when(kv == 0)
    def _():
        m_sc[...] = jnp.full_like(m_sc, -jnp.inf)
        l_sc[...] = jnp.zeros_like(l_sc)
        acc_sc[...] = jnp.zeros_like(acc_sc)

    q = q_ref[0]
    k = k_ref[0]
    s = lax.dot_general(q, k, (((1,), (1,)), ((), ())),
                        preferred_element_type=jnp.float32)
    m_prev = m_sc[...]
    m_new = jnp.maximum(m_prev, jnp.max(s, axis=-1, keepdims=True))
    alpha = jnp.exp(m_prev - m_new)
    p = jnp.exp(s - m_new)
    l_sc[...] = alpha * l_sc[...] + jnp.sum(p, axis=-1, keepdims=True)
    acc_sc[...] = alpha * acc_sc[...] + jnp.dot(
        p.astype(v_ref.dtype), v_ref[0], preferred_element_type=jnp.float32)
    m_sc[...] = m_new

    @pl.when(kv == pl.num_programs(2) - 1)
    def _():
        o_ref[0] = _attn_finalize(acc_sc[...], l_sc[...], x_ref[0], wp_ref[...],
                                  bp_ref[...], o_ref.dtype)


# ----------------------------------- wrapper -----------------------------------
def attn_block(x_nchw, params, *, num_groups=NUM_GROUPS,
               compute_dtype=jnp.bfloat16, tq=512, tkv=512, tn=1024,
               force_stream=False):
    """x_nchw: (B, C, H, W). params: GroupNorm + 4 conv1x1 params (PyTorch layout)."""
    B, C, H, W = x_nchw.shape
    assert C % num_groups == 0, "GroupNorm(32, C) requires C % 32 == 0"
    N = H * W
    G, CG = num_groups, C // num_groups
    out_dtype = x_nchw.dtype
    vmem_limit = _vmem_limit_bytes()

    # Tile quantization: tq is a *lane* dim of the NCHW residual/output blocks,
    # so it must be a multiple of 128 (or == N); tkv / tn are sublane dims.
    tq = _pick_tile(N, tq, 128)
    tkv = _pick_tile(N, tkv, 8)
    tn = _pick_tile(N, tn, 8)

    x_ncn = x_nchw.reshape(B, C, N)                          # channel-major (free)
    x_bnc = jnp.transpose(x_ncn, (0, 2, 1))                  # token-major for passes 1/2

    # Conv2d(k=1) weight (Cout, Cin, 1, 1) -> matmul RHS (Cin, Cout); fuse QKV and
    # pre-fold the 1/sqrt(C) softmax scale into the Q columns (and Q bias).
    def wT(w):
        return jnp.transpose(w.reshape(C, C), (1, 0))

    sm_scale = float(C) ** (-0.5)
    wqkvT = jnp.concatenate(
        [wT(params["wq"]) * sm_scale, wT(params["wk"]), wT(params["wv"])],
        axis=1).astype(compute_dtype)                                    # (C, 3C)
    bqkv = jnp.concatenate(
        [params["bq"] * sm_scale, params["bk"], params["bv"]]
    ).reshape(1, 3 * C).astype(jnp.float32)                              # (1, 3C)
    wp_oi = params["wp"].reshape(C, C).astype(compute_dtype)             # (Cout, Cin)
    bp_col = params["bp"].reshape(C, 1).astype(jnp.float32)              # (C, 1)

    # ---- pass 1: GroupNorm statistics (split token reduction for megacore) -----
    tiles = N // tn
    nsplit = 2 if (tiles >= 2 and tiles % 2 == 0) else 1
    steps = tiles // nsplit
    part_sum, part_ss = pl.pallas_call(
        _gn_stats_kernel,
        grid=(B, nsplit, steps),
        in_specs=[pl.BlockSpec((1, tn, C), lambda b, s, n: (b, s * steps + n, 0))],
        out_specs=[pl.BlockSpec((1, 1, 1, C), lambda b, s, n: (b, s, 0, 0))] * 2,
        out_shape=[jax.ShapeDtypeStruct((B, nsplit, 1, C), jnp.float32)] * 2,
        compiler_params=pltpu.CompilerParams(
            dimension_semantics=("parallel", "parallel", "arbitrary"),
            vmem_limit_bytes=vmem_limit),
    )(x_bnc)

    # Tiny O(B*C) epilogue: fold partial channel stats into per-group mean/var and
    # then into a per-(batch, channel) affine.
    # NOTE: E[x^2] - E[x]^2 in f32 can cancel for large offsets; acceptable for
    # VAE activations, switch to a shifted formulation if that ever bites.
    cnt = float(N * CG)
    ch_sum = part_sum.sum(axis=(1, 2))                                   # (B, C)
    ch_ss = part_ss.sum(axis=(1, 2))
    g_sum = ch_sum.reshape(B, G, CG).sum(axis=-1)                        # (B, G)
    g_ss = ch_ss.reshape(B, G, CG).sum(axis=-1)
    g_mean = g_sum / cnt
    g_var = g_ss / cnt - g_mean * g_mean
    g_inv = lax.rsqrt(g_var + GN_EPS)
    mean_c = jnp.repeat(g_mean, CG, axis=-1)                             # (B, C)
    inv_c = jnp.repeat(g_inv, CG, axis=-1)
    gamma = params["gn_gamma"].reshape(1, C).astype(jnp.float32)
    beta = params["gn_beta"].reshape(1, C).astype(jnp.float32)
    scale_c = (inv_c * gamma)[:, None, :]                                # (B, 1, C)
    shift_c = (beta - mean_c * inv_c * gamma)[:, None, :]                # (B, 1, C)

    # ---- pass 2: normalize + fused QKV projection -------------------------------
    q, k, v = pl.pallas_call(
        functools.partial(_gn_qkv_kernel, c=C),
        grid=(B, N // tn),
        in_specs=[
            pl.BlockSpec((1, tn, C), lambda b, n: (b, n, 0)),    # x (token-major)
            pl.BlockSpec((1, 1, C), lambda b, n: (b, 0, 0)),     # GN scale
            pl.BlockSpec((1, 1, C), lambda b, n: (b, 0, 0)),     # GN shift
            pl.BlockSpec((C, 3 * C), lambda b, n: (0, 0)),       # fused W_qkv^T
            pl.BlockSpec((1, 3 * C), lambda b, n: (0, 0)),       # fused bias
        ],
        out_specs=[pl.BlockSpec((1, tn, C), lambda b, n: (b, n, 0))] * 3,
        out_shape=[jax.ShapeDtypeStruct((B, N, C), compute_dtype)] * 3,
        compiler_params=pltpu.CompilerParams(
            dimension_semantics=("parallel", "parallel"),
            vmem_limit_bytes=vmem_limit),
    )(x_bnc, scale_c, shift_c, wqkvT, bqkv)

    # ---- pass 3: flash attention + proj_out + residual (NCHW output) ------------
    qkv_isz = jnp.dtype(compute_dtype).itemsize
    x_isz = jnp.dtype(x_nchw.dtype).itemsize
    out_isz = jnp.dtype(out_dtype).itemsize

    def _resident_bytes(tq_):
        return (2 * 2 * N * C * qkv_isz            # K + V, double-buffered
                + 2 * tq_ * C * qkv_isz            # q tile
                + 2 * C * tq_ * x_isz              # residual tile
                + 2 * C * tq_ * out_isz            # output tile
                + 2 * (C * C * qkv_isz + C * 4)    # proj weight + bias
                + tq_ * C * 4                      # f32 accumulator scratch
                + 8 * tq_ * tkv * 4)               # s / p / exp temporaries

    use_resident = (not force_stream) and _resident_bytes(tq) <= (vmem_limit * 3) // 4

    if use_resident:
        out_ncn = pl.pallas_call(
            functools.partial(_attn_resident_kernel, tkv=tkv),
            grid=(B, N // tq),
            in_specs=[
                pl.BlockSpec((1, tq, C), lambda b, i: (b, i, 0)),    # q tile
                pl.BlockSpec((1, N, C), lambda b, i: (b, 0, 0)),     # K (resident/batch)
                pl.BlockSpec((1, N, C), lambda b, i: (b, 0, 0)),     # V (resident/batch)
                pl.BlockSpec((1, C, tq), lambda b, i: (b, 0, i)),    # residual (NCHW)
                pl.BlockSpec((C, C), lambda b, i: (0, 0)),           # W_proj (out, in)
                pl.BlockSpec((C, 1), lambda b, i: (0, 0)),           # b_proj
            ],
            out_specs=pl.BlockSpec((1, C, tq), lambda b, i: (b, 0, i)),
            out_shape=jax.ShapeDtypeStruct((B, C, N), out_dtype),
            scratch_shapes=[pltpu.VMEM((tq, C), jnp.float32)],       # acc
            compiler_params=pltpu.CompilerParams(
                dimension_semantics=("parallel", "parallel"),
                vmem_limit_bytes=vmem_limit),
        )(q, k, v, x_ncn, wp_oi, bp_col)
    else:
        if not force_stream:
            # K/V do not fit in VMEM: minimize re-streams with a bigger q tile.
            tq = _pick_tile(N, max(tq, 1024), 128)
        out_ncn = pl.pallas_call(
            _attn_stream_kernel,
            grid=(B, N // tq, N // tkv),
            in_specs=[
                pl.BlockSpec((1, tq, C), lambda b, i, j: (b, i, 0)),
                pl.BlockSpec((1, tkv, C), lambda b, i, j: (b, j, 0)),
                pl.BlockSpec((1, tkv, C), lambda b, i, j: (b, j, 0)),
                pl.BlockSpec((1, C, tq), lambda b, i, j: (b, 0, i)),
                pl.BlockSpec((C, C), lambda b, i, j: (0, 0)),
                pl.BlockSpec((C, 1), lambda b, i, j: (0, 0)),
            ],
            out_specs=pl.BlockSpec((1, C, tq), lambda b, i, j: (b, 0, i)),
            out_shape=jax.ShapeDtypeStruct((B, C, N), out_dtype),
            scratch_shapes=[pltpu.VMEM((tq, 1), jnp.float32),        # running max m
                            pltpu.VMEM((tq, 1), jnp.float32),        # running sum l
                            pltpu.VMEM((tq, C), jnp.float32)],       # accumulator
            compiler_params=pltpu.CompilerParams(
                dimension_semantics=("parallel", "parallel", "arbitrary"),
                vmem_limit_bytes=vmem_limit),
        )(q, k, v, x_ncn, wp_oi, bp_col)

    return out_ncn.reshape(B, C, H, W)


# ----------------------------- pure-JAX reference ------------------------------
def attn_block_ref(x, params, *, num_groups=NUM_GROUPS):
    B, C, H, W = x.shape
    G, CG = num_groups, C // num_groups
    xg = x.reshape(B, G, CG * H * W)
    mean = xg.mean(axis=2, keepdims=True)
    var = xg.var(axis=2, keepdims=True)
    hn = ((xg - mean) / jnp.sqrt(var + GN_EPS)).reshape(B, C, H, W)
    hn = hn * params["gn_gamma"].reshape(1, C, 1, 1) + params["gn_beta"].reshape(1, C, 1, 1)

    def conv1x1(h, w, b):
        return jnp.einsum("oi,bihw->bohw", w.reshape(C, C), h) + b.reshape(1, C, 1, 1)

    q = conv1x1(hn, params["wq"], params["bq"]).reshape(B, C, H * W)
    k = conv1x1(hn, params["wk"], params["bk"]).reshape(B, C, H * W)
    v = conv1x1(hn, params["wv"], params["bv"]).reshape(B, C, H * W)
    w_ = jnp.einsum("bcq,bck->bqk", q, k) * (float(C) ** -0.5)
    w_ = jax.nn.softmax(w_, axis=2)
    h_ = jnp.einsum("bck,bqk->bcq", v, w_).reshape(B, C, H, W)
    h_ = conv1x1(h_, params["wp"], params["bp"])
    return x + h_


if __name__ == "__main__":
    # GroupNorm(32, C) needs C % 32 == 0.  N = H*W = 256 tokens so the test
    # exercises multi-tile grids, the in-kernel kv loop, and the streaming path.
    B, C, H, W = 2, 128, 16, 16
    key = jax.random.PRNGKey(0)
    ks = jax.random.split(key, 10)

    x = jax.random.normal(ks[0], (B, C, H, W), dtype=jnp.float32)

    def winit(k):
        return 0.1 * jax.random.normal(k, (C, C, 1, 1), dtype=jnp.float32)

    params = {
        "gn_gamma": 1.0 + 0.05 * jax.random.normal(ks[1], (C,), dtype=jnp.float32),
        "gn_beta": 0.05 * jax.random.normal(ks[2], (C,), dtype=jnp.float32),
        "wq": winit(ks[3]), "bq": 0.01 * jax.random.normal(ks[4], (C,), dtype=jnp.float32),
        "wk": winit(ks[5]), "bk": 0.01 * jax.random.normal(ks[6], (C,), dtype=jnp.float32),
        "wv": winit(ks[7]), "bv": 0.01 * jax.random.normal(ks[8], (C,), dtype=jnp.float32),
        "wp": winit(ks[9]), "bp": jnp.zeros((C,), dtype=jnp.float32),
    }

    ref = jax.block_until_ready(attn_block_ref(x, params))

    # Resident-K/V path (the default), f32 MXU operands; 4 in-kernel kv steps,
    # 2-way split GN-stats grid.
    run_f32 = jax.jit(functools.partial(
        attn_block, compute_dtype=jnp.float32, tq=512, tkv=64, tn=128))
    out_f32 = jax.block_until_ready(run_f32(x, params))
    assert out_f32.shape == x.shape and out_f32.dtype == x.dtype
    err32 = float(jnp.max(jnp.abs(out_f32 - ref)))
    assert jnp.allclose(out_f32, ref, atol=2e-2, rtol=1e-2), err32

    # Streaming fallback path (forced), bf16 MXU operands, multi-tile q/kv grid.
    run_bf16 = jax.jit(functools.partial(
        attn_block, compute_dtype=jnp.bfloat16, tq=128, tkv=128, tn=256,
        force_stream=True))
    out_bf16 = jax.block_until_ready(run_bf16(x, params))
    assert out_bf16.shape == x.shape and out_bf16.dtype == x.dtype
    errbf = float(jnp.max(jnp.abs(out_bf16 - ref)))
    assert jnp.allclose(out_bf16, ref, atol=1.5e-1, rtol=1e-1), errbf

    print("KERNEL_OK")
</pallas_src>

<mosaic_0001>
module attributes {stable_mosaic.version = 11 : i64} {
  func.func @_gn_stats_kernel(%arg0: i32, %arg1: i32, %arg2: i32, %arg3: memref<1x128x128xf32, #tpu.memory_space<vmem>>, %arg4: memref<1x1x1x128xf32, #tpu.memory_space<vmem>>, %arg5: memref<1x1x1x128xf32, #tpu.memory_space<vmem>>) attributes {dimension_semantics = [#tpu.dimension_semantics<parallel>, #tpu.dimension_semantics<parallel>, #tpu.dimension_semantics<arbitrary>], iteration_bounds = array<i64: 2, 2, 1>, scalar_prefetch = 0 : i64, scratch_operands = 0 : i64, tpu.core_type = #tpu.core_type<tc>, window_params = [{transform_indices = @transform_0, window_bounds = array<i64: 1, 128, 128>}, {transform_indices = @transform_1, window_bounds = array<i64: 1, 1, 1, 128>}, {transform_indices = @transform_2, window_bounds = array<i64: 1, 1, 1, 128>}]} {
    %c0_i32 = arith.constant 0 : i32
    %0 = arith.cmpi eq, %arg2, %c0_i32 : i32
    %1 = arith.extui %0 : i1 to i32
    %c0_i32_0 = arith.constant 0 : i32
    %2 = arith.cmpi ne, %1, %c0_i32_0 : i32
    scf.if %2 {
      %cst_20 = arith.constant 0.000000e+00 : f32
      %22 = vector.broadcast %cst_20 : f32 to vector<1x1x1x128xf32>
      %c0_21 = arith.constant 0 : index
      %c0_22 = arith.constant 0 : index
      %c0_23 = arith.constant 0 : index
      %c0_24 = arith.constant 0 : index
      %23 = vector.load %arg4[%c0_21, %c0_22, %c0_23, %c0_24] : memref<1x1x1x128xf32, #tpu.memory_space<vmem>>, vector<1x1x1x128xf32>
      tpu.vector_store %arg4[%c0_21, %c0_22, %c0_23, %c0_24], %22 {strides = array<i32>} : memref<1x1x1x128xf32, #tpu.memory_space<vmem>>, vector<1x1x1x128xf32>,
      %cst_25 = arith.constant 0.000000e+00 : f32
      %24 = vector.broadcast %cst_25 : f32 to vector<1x1x1x128xf32>
      %c0_26 = arith.constant 0 : index
      %c0_27 = arith.constant 0 : index
      %c0_28 = arith.constant 0 : index
      %c0_29 = arith.constant 0 : index
      %25 = vector.load %arg5[%c0_26, %c0_27, %c0_28, %c0_29] : memref<1x1x1x128xf32, #tpu.memory_space<vmem>>, vector<1x1x1x128xf32>
      tpu.vector_store %arg5[%c0_26, %c0_27, %c0_28, %c0_29], %24 {strides = array<i32>} : memref<1x1x1x128xf32, #tpu.memory_space<vmem>>, vector<1x1x1x128xf32>,
    } else {
    }
    %c0 = arith.constant 0 : index
    %c0_1 = arith.constant 0 : index
    %c0_2 = arith.constant 0 : index
    %3 = vector.load %arg3[%c0, %c0_1, %c0_2] : memref<1x128x128xf32, #tpu.memory_space<vmem>>, vector<1x128x128xf32>
    %4 = vector.shape_cast %3 : vector<1x128x128xf32> to vector<128x128xf32>
    %c0_3 = arith.constant 0 : index
    %c0_4 = arith.constant 0 : index
    %c0_5 = arith.constant 0 : index
    %c0_6 = arith.constant 0 : index
    %5 = vector.load %arg4[%c0_3, %c0_4, %c0_5, %c0_6] : memref<1x1x1x128xf32, #tpu.memory_space<vmem>>, vector<1x1x1x128xf32>
    %6 = vector.shape_cast %5 : vector<1x1x1x128xf32> to vector<1x128xf32>
    %cst = arith.constant dense<0.000000e+00> : vector<128xf32>
    %7 = vector.multi_reduction <add>, %4, %cst [0] : vector<128x128xf32> to vector<128xf32>
    %8 = vector.shape_cast %7 : vector<128xf32> to vector<1x128xf32>
    %9 = arith.addf %6, %8 : vector<1x128xf32>
    %c0_7 = arith.constant 0 : index
    %c0_8 = arith.constant 0 : index
    %c0_9 = arith.constant 0 : index
    %c0_10 = arith.constant 0 : index
    %10 = vector.load %arg4[%c0_7, %c0_8, %c0_9, %c0_10] : memref<1x1x1x128xf32, #tpu.memory_space<vmem>>, vector<1x1x1x128xf32>
    %11 = vector.shape_cast %10 : vector<1x1x1x128xf32> to vector<1x128xf32>
    %12 = vector.shape_cast %9 : vector<1x128xf32> to vector<1x1x1x128xf32>
    tpu.vector_store %arg4[%c0_7, %c0_8, %c0_9, %c0_10], %12 {strides = array<i32>} : memref<1x1x1x128xf32, #tpu.memory_space<vmem>>, vector<1x1x1x128xf32>,
    %c0_11 = arith.constant 0 : index
    %c0_12 = arith.constant 0 : index
    %c0_13 = arith.constant 0 : index
    %c0_14 = arith.constant 0 : index
    %13 = vector.load %arg5[%c0_11, %c0_12, %c0_13, %c0_14] : memref<1x1x1x128xf32, #tpu.memory_space<vmem>>, vector<1x1x1x128xf32>
    %14 = vector.shape_cast %13 : vector<1x1x1x128xf32> to vector<1x128xf32>
    %15 = arith.mulf %4, %4 : vector<128x128xf32>
    %cst_15 = arith.constant dense<0.000000e+00> : vector<128xf32>
    %16 = vector.multi_reduction <add>, %15, %cst_15 [0] : vector<128x128xf32> to vector<128xf32>
    %17 = vector.shape_cast %16 : vector<128xf32> to vector<1x128xf32>
    %18 = arith.addf %14, %17 : vector<1x128xf32>
    %c0_16 = arith.constant 0 : index
    %c0_17 = arith.constant 0 : index
    %c0_18 = arith.constant 0 : index
    %c0_19 = arith.constant 0 : index
    %19 = vector.load %arg5[%c0_16, %c0_17, %c0_18, %c0_19] : memref<1x1x1x128xf32, #tpu.memory_space<vmem>>, vector<1x1x1x128xf32>
    %20 = vector.shape_cast %19 : vector<1x1x1x128xf32> to vector<1x128xf32>
    %21 = vector.shape_cast %18 : vector<1x128xf32> to vector<1x1x1x128xf32>
    tpu.vector_store %arg5[%c0_16, %c0_17, %c0_18, %c0_19], %21 {strides = array<i32>} : memref<1x1x1x128xf32, #tpu.memory_space<vmem>>, vector<1x1x1x128xf32>,
    return
  }
  func.func @transform_0(%arg0: i32, %arg1: i32, %arg2: i32) -> (i32, i32, i32) {
    %c1_i32 = arith.constant 1 : i32
    %0 = arith.muli %arg1, %c1_i32 : i32
    %1 = arith.addi %0, %arg2 : i32
    %c0_i32 = arith.constant 0 : i32
    %c0_i32_0 = arith.constant 0 : i32
    return %arg0, %1, %c0_i32 : i32, i32, i32
  }
  func.func @transform_1(%arg0: i32, %arg1: i32, %arg2: i32) -> (i32, i32, i32, i32) {
    %c0_i32 = arith.constant 0 : i32
    %c0_i32_0 = arith.constant 0 : i32
    %c0_i32_1 = arith.constant 0 : i32
    return %arg0, %arg1, %c0_i32, %c0_i32_0 : i32, i32, i32, i32
  }
  func.func @transform_2(%arg0: i32, %arg1: i32, %arg2: i32) -> (i32, i32, i32, i32) {
    %c0_i32 = arith.constant 0 : i32
    %c0_i32_0 = arith.constant 0 : i32
    %c0_i32_1 = arith.constant 0 : i32
    return %arg0, %arg1, %c0_i32, %c0_i32_0 : i32, i32, i32, i32
  }
}

module attributes {stable_mosaic.version = 11 : i64} {
  func.func @_gn_qkv_kernel(%arg0: i32, %arg1: i32, %arg2: memref<1x128x128xf32, #tpu.memory_space<vmem>>, %arg3: memref<1x1x128xf32, #tpu.memory_space<vmem>>, %arg4: memref<1x1x128xf32, #tpu.memory_space<vmem>>, %arg5: memref<128x384xf32, #tpu.memory_space<vmem>>, %arg6: memref<1x384xf32, #tpu.memory_space<vmem>>, %arg7: memref<1x128x128xf32, #tpu.memory_space<vmem>>, %arg8: memref<1x128x128xf32, #tpu.memory_space<vmem>>, %arg9: memref<1x128x128xf32, #tpu.memory_space<vmem>>) attributes {dimension_semantics = [#tpu.dimension_semantics<parallel>, #tpu.dimension_semantics<parallel>], iteration_bounds = array<i64: 2, 2>, scalar_prefetch = 0 : i64, scratch_operands = 0 : i64, tpu.core_type = #tpu.core_type<tc>, window_params = [{transform_indices = @transform_0, window_bounds = array<i64: 1, 128, 128>}, {transform_indices = @transform_1, window_bounds = array<i64: 1, 1, 128>}, {transform_indices = @transform_2, window_bounds = array<i64: 1, 1, 128>}, {pipeline_mode = #tpu.pipeline_mode<synchronous>, transform_indices = @transform_3, window_bounds = array<i64: 128, 384>}, {pipeline_mode = #tpu.pipeline_mode<synchronous>, transform_indices = @transform_4, window_bounds = array<i64: 1, 384>}, {transform_indices = @transform_5, window_bounds = array<i64: 1, 128, 128>}, {transform_indices = @transform_6, window_bounds = array<i64: 1, 128, 128>}, {transform_indices = @transform_7, window_bounds = array<i64: 1, 128, 128>}]} {
    %c0 = arith.constant 0 : index
    %c0_0 = arith.constant 0 : index
    %c0_1 = arith.constant 0 : index
    %0 = vector.load %arg2[%c0, %c0_0, %c0_1] : memref<1x128x128xf32, #tpu.memory_space<vmem>>, vector<1x128x128xf32>
    %1 = vector.shape_cast %0 : vector<1x128x128xf32> to vector<128x128xf32>
    %c0_2 = arith.constant 0 : index
    %c0_3 = arith.constant 0 : index
    %c0_4 = arith.constant 0 : index
    %2 = vector.load %arg3[%c0_2, %c0_3, %c0_4] : memref<1x1x128xf32, #tpu.memory_space<vmem>>, vector<1x1x128xf32>
    %3 = vector.shape_cast %2 : vector<1x1x128xf32> to vector<1x128xf32>
    %4 = vector.broadcast %3 : vector<1x128xf32> to vector<128x128xf32>
    %5 = arith.mulf %1, %4 : vector<128x128xf32>
    %c0_5 = arith.constant 0 : index
    %c0_6 = arith.constant 0 : index
    %c0_7 = arith.constant 0 : index
    %6 = vector.load %arg4[%c0_5, %c0_6, %c0_7] : memref<1x1x128xf32, #tpu.memory_space<vmem>>, vector<1x1x128xf32>
    %7 = vector.shape_cast %6 : vector<1x1x128xf32> to vector<1x128xf32>
    %8 = vector.broadcast %7 : vector<1x128xf32> to vector<128x128xf32>
    %9 = arith.addf %5, %8 : vector<128x128xf32>
    %c0_8 = arith.constant 0 : index
    %c0_9 = arith.constant 0 : index
    %10 = vector.load %arg5[%c0_8, %c0_9] : memref<128x384xf32, #tpu.memory_space<vmem>>, vector<128x384xf32>
    %cst = arith.constant dense<0.000000e+00> : vector<128x384xf32>
    %11 = tpu.matmul %9, %10, %cst {dimension_numbers = #tpu.dot_dimension_numbers<[1], [0], [0], [1], [0, 0, 1, 1], [], []>} : vector<128x128xf32>, vector<128x384xf32>, vector<128x384xf32> -> vector<128x384xf32>
    %c0_10 = arith.constant 0 : index
    %c0_11 = arith.constant 0 : index
    %12 = vector.load %arg6[%c0_10, %c0_11] : memref<1x384xf32, #tpu.memory_space<vmem>>, vector<1x384xf32>
    %13 = vector.broadcast %12 : vector<1x384xf32> to vector<128x384xf32>
    %14 = arith.addf %11, %13 : vector<128x384xf32>
    %15 = vector.extract_strided_slice %14 {offsets = [0, 0], sizes = [128, 128], strides = [1, 1]} : vector<128x384xf32> to vector<128x128xf32>
    %c0_12 = arith.constant 0 : index
    %c0_13 = arith.constant 0 : index
    %c0_14 = arith.constant 0 : index
    %16 = vector.load %arg7[%c0_12, %c0_13, %c0_14] : memref<1x128x128xf32, #tpu.memory_space<vmem>>, vector<1x128x128xf32>
    %17 = vector.shape_cast %16 : vector<1x128x128xf32> to vector<128x128xf32>
    %18 = vector.shape_cast %15 : vector<128x128xf32> to vector<1x128x128xf32>
    tpu.vector_store %arg7[%c0_12, %c0_13, %c0_14], %18 {strides = array<i32>} : memref<1x128x128xf32, #tpu.memory_space<vmem>>, vector<1x128x128xf32>,
    %19 = vector.extract_strided_slice %14 {offsets = [0, 128], sizes = [128, 128], strides = [1, 1]} : vector<128x384xf32> to vector<128x128xf32>
    %c0_15 = arith.constant 0 : index
    %c0_16 = arith.constant 0 : index
    %c0_17 = arith.constant 0 : index
    %20 = vector.load %arg8[%c0_15, %c0_16, %c0_17] : memref<1x128x128xf32, #tpu.memory_space<vmem>>, vector<1x128x128xf32>
    %21 = vector.shape_cast %20 : vector<1x128x128xf32> to vector<128x128xf32>
    %22 = vector.shape_cast %19 : vector<128x128xf32> to vector<1x128x128xf32>
    tpu.vector_store %arg8[%c0_15, %c0_16, %c0_17], %22 {strides = array<i32>} : memref<1x128x128xf32, #tpu.memory_space<vmem>>, vector<1x128x128xf32>,
    %23 = vector.extract_strided_slice %14 {offsets = [0, 256], sizes = [128, 128], strides = [1, 1]} : vector<128x384xf32> to vector<128x128xf32>
    %c0_18 = arith.constant 0 : index
    %c0_19 = arith.constant 0 : index
    %c0_20 = arith.constant 0 : index
    %24 = vector.load %arg9[%c0_18, %c0_19, %c0_20] : memref<1x128x128xf32, #tpu.memory_space<vmem>>, vector<1x128x128xf32>
    %25 = vector.shape_cast %24 : vector<1x128x128xf32> to vector<128x128xf32>
    %26 = vector.shape_cast %23 : vector<128x128xf32> to vector<1x128x128xf32>
    tpu.vector_store %arg9[%c0_18, %c0_19, %c0_20], %26 {strides = array<i32>} : memref<1x128x128xf32, #tpu.memory_space<vmem>>, vector<1x128x128xf32>,
    return
  }
  func.func @transform_0(%arg0: i32, %arg1: i32) -> (i32, i32, i32) {
    %c0_i32 = arith.constant 0 : i32
    %c0_i32_0 = arith.constant 0 : i32
    return %arg0, %arg1, %c0_i32 : i32, i32, i32
  }
  func.func @transform_1(%arg0: i32, %arg1: i32) -> (i32, i32, i32) {
    %c0_i32 = arith.constant 0 : i32
    %c0_i32_0 = arith.constant 0 : i32
    %c0_i32_1 = arith.constant 0 : i32
    return %arg0, %c0_i32, %c0_i32_0 : i32, i32, i32
  }
  func.func @transform_2(%arg0: i32, %arg1: i32) -> (i32, i32, i32) {
    %c0_i32 = arith.constant 0 : i32
    %c0_i32_0 = arith.constant 0 : i32
    %c0_i32_1 = arith.constant 0 : i32
    return %arg0, %c0_i32, %c0_i32_0 : i32, i32, i32
  }
  func.func @transform_3(%arg0: i32, %arg1: i32) -> (i32, i32) {
    %c0_i32 = arith.constant 0 : i32
    %c0_i32_0 = arith.constant 0 : i32
    %c0_i32_1 = arith.constant 0 : i32
    return %c0_i32, %c0_i32_0 : i32, i32
  }
  func.func @transform_4(%arg0: i32, %arg1: i32) -> (i32, i32) {
    %c0_i32 = arith.constant 0 : i32
    %c0_i32_0 = arith.constant 0 : i32
    %c0_i32_1 = arith.constant 0 : i32
    return %c0_i32, %c0_i32_0 : i32, i32
  }
  func.func @transform_5(%arg0: i32, %arg1: i32) -> (i32, i32, i32) {
    %c0_i32 = arith.constant 0 : i32
    %c0_i32_0 = arith.constant 0 : i32
    return %arg0, %arg1, %c0_i32 : i32, i32, i32
  }
  func.func @transform_6(%arg0: i32, %arg1: i32) -> (i32, i32, i32) {
    %c0_i32 = arith.constant 0 : i32
    %c0_i32_0 = arith.constant 0 : i32
    return %arg0, %arg1, %c0_i32 : i32, i32, i32
  }
  func.func @transform_7(%arg0: i32, %arg1: i32) -> (i32, i32, i32) {
    %c0_i32 = arith.constant 0 : i32
    %c0_i32_0 = arith.constant 0 : i32
    return %arg0, %arg1, %c0_i32 : i32, i32, i32
  }
}

module attributes {stable_mosaic.version = 11 : i64} {
  func.func @_attn_resident_kernel(%arg0: i32, %arg1: i32, %arg2: memref<1x256x128xf32, #tpu.memory_space<vmem>>, %arg3: memref<1x256x128xf32, #tpu.memory_space<vmem>>, %arg4: memref<1x256x128xf32, #tpu.memory_space<vmem>>, %arg5: memref<1x128x256xf32, #tpu.memory_space<vmem>>, %arg6: memref<128x128xf32, #tpu.memory_space<vmem>>, %arg7: memref<128x1xf32, #tpu.memory_space<vmem>>, %arg8: memref<1x128x256xf32, #tpu.memory_space<vmem>>, %arg9: memref<256x128xf32, #tpu.memory_space<vmem>>) attributes {dimension_semantics = [#tpu.dimension_semantics<parallel>, #tpu.dimension_semantics<parallel>], iteration_bounds = array<i64: 2, 1>, scalar_prefetch = 0 : i64, scratch_operands = 1 : i64, tpu.core_type = #tpu.core_type<tc>, window_params = [{transform_indices = @transform_0, window_bounds = array<i64: 1, 256, 128>}, {transform_indices = @transform_1, window_bounds = array<i64: 1, 256, 128>}, {transform_indices = @transform_2, window_bounds = array<i64: 1, 256, 128>}, {transform_indices = @transform_3, window_bounds = array<i64: 1, 128, 256>}, {pipeline_mode = #tpu.pipeline_mode<synchronous>, transform_indices = @transform_4, window_bounds = array<i64: 128, 128>}, {pipeline_mode = #tpu.pipeline_mode<synchronous>, transform_indices = @transform_5, window_bounds = array<i64: 128, 1>}, {transform_indices = @transform_6, window_bounds = array<i64: 1, 128, 256>}]} {
    %c0 = arith.constant 0 : index
    %c0_0 = arith.constant 0 : index
    %c0_1 = arith.constant 0 : index
    %0 = vector.load %arg2[%c0, %c0_0, %c0_1] : memref<1x256x128xf32, #tpu.memory_space<vmem>>, vector<1x256x128xf32>
    %1 = vector.shape_cast %0 : vector<1x256x128xf32> to vector<256x128xf32>
    %cst = arith.constant 0.000000e+00 : f32
    %2 = vector.broadcast %cst : f32 to vector<256x128xf32>
    %c0_2 = arith.constant 0 : index
    %c0_3 = arith.constant 0 : index
    %3 = vector.load %arg9[%c0_2, %c0_3] : memref<256x128xf32, #tpu.memory_space<vmem>>, vector<256x128xf32>
    tpu.vector_store %arg9[%c0_2, %c0_3], %2 {strides = array<i32>} : memref<256x128xf32, #tpu.memory_space<vmem>>, vector<256x128xf32>,
    %cst_4 = arith.constant 0xFF800000 : f32
    %4 = vector.broadcast %cst_4 : f32 to vector<256x1xf32>
    %cst_5 = arith.constant 0.000000e+00 : f32
    %5 = vector.broadcast %cst_5 : f32 to vector<256x1xf32>
    %c0_i32 = arith.constant 0 : i32
    %c4_i32 = arith.constant 4 : i32
    %6 = arith.addi %c0_i32, %c4_i32 : i32
    %c1_i32 = arith.constant 1 : i32
    %7:2 = scf.for %arg10 = %c0_i32 to %6 step %c1_i32 iter_args(%arg11 = %4, %arg12 = %5) -> (vector<256x1xf32>, vector<256x1xf32>)  : i32 {
      %c64_i32 = arith.constant 64 : i32
      %23 = arith.muli %arg10, %c64_i32 : i32
      %c0_20 = arith.constant 0 : index
      %24 = arith.index_cast %23 : i32 to index
      %c0_21 = arith.constant 0 : index
      %25 = vector.load %arg3[%c0_20, %24, %c0_21] : memref<1x256x128xf32, #tpu.memory_space<vmem>>, vector<1x64x128xf32>
      %26 = vector.shape_cast %25 : vector<1x64x128xf32> to vector<64x128xf32>
      %c0_22 = arith.constant 0 : index
      %27 = arith.index_cast %23 : i32 to index
      %c0_23 = arith.constant 0 : index
      %28 = vector.load %arg4[%c0_22, %27, %c0_23] : memref<1x256x128xf32, #tpu.memory_space<vmem>>, vector<1x64x128xf32>
      %29 = vector.shape_cast %28 : vector<1x64x128xf32> to vector<64x128xf32>
      %cst_24 = arith.constant dense<0.000000e+00> : vector<256x64xf32>
      %30 = tpu.matmul %1, %26, %cst_24 {dimension_numbers = #tpu.dot_dimension_numbers<[1], [1], [0], [0], [0, 0, 1, 0], [], []>} : vector<256x128xf32>, vector<64x128xf32>, vector<256x64xf32> -> vector<256x64xf32>
      %cst_25 = arith.constant dense<0xFF800000> : vector<256xf32>
      %31 = vector.multi_reduction <maximumf>, %30, %cst_25 [1] : vector<256x64xf32> to vector<256xf32>
      %32 = vector.shape_cast %31 : vector<256xf32> to vector<256x1xf32>
      %33 = arith.maximumf %arg11, %32 : vector<256x1xf32>
      %34 = arith.subf %arg11, %33 : vector<256x1xf32>
      %35 = math.exp %34 : vector<256x1xf32>
      %36 = vector.broadcast %33 : vector<256x1xf32> to vector<256x64xf32>
      %37 = arith.subf %30, %36 : vector<256x64xf32>
      %38 = math.exp %37 : vector<256x64xf32>
      %39 = arith.mulf %35, %arg12 : vector<256x1xf32>
      %cst_26 = arith.constant dense<0.000000e+00> : vector<256xf32>
      %40 = vector.multi_reduction <add>, %38, %cst_26 [1] : vector<256x64xf32> to vector<256xf32>
      %41 = vector.shape_cast %40 : vector<256xf32> to vector<256x1xf32>
      %42 = arith.addf %39, %41 : vector<256x1xf32>
      %c0_27 = arith.constant 0 : index
      %c0_28 = arith.constant 0 : index
      %43 = vector.load %arg9[%c0_27, %c0_28] : memref<256x128xf32, #tpu.memory_space<vmem>>, vector<256x128xf32>
      %44 = vector.broadcast %35 : vector<256x1xf32> to vector<256x128xf32>
      %45 = arith.mulf %44, %43 : vector<256x128xf32>
      %cst_29 = arith.constant dense<0.000000e+00> : vector<256x128xf32>
      %46 = tpu.matmul %38, %29, %cst_29 {dimension_numbers = #tpu.dot_dimension_numbers<[1], [0], [0], [1], [0, 0, 1, 1], [], []>} : vector<256x64xf32>, vector<64x128xf32>, vector<256x128xf32> -> vector<256x128xf32>
      %47 = arith.addf %45, %46 : vector<256x128xf32>
      %c0_30 = arith.constant 0 : index
      %c0_31 = arith.constant 0 : index
      %48 = vector.load %arg9[%c0_30, %c0_31] : memref<256x128xf32, #tpu.memory_space<vmem>>, vector<256x128xf32>
      tpu.vector_store %arg9[%c0_30, %c0_31], %47 {strides = array<i32>} : memref<256x128xf32, #tpu.memory_space<vmem>>, vector<256x128xf32>,
      scf.yield %33, %42 : vector<256x1xf32>, vector<256x1xf32>
    }
    %c4_i32_6 = arith.constant 4 : i32
    %c0_7 = arith.constant 0 : index
    %c0_8 = arith.constant 0 : index
    %8 = vector.load %arg9[%c0_7, %c0_8] : memref<256x128xf32, #tpu.memory_space<vmem>>, vector<256x128xf32>
    %c0_9 = arith.constant 0 : index
    %c0_10 = arith.constant 0 : index
    %c0_11 = arith.constant 0 : index
    %9 = vector.load %arg5[%c0_9, %c0_10, %c0_11] : memref<1x128x256xf32, #tpu.memory_space<vmem>>, vector<1x128x256xf32>
    %10 = vector.shape_cast %9 : vector<1x128x256xf32> to vector<128x256xf32>
    %c0_12 = arith.constant 0 : index
    %c0_13 = arith.constant 0 : index
    %11 = vector.load %arg6[%c0_12, %c0_13] : memref<128x128xf32, #tpu.memory_space<vmem>>, vector<128x128xf32>
    %c0_14 = arith.constant 0 : index
    %c0_15 = arith.constant 0 : index
    %12 = vector.load %arg7[%c0_14, %c0_15] : memref<128x1xf32, #tpu.memory_space<vmem>>, vector<128x1xf32>
    %13 = tpu.reciprocal %7#1 {approx = true} : vector<256x1xf32> -> vector<256x1xf32>
    %14 = vector.broadcast %13 : vector<256x1xf32> to vector<256x128xf32>
    %15 = arith.mulf %8, %14 : vector<256x128xf32>
    %cst_16 = arith.constant dense<0.000000e+00> : vector<128x256xf32>
    %16 = tpu.matmul %11, %15, %cst_16 {dimension_numbers = #tpu.dot_dimension_numbers<[1], [1], [0], [0], [0, 0, 1, 0], [], []>} : vector<128x128xf32>, vector<256x128xf32>, vector<128x256xf32> -> vector<128x256xf32>
    %17 = arith.addf %10, %16 : vector<128x256xf32>
    %18 = vector.broadcast %12 : vector<128x1xf32> to vector<128x256xf32>
    %19 = arith.addf %17, %18 : vector<128x256xf32>
    %c0_17 = arith.constant 0 : index
    %c0_18 = arith.constant 0 : index
    %c0_19 = arith.constant 0 : index
    %20 = vector.load %arg8[%c0_17, %c0_18, %c0_19] : memref<1x128x256xf32, #tpu.memory_space<vmem>>, vector<1x128x256xf32>
    %21 = vector.shape_cast %20 : vector<1x128x256xf32> to vector<128x256xf32>
    %22 = vector.shape_cast %19 : vector<128x256xf32> to vector<1x128x256xf32>
    tpu.vector_store %arg8[%c0_17, %c0_18, %c0_19], %22 {strides = array<i32>} : memref<1x128x256xf32, #tpu.memory_space<vmem>>, vector<1x128x256xf32>,
    return
  }
  func.func @transform_0(%arg0: i32, %arg1: i32) -> (i32, i32, i32) {
    %c0_i32 = arith.constant 0 : i32
    %c0_i32_0 = arith.constant 0 : i32
    return %arg0, %arg1, %c0_i32 : i32, i32, i32
  }
  func.func @transform_1(%arg0: i32, %arg1: i32) -> (i32, i32, i32) {
    %c0_i32 = arith.constant 0 : i32
    %c0_i32_0 = arith.constant 0 : i32
    %c0_i32_1 = arith.constant 0 : i32
    return %arg0, %c0_i32, %c0_i32_0 : i32, i32, i32
  }
  func.func @transform_2(%arg0: i32, %arg1: i32) -> (i32, i32, i32) {
    %c0_i32 = arith.constant 0 : i32
    %c0_i32_0 = arith.constant 0 : i32
    %c0_i32_1 = arith.constant 0 : i32
    return %arg0, %c0_i32, %c0_i32_0 : i32, i32, i32
  }
  func.func @transform_3(%arg0: i32, %arg1: i32) -> (i32, i32, i32) {
    %c0_i32 = arith.constant 0 : i32
    %c0_i32_0 = arith.constant 0 : i32
    return %arg0, %c0_i32, %arg1 : i32, i32, i32
  }
  func.func @transform_4(%arg0: i32, %arg1: i32) -> (i32, i32) {
    %c0_i32 = arith.constant 0 : i32
    %c0_i32_0 = arith.constant 0 : i32
    %c0_i32_1 = arith.constant 0 : i32
    return %c0_i32, %c0_i32_0 : i32, i32
  }
  func.func @transform_5(%arg0: i32, %arg1: i32) -> (i32, i32) {
    %c0_i32 = arith.constant 0 : i32
    %c0_i32_0 = arith.constant 0 : i32
    %c0_i32_1 = arith.constant 0 : i32
    return %c0_i32, %c0_i32_0 : i32, i32
  }
  func.func @transform_6(%arg0: i32, %arg1: i32) -> (i32, i32, i32) {
    %c0_i32 = arith.constant 0 : i32
    %c0_i32_0 = arith.constant 0 : i32
    return %arg0, %c0_i32, %arg1 : i32, i32, i32
  }
}

</mosaic_0001>

<bundles_post_ra>
// kernel: attn_block.3
= control target key start
LH: loop header
LB: loop body
LE: loop exit
PB: predicated region body
PF: predicated region fallthrough
CT: control target
= control target key end

     0   :  { %8 = vsyncpa [#allocation3], 0  ;;  %s826_s0 = inlined_call_operand.hbm [shape: f32[2,256,128], index: 0, kind: input, shape index: {}]   ;;  %s827_s1 = inlined_call_operand.vmem [shape: f32[2,2,1,128], index: 1, kind: output, shape index: {0}]   ;;  %s828_s2 = inlined_call_operand.vmem [shape: f32[2,2,1,128], index: 2, kind: output, shape index: {1}]  }
   0x1   :  { %10 = vsyncpa [#allocation3 + $0x1], 0  ;;  %s642_s9 = smov 0   ;;  %s644_s10 = smov 0  }
   0x2   :  { %s646_s11 = smov 0   ;;  %s648_s12 = smov 0  }
   0x3   :  { %s650_s13 = smov 0   ;;  %s652_s14 = smov 0  }
   0x4   :  { %s654_s15 = smov 0   ;;  %s656_s16 = smov 0  }
   0x5 LB: > { %s437_s17 = sadd.s32 4294967295, %s621_s16   ;;  %s31_s18 = sadd.s32 1, %s613_s14  ;;  %s621_s16 = sphi %s656_s16, %s16_s16   ;;  %s617_s15 = sphi %s654_s15, %s839_s15   ;;  %s613_s14 = sphi %s652_s14, %s838_s14   ;;  %s609_s13 = sphi %s650_s13, %s837_s13   ;;  %s605_s12 = sphi %s648_s12, %s836_s12   ;;  %s601_s11 = sphi %s646_s11, %s835_s11   ;;  %s597_s10 = sphi %s644_s10, %s834_s10   ;;  %s593_s9 = sphi %s642_s9, %s833_s9  }
   0x6   : > { %p33_p0 = scmp.ge.s32.totalorder %s31_s18, 2  ;;  %s35_s19 = sadd.s32 1, %s617_s15 }
   0x7   : > { %s46_s20 = sadd.s32 1, %s601_s11  ;;  %p53_p1 = scmp.ne.s32.totalorder %s601_s11, %s597_s10 }
   0x8   : > { %s841_s18 = smov (%p33_p0, %s31_s18), 0  ;;  %s843_s19 = smov (!%p33_p0, %s35_s19), %s617_s15 }
   0x9   : > { %s42_s21 = ssub.s32 %s613_s14, %s841_s18  ;;  %p54_p2 = scmp.eq.s32.totalorder %s621_s16, 0 }
   0xa   : > { %p37_p3 = scmp.ge.s32.totalorder %s843_s19, 2  ;;  %p59_p4 = scmp.ne.s32.totalorder %s597_s10, %s593_s9 }
   0xb   : > { %p693_p5 = por %p54_p2, %p53_p1  ;;  %p60_p6 = scmp.eq.s32.totalorder %s437_s17, 0 }
   0xc   : > { %s845_s19 = smov (%p37_p3, %s843_s19), 0  ;;  %p457_p8 = scmp.lt.s32.totalorder %s621_s16, 4 }
   0xd   : > { %p699_p7 = por %p60_p6, %p59_p4  ;;  %s41_s24 = ssub.s32 %s617_s15, %s845_s19 }
   0xe   : > { %s43_s25 = sor.u32 %s42_s21, %s41_s24  ;;  %s139_s26 = sand.u32 1, %s601_s11  }
   0xf   : > { %p44_p9 = scmp.eq.s32.totalorder %s43_s25, 0  ;;  %s441_s27 = sshll.u32 %s139_s26, 7 }
  0x10   : > { %s442_s28 = sshll.u32 %s613_s14, 4  ;;  %s443_s30 = sshll.u32 %s617_s15, 5 }
  0x11   : > { %s709_s29 = scalar_select %p44_p9, %s601_s11, %s46_s20  }
  0x12   : > { %s150_s3 = sadd.s32 %s443_s30, %s442_s28  ;;  %s143_s4 = scalar_lea.vmem [#allocation2], %s441_s27 }
  0x13   : > { %s153_s5 = sshll.u32 %s143_s4, 4  ;;  %s444_s6 = sshll.u32 %s150_s3, 7  ;;  %s712_s5 = int_to_ptr.vmem [resolvable:$true] %s153_s5 }
  0x14   : > { %s717_s9 = scalar_lea.hbm %s826_s0, %s444_s6  ;;  %p723_p10 = pnand %p457_p8, %p693_p5 }
  0x15   : > { %s728_s20 = scalar_lea.sflag [#allocation3], %s139_s26  ;;  %s525_s21 = scalar_lea.hbm %s717_s9, 2048 }
  0x16   : > { %p526_p12 = scmp.ne.s32.totalorder %s717_s9, %s525_s21  ;;  %p527_p13 = pneg %p723_p10 }
  0x17   : > { %s530_s25 = scalar_lea.hbm %s826_s0, 8192  ;;  %p531_p2 = scmp.lt.u32.totalorder %s717_s9, %s826_s0 }
  0x18   : > { %p528_p0 = pnand %p527_p13, %p526_p12  ;;  %p532_p3 = scmp.lt.u32.totalorder %s530_s25, %s525_s21 }
  0x19   : > { %p534_p5 = scmp.lt.u32.totalorder %s525_s21, %s717_s9 }
  0x1a   : > { %p529_p1 = pneg %p528_p0  ;;  %p533_p4 = por %p532_p3, %p531_p2 }
  0x1c   : > { %p535_p6 = por %p534_p5, %p533_p4 }
  0x1e   : > { %p536_p8 = pnand %p535_p6, %p529_p1 }
  0x20   : > { %539 = shalt.err (!%p536_p8)
}
  0x21   : > { %s540_s26 = scalar_lea.vmem %s712_s5, 2048  ;;  %s623_s30 = smov [#allocation2]  }
  0x22   : > { %p541_p9 = scmp.ne.s32.totalorder %s712_s5, %s540_s26  ;;  %s545_s3 = sshll.u32 %s623_s30, 4  ;;  %s546_s3 = int_to_ptr.vmem [resolvable:$false] %s545_s3 }
  0x23   : > { %s547_s4 = scalar_lea.vmem %s546_s3, 4096  ;;  %p548_p11 = scmp.lt.s32.totalorder %s712_s5, %s546_s3 }
  0x24   : > { %p543_p12 = pnand %p541_p9, %p527_p13  ;;  %p549_p2 = scmp.lt.s32.totalorder %s547_s4, %s540_s26 }
  0x26   : > { %p544_p0 = pneg %p543_p12  ;;  %p550_p3 = por %p549_p2, %p548_p11 }
  0x28   : > { %p551_p4 = pnand %p550_p3, %p544_p0 }
  0x2a   : > { %554 = shalt.err (!%p551_p4)
}
  0x2b   : > { %s624_s6 = smov 128   ;;  %s625_s7 = smov 8  }
  0x2c   : > { %456 = dma.hbm_to_vmem [thread:$0]  (!%p723_p10), %s717_s9, 2048, %s712_s5, %s728_s20, %s624_s6, %s624_s6, %s625_s7  }
  0x2d   : > { %p161_p13 = scmp.lt.s32.totalorder %s621_s16, 5  ;;  %p832_p1 = scmp.ge.s32.totalorder %s621_s16, 1 }
  0x2f   : > { %p162_p5 = pnand %p832_p1, %p161_p13 }
  0x30   : > { %s167_s8 = sand.u32 (!%p162_p5), 1, %s597_s10  }
  0x31   : > { %165 = sbr.rel (%p162_p5) target bundleno = 105 (0x69), region = 24  ;;  %s446_s21 = sshll.u32 (!%p162_p5), %s167_s8, 7 }
  0x32   : > { %s168_s22 = scalar_lea.sflag (!%p162_p5), [#allocation3], %s167_s8  ;;  %s760_s24 = scalar_lea.vmem (!%p162_p5), [#allocation2], %s446_s21 }
  0x38   : > { %588 = dma.done.wait (%p699_p7), %s168_s22, 2048  }
  0x39   : > { %590 = vsyncadd (%p699_p7), %s168_s22, 4294965248  ;;  %p203_p10 = scmp.lt.s32.totalorder %s609_s13, 1  ;;  %p205_p11 = scmp.lt.s32.totalorder %s605_s12, 1  ;;  %v626_v0 = vmov 0.0   ;;  %v223_v1 = vld [vmem:[%s760_s24] sm:$0xff]  ;;  %v224_v2 = vld [vmem:[%s760_s24 + $0x8] sm:$0xff] }
  0x3a   : > { %v225_v3 = vld [vmem:[%s760_s24 + $0x10] sm:$0xff]  ;;  %v226_v4 = vld [vmem:[%s760_s24 + $0x18] sm:$0xff]  ;;  %v240_v5 = vadd.f32 %v224_v2, %v223_v1  ;;  %v264_v6 = vmul.f32 %v223_v1, %v223_v1  ;;  %v265_v7 = vmul.f32 %v224_v2, %v224_v2  ;;  %v227_v9 = vld [vmem:[%s760_s24 + $0x20] sm:$0xff] }
  0x3b   : > { %s847_s13 = smov (!%p203_p10, %s609_s13), 1  ;;  %s849_s12 = smov (!%p205_p11, %s605_s12), 1  ;;  %v266_v8 = vmul.f32 %v225_v3, %v225_v3  ;;  %v267_v11 = vmul.f32 %v226_v4, %v226_v4  ;;  %v228_v13 = vld [vmem:[%s760_s24 + $0x28] sm:$0xff]  ;;  %v268_v15 = vmul.f32 %v227_v9, %v227_v9  ;;  %v229_v17 = vld [vmem:[%s760_s24 + $0x30] sm:$0xff]  ;;  %v230_v21 = vld [vmem:[%s760_s24 + $0x38] sm:$0xff] }
  0x3c   : > { %s447_s5 = sshll.u32 %s847_s13, 1  ;;  %v241_v10 = vadd.f32 %v240_v5, %v225_v3  ;;  %v280_v12 = vadd.f32 %v265_v7, %v264_v6  ;;  %v269_v19 = vmul.f32 %v228_v13, %v228_v13  ;;  %v270_v23 = vmul.f32 %v229_v17, %v229_v17  ;;  %v231_v25 = vld [vmem:[%s760_s24 + $0x40] sm:$0xff]  ;;  %v232_v29 = vld [vmem:[%s760_s24 + $0x48] sm:$0xff]  ;;  %v233_v33 = vld [vmem:[%s760_s24 + $0x50] sm:$0xff] }
  0x3d   : > { %s208_s9 = sadd.s32 %s447_s5, %s849_s12  ;;  %v271_v27 = vmul.f32 %v230_v21, %v230_v21  ;;  %v272_v31 = vmul.f32 %v231_v25, %v231_v25  ;;  %v273_v35 = vmul.f32 %v232_v29, %v232_v29  ;;  %v234_v37 = vld [vmem:[%s760_s24 + $0x58] sm:$0xff]  ;;  %v274_v39 = vmul.f32 %v233_v33, %v233_v33  ;;  %v235_v41 = vld [vmem:[%s760_s24 + $0x60] sm:$0xff]  ;;  %v236_v45 = vld [vmem:[%s760_s24 + $0x68] sm:$0xff] }
  0x3e   : > { %s773_s23 = scalar_lea.vmem %s827_s1, %s208_s9  ;;  %s778_s28 = scalar_lea.vmem %s828_s2, %s208_s9  ;;  %v242_v14 = vadd.f32 %v241_v10, %v226_v4  ;;  %v281_v16 = vadd.f32 %v280_v12, %v266_v8  ;;  %v275_v43 = vmul.f32 %v234_v37, %v234_v37  ;;  %v276_v47 = vmul.f32 %v235_v41, %v235_v41  ;;  %v237_v49 = vld [vmem:[%s760_s24 + $0x70] sm:$0xff]  ;;  %v238_v53 = vld [vmem:[%s760_s24 + $0x78] sm:$0xff] }
  0x3f   : > { %221 = vst [vmem:[%s773_s23] sm:$0x1] %v626_v0  ;;  %222 = vst [vmem:[%s778_s28] sm:$0x1] %v626_v0  ;;  %v277_v51 = vmul.f32 %v236_v45, %v236_v45  ;;  %v278_v55 = vmul.f32 %v237_v49, %v237_v49  ;;  %v279_v58 = vmul.f32 %v238_v53, %v238_v53 }
  0x40   : > { %v243_v18 = vadd.f32 %v242_v14, %v227_v9  ;;  %v282_v20 = vadd.f32 %v281_v16, %v267_v11 }
  0x42   : > { %v244_v22 = vadd.f32 %v243_v18, %v228_v13  ;;  %v283_v24 = vadd.f32 %v282_v20, %v268_v15 }
  0x44   : > { %v245_v26 = vadd.f32 %v244_v22, %v229_v17  ;;  %v284_v28 = vadd.f32 %v283_v24, %v269_v19 }
  0x46   : > { %v246_v30 = vadd.f32 %v245_v26, %v230_v21  ;;  %v285_v32 = vadd.f32 %v284_v28, %v270_v23  ;;  %v239_v7 = vld [vmem:[%s773_s23] sm:$0x1] }
  0x47   : > { %v263_v12 = vld [vmem:[%s778_s28] sm:$0x1] }
  0x48   : > { %v247_v34 = vadd.f32 %v246_v30, %v231_v25  ;;  %v286_v36 = vadd.f32 %v285_v32, %v271_v27 }
  0x4a   : > { %v248_v38 = vadd.f32 %v247_v34, %v232_v29  ;;  %v287_v40 = vadd.f32 %v286_v36, %v272_v31 }
  0x4c   : > { %v249_v42 = vadd.f32 %v248_v38, %v233_v33  ;;  %v288_v44 = vadd.f32 %v287_v40, %v273_v35 }
  0x4e   : > { %v250_v46 = vadd.f32 %v249_v42, %v234_v37  ;;  %v289_v48 = vadd.f32 %v288_v44, %v274_v39 }
  0x50   : > { %v251_v50 = vadd.f32 %v250_v46, %v235_v41  ;;  %v290_v52 = vadd.f32 %v289_v48, %v275_v43 }
  0x52   : > { %v252_v54 = vadd.f32 %v251_v50, %v236_v45  ;;  %v291_v56 = vadd.f32 %v290_v52, %v276_v47 }
  0x54   : > { %v253_v57 = vadd.f32 %v252_v54, %v237_v49  ;;  %v292_v59 = vadd.f32 %v291_v56, %v277_v51 }
  0x56   : > { %v254_v60 = vadd.f32 %v253_v57, %v238_v53  ;;  %v293_v61 = vadd.f32 %v292_v59, %v278_v55 }
  0x58   : > { %v255_v62 = vrot.slane %v254_v60, 4  ;;  %v294_v63 = vadd.f32 %v293_v61, %v279_v58 }
  0x5a   : > { %v256_v0 = vadd.f32 %v255_v62, %v254_v60  ;;  %v295_v1 = vrot.slane %v294_v63, 4 }
  0x5c   : > { %v257_v2 = vrot.slane %v256_v0, 2  ;;  %v296_v3 = vadd.f32 %v295_v1, %v294_v63 }
  0x5e   : > { %v258_v4 = vadd.f32 %v257_v2, %v256_v0  ;;  %v297_v5 = vrot.slane %v296_v3, 2 }
  0x60   : > { %v259_v6 = vrot.slane %v258_v4, 1  ;;  %v298_v8 = vadd.f32 %v297_v5, %v296_v3 }
  0x62   : > { %v260_v9 = vadd.f32 %v259_v6, %v258_v4  ;;  %v299_v10 = vrot.slane %v298_v8, 1 }
  0x64   : > { %v261_v11 = vadd.f32 %v260_v9, %v239_v7  ;;  %v300_v13 = vadd.f32 %v299_v10, %v298_v8 }
  0x66   : > { %262 = vst [vmem:[%s773_s23] sm:$0x1] %v261_v11  ;;  %v301_v14 = vadd.f32 %v300_v13, %v263_v12 }
  0x68   : > { %302 = vst [vmem:[%s778_s28] sm:$0x1] %v301_v14 }
  0x69 PF: > { %s16_s16 = sadd.s32 1, %s621_s16   ;;  %s833_s9 = smov %s597_s10 }
  0x6a   : > { %p13_p7 = scmp.ge.s32.totalorder %s16_s16, 6   ;;  %s834_s10 = smov %s601_s11 }
  0x6b   : > { %s835_s11 = smov %s709_s29  ;;  %s836_s12 = smov %s613_s14 }
  0x6c   : > { %s837_s13 = smov %s617_s15  ;;  %s838_s14 = smov %s841_s18 }
  0x6d   : > { %s839_s15 = smov %s845_s19  ;;  %15 = sbr.rel (!%p13_p7) target bundleno = 5 (0x5), region = 80 }
  0x74   :  { %348 = vsyncpa [#allocation3], 1 }
  0x75   :  { %350 = vsyncpa [#allocation3 + $0x1], 1 }

// kernel: attn_block.4
= control target key start
LH: loop header
LB: loop body
LE: loop exit
PB: predicated region body
PF: predicated region fallthrough
CT: control target
= control target key end

     0   :  { %s1377_s24 = smov 0   ;;  %s1379_s25 = smov 0   ;;  %s1783_s0 = inlined_call_operand.vmem [shape: f32[2,256,128], index: 0, kind: input, shape index: {}]   ;;  %s1784_s1 = inlined_call_operand.vmem [shape: f32[2,1,128], index: 1, kind: input, shape index: {}]   ;;  %s1785_s2 = inlined_call_operand.vmem [shape: f32[2,1,128], index: 2, kind: input, shape index: {}]   ;;  %s1786_s3 = inlined_call_operand.vmem [shape: f32[128,384], index: 3, kind: input, shape index: {}]   ;;  %s1787_s4 = inlined_call_operand.vmem [shape: f32[1,384], index: 4, kind: input, shape index: {}]   ;;  %s1788_s5 = inlined_call_operand.vmem [shape: f32[2,256,128], index: 5, kind: output, shape index: {0}]   ;;  %s1789_s6 = inlined_call_operand.vmem [shape: f32[2,256,128], index: 6, kind: output, shape index: {1}]   ;;  %s1790_s7 = inlined_call_operand.vmem [shape: f32[2,256,128], index: 7, kind: output, shape index: {2}]  }
   0x1   :  { %s1381_s26 = smov 0   ;;  %s1383_s27 = smov 0  }
   0x2   :  { %s1385_s28 = smov 0  }
   0x3 LB: > { %s27_s29 = sadd.s32 1, %s1326_s26  ;;  %s30_s30 = sadd.s32 1, %s1330_s27  ;;  %s1334_s28 = sphi %s1385_s28, %s18_s28   ;;  %s1330_s27 = sphi %s1383_s27, %s1794_s27   ;;  %s1326_s26 = sphi %s1381_s26, %s1793_s26   ;;  %s1322_s25 = sphi %s1379_s25, %s1792_s25   ;;  %s1318_s24 = sphi %s1377_s24, %s1791_s24  }
   0x4   : > { %p28_p0 = scmp.ge.s32.totalorder %s27_s29, 2  ;;  %p1086_p1 = scmp.ge.s32.totalorder %s1334_s28, 1 }
   0x5   : > { %p283_p2 = scmp.lt.s32.totalorder %s1334_s28, 5 }
   0x6   : > { %s1796_s29 = smov (%p28_p0, %s27_s29), 0  ;;  %s1798_s30 = smov (!%p28_p0, %s30_s30), %s1330_s27 }
   0x7   : > { %p284_p3 = pnand %p1086_p1, %p283_p2  ;;  %p32_p4 = scmp.ge.s32.totalorder %s1798_s30, 2 }
   0x8   : > { %v456_v0 = vld [vmem:[%s1786_s3 + $0x8] sm:$0xff] (!%p284_p3)  ;;  %v459_v1 = vld [vmem:[%s1786_s3 + $0x20] sm:$0xff] (!%p284_p3)  ;;  %s1087_s14 = sshll.u32 (!%p284_p3), %s1318_s24, 4  ;;  %p348_p5 = scmp.lt.s32.totalorder (!%p284_p3), %s1322_s25, 1  ;;  %v458_v4 = vld [vmem:[%s1786_s3 + $0x18] sm:$0xff] (!%p284_p3)  ;;  %v1336_v7 = vmov (!%p284_p3), 0.0  }
   0x9   : > { %s1800_s30 = smov (%p32_p4, %s1798_s30), 0  ;;  %287 = sbr.rel (%p284_p3) target bundleno = 320 (0x140), region = 40 }
   0xa   : > { %v455_v2 = vld [vmem:[%s1786_s3] sm:$0xff] (!%p284_p3)  ;;  %v1191_v3 = vpack.c.bf16 (!%p284_p3), %v459_v1, %v456_v0  ;;  %v462_v5 = vld [vmem:[%s1786_s3 + $0x38] sm:$0xff] (!%p284_p3)  ;;  %v465_v6 = vld [vmem:[%s1786_s3 + $0x50] sm:$0xff] (!%p284_p3)  ;;  %584 = vmatprep.mubr.f32.mxu0 (!%p284_p3), %v1336_v7  ;;  %p350_p6 = scmp.lt.s32.totalorder (!%p284_p3), %s1087_s14, 31 }
   0xb   : > { %v1193_v8 = vpack.c.bf16 (!%p284_p3), %v458_v4, %v455_v2  ;;  %v1195_v9 = vpack.c.bf16 (!%p284_p3), %v465_v6, %v462_v5  ;;  %v461_v10 = vld [vmem:[%s1786_s3 + $0x30] sm:$0xff] (!%p284_p3)  ;;  %v464_v11 = vld [vmem:[%s1786_s3 + $0x48] sm:$0xff] (!%p284_p3)  ;;  %v471_v13 = vld [vmem:[%s1786_s3 + $0x80] sm:$0xff] (!%p284_p3) }
   0xc   : > { %v468_v12 = vld [vmem:[%s1786_s3 + $0x68] sm:$0xff] (!%p284_p3)  ;;  %1192 = vmatprep.subr.bf16.mxu0 (!%p284_p3), %v1191_v3  ;;  %v1197_v14 = vpack.c.bf16 (!%p284_p3), %v464_v11, %v461_v10  ;;  %v467_v16 = vld [vmem:[%s1786_s3 + $0x60] sm:$0xff] (!%p284_p3)  ;;  %v470_v17 = vld [vmem:[%s1786_s3 + $0x78] sm:$0xff] (!%p284_p3) }
   0xd   : > { %1194 = vmatpush1.bf16.msra.mxu0 (!%p284_p3), %v1193_v8  ;;  %v1199_v15 = vpack.c.bf16 (!%p284_p3), %v471_v13, %v468_v12  ;;  %v474_v18 = vld [vmem:[%s1786_s3 + $0x98] sm:$0xff] (!%p284_p3)  ;;  %v477_v19 = vld [vmem:[%s1786_s3 + $0xb0] sm:$0xff] (!%p284_p3)  ;;  %v1201_v20 = vpack.c.bf16 (!%p284_p3), %v470_v17, %v467_v16  ;;  %v476_v23 = vld [vmem:[%s1786_s3 + $0xa8] sm:$0xff] (!%p284_p3) }
   0xe   : > { %1196 = vmatprep.subr.bf16.mxu0 (!%p284_p3), %v1195_v9  ;;  %v1203_v21 = vpack.c.bf16 (!%p284_p3), %v477_v19, %v474_v18  ;;  %v473_v22 = vld [vmem:[%s1786_s3 + $0x90] sm:$0xff] (!%p284_p3)  ;;  %v480_v24 = vld [vmem:[%s1786_s3 + $0xc8] sm:$0xff] (!%p284_p3)  ;;  %v483_v25 = vld [vmem:[%s1786_s3 + $0xe0] sm:$0xff] (!%p284_p3) }
   0xf   : > { %v457_v26 = vld [vmem:[%s1786_s3 + $0x10] sm:$0xff] (!%p284_p3)  ;;  %v479_v27 = vld [vmem:[%s1786_s3 + $0xc0] sm:$0xff] (!%p284_p3)  ;;  %v460_v28 = vld [vmem:[%s1786_s3 + $0x28] sm:$0xff] (!%p284_p3)  ;;  %v1205_v31 = vpack.c.bf16 (!%p284_p3), %v476_v23, %v473_v22  ;;  %v1207_v37 = vpack.c.bf16 (!%p284_p3), %v483_v25, %v480_v24 }
  0x10   : > { %s1802_s25 = smov (!%p348_p5, %s1322_s25), 1  ;;  %s1804_s14 = smov (!%p350_p6, %s1087_s14), 31  ;;  %v1223_v32 = vpack.c.bf16 %v460_v28, %v457_v26  ;;  %v463_v35 = vld [vmem:[%s1786_s3 + $0x40] sm:$0xff]  ;;  %v466_v36 = vld [vmem:[%s1786_s3 + $0x58] sm:$0xff]  ;;  %v469_v40 = vld [vmem:[%s1786_s3 + $0x70] sm:$0xff] }
  0x11   : > { %s1088_s12 = sshll.u32 %s1802_s25, 5  ;;  %1198 = vmatpush1.bf16.msra.mxu0 %v1197_v14  ;;  %s359_s11 = scalar_lea.vmem %s1784_s1, %s1802_s25  ;;  %v482_v38 = vld [vmem:[%s1786_s3 + $0xd8] sm:$0xff]  ;;  %v1227_v39 = vpack.c.bf16 %v466_v36, %v463_v35  ;;  %v472_v41 = vld [vmem:[%s1786_s3 + $0x88] sm:$0xff]  ;;  %v489_v43 = vld [vmem:[%s1786_s3 + $0x110] sm:$0xff] }
  0x12   : > { %s353_s18 = sadd.s32 %s1088_s12, %s1804_s14  ;;  %1200 = vmatprep.subr.bf16.mxu0 %v1199_v15  ;;  %s362_s19 = scalar_lea.vmem %s1785_s2, %s1802_s25  ;;  %v1498_v30 = vld [vmem:[%s359_s11] ss:$0 sm:$0xff]  ;;  %v486_v42 = vld [vmem:[%s1786_s3 + $0xf8] sm:$0xff]  ;;  %1224 = vmatprep.subr.bf16.mxu1 %v1223_v32  ;;  %v1209_v45 = vpack.c.bf16 %v482_v38, %v479_v27  ;;  %v485_v46 = vld [vmem:[%s1786_s3 + $0xf0] sm:$0xff]  ;;  %v1231_v47 = vpack.c.bf16 %v472_v41, %v469_v40 }
  0x13   : > { %s1460_s23 = sshll.u32 %s353_s18, 3  ;;  %v1501_v34 = vld [vmem:[%s362_s19] ss:$0 sm:$0xff]  ;;  %1226 = vmatpush3.bf16.msra.mxu1 %v1223_v32  ;;  %v1211_v48 = vpack.c.bf16 %v489_v43, %v486_v42  ;;  %v488_v49 = vld [vmem:[%s1786_s3 + $0x108] sm:$0xff]  ;;  %v478_v51 = vld [vmem:[%s1786_s3 + $0xb8] sm:$0xff] }
  0x14   : > { %s1466_s9 = scalar_lea.vmem %s1783_s0, %s1460_s23  ;;  %1228 = vmatprep.subr.bf16.mxu1 %v1227_v39  ;;  %v475_v50 = vld [vmem:[%s1786_s3 + $0xa0] sm:$0xff]  ;;  %v492_v52 = vld [vmem:[%s1786_s3 + $0x128] sm:$0xff]  ;;  %v1213_v54 = vpack.c.bf16 %v488_v49, %v485_v46  ;;  %v494_v58 = vld [vmem:[%s1786_s3 + $0x138] sm:$0xff]  ;;  %s1656_s24 = scalar_lea.vmem %s1788_s5, %s1460_s23 }
  0x15   : > { %v393_v29 = vld [vmem:[%s1466_s9] sm:$0xff]  ;;  %1202 = vmatpush1.bf16.msra.mxu0 %v1201_v20  ;;  %v1235_v56 = vpack.c.bf16 %v478_v51, %v475_v50  ;;  %v481_v59 = vld [vmem:[%s1786_s3 + $0xd0] sm:$0xff]  ;;  %v484_v60 = vld [vmem:[%s1786_s3 + $0xe8] sm:$0xff]  ;;  %s1663_s14 = scalar_lea.vmem %s1789_s6, %s1460_s23  ;;  %s1681_s15 = scalar_lea.vmem %s1790_s7, %s1460_s23 }
  0x16   : > { %v416_v33 = vmul.f32 %v1498_v30, %v393_v29  ;;  %1204 = vmatprep.subr.bf16.mxu0 %v1203_v21  ;;  %v495_v53 = vld [vmem:[%s1786_s3 + $0x140] sm:$0xff]  ;;  %v498_v61 = vld [vmem:[%s1786_s3 + $0x158] sm:$0xff]  ;;  %v501_v62 = vld [vmem:[%s1786_s3 + $0x170] sm:$0xff]  ;;  %v1239_v1 = vpack.c.bf16 %v484_v60, %v481_v59 }
  0x17   : > { %1230 = vmatpush3.bf16.msra.mxu1 %v1227_v39  ;;  %v491_v55 = vld [vmem:[%s1786_s3 + $0x120] sm:$0xff]  ;;  %v1215_v57 = vpack.c.bf16 %v495_v53, %v492_v52  ;;  %v497_v0 = vld [vmem:[%s1786_s3 + $0x150] sm:$0xff]  ;;  %v1219_v2 = vpack.c.bf16 %v501_v62, %v498_v61  ;;  %v500_v3 = vld [vmem:[%s1786_s3 + $0x168] sm:$0xff] }
  0x18   : > { %v439_v44 = vadd.f32 %v1501_v34, %v416_v33  ;;  %1232 = vmatprep.subr.bf16.mxu1 %v1231_v47  ;;  %v1217_v63 = vpack.c.bf16 %v494_v58, %v491_v55  ;;  %v487_v4 = vld [vmem:[%s1786_s3 + $0x100] sm:$0xff]  ;;  %v490_v5 = vld [vmem:[%s1786_s3 + $0x118] sm:$0xff]  ;;  %v1221_v6 = vpack.c.bf16 %v500_v3, %v497_v0  ;;  %v394_v8 = vld [vmem:[%s1466_s9 + $0x8] sm:$0xff] }
  0x19   : > { %1206 = vmatpush1.bf16.msra.mxu0 %v1205_v31  ;;  %v1243_v9 = vpack.c.bf16 %v490_v5, %v487_v4  ;;  %v493_v10 = vld [vmem:[%s1786_s3 + $0x130] sm:$0xff]  ;;  %v496_v11 = vld [vmem:[%s1786_s3 + $0x148] sm:$0xff]  ;;  %v417_v12 = vmul.f32 %v1498_v30, %v394_v8  ;;  %v499_v15 = vld [vmem:[%s1786_s3 + $0x160] sm:$0xff] }
  0x1a   : > { %1208 = vmatprep.subr.bf16.mxu0 %v1207_v37  ;;  %1167 = vmatprep.mubr.f32.mxu1 %v439_v44  ;;  %v395_v13 = vld [vmem:[%s1466_s9 + $0x10] sm:$0xff]  ;;  %v1247_v14 = vpack.c.bf16 %v496_v11, %v493_v10  ;;  %v502_v16 = vld [vmem:[%s1786_s3 + $0x178] sm:$0xff]  ;;  %v397_v23 = vld [vmem:[%s1466_s9 + $0x20] sm:$0xff] }
  0x1b   : > { %1234 = vmatpush3.bf16.msra.mxu1 %v1231_v47  ;;  %v440_v17 = vadd.f32 %v1501_v34, %v417_v12  ;;  %v418_v18 = vmul.f32 %v1498_v30, %v395_v13  ;;  %v396_v19 = vld [vmem:[%s1466_s9 + $0x18] sm:$0xff]  ;;  %v1251_v20 = vpack.c.bf16 %v502_v16, %v499_v15  ;;  %v420_v25 = vmul.f32 %v1498_v30, %v397_v23  ;;  %v398_v26 = vld [vmem:[%s1466_s9 + $0x28] sm:$0xff]  ;;  %v399_v27 = vld [vmem:[%s1466_s9 + $0x30] sm:$0xff] }
  0x1c   : > { %1236 = vmatprep.subr.bf16.mxu1 %v1235_v56  ;;  %v419_v22 = vmul.f32 %v1498_v30, %v396_v19  ;;  %v421_v29 = vmul.f32 %v1498_v30, %v398_v26  ;;  %v422_v31 = vmul.f32 %v1498_v30, %v399_v27  ;;  %v400_v32 = vld [vmem:[%s1466_s9 + $0x38] sm:$0xff]  ;;  %v401_v33 = vld [vmem:[%s1466_s9 + $0x40] sm:$0xff]  ;;  %v402_v39 = vld [vmem:[%s1466_s9 + $0x48] sm:$0xff] }
  0x1d   : > { %1210 = vmatpush1.bf16.msra.mxu0 %v1209_v45  ;;  %v441_v21 = vadd.f32 %v1501_v34, %v418_v18  ;;  %v443_v28 = vadd.f32 %v1501_v34, %v420_v25  ;;  %v423_v36 = vmul.f32 %v1498_v30, %v400_v32  ;;  %v424_v38 = vmul.f32 %v1498_v30, %v401_v33  ;;  %v403_v40 = vld [vmem:[%s1466_s9 + $0x50] sm:$0xff]  ;;  %v404_v45 = vld [vmem:[%s1466_s9 + $0x58] sm:$0xff]  ;;  %v405_v46 = vld [vmem:[%s1466_s9 + $0x60] sm:$0xff] }
  0x1e   : > { %1212 = vmatprep.subr.bf16.mxu0 %v1211_v48  ;;  %v442_v24 = vadd.f32 %v1501_v34, %v419_v22  ;;  %v444_v35 = vadd.f32 %v1501_v34, %v421_v29  ;;  %v445_v37 = vadd.f32 %v1501_v34, %v422_v31  ;;  %v425_v42 = vmul.f32 %v1498_v30, %v402_v39  ;;  %v406_v51 = vld [vmem:[%s1466_s9 + $0x68] sm:$0xff]  ;;  %v407_v52 = vld [vmem:[%s1466_s9 + $0x70] sm:$0xff]  ;;  %v408_v53 = vld [vmem:[%s1466_s9 + $0x78] sm:$0xff] }
  0x1f   : > { %1238 = vmatpush3.bf16.msra.mxu1 %v1235_v56  ;;  %v446_v41 = vadd.f32 %v1501_v34, %v423_v36  ;;  %v447_v43 = vadd.f32 %v1501_v34, %v424_v38  ;;  %v427_v48 = vmul.f32 %v1498_v30, %v404_v45  ;;  %v428_v50 = vmul.f32 %v1498_v30, %v405_v46 }
  0x20   : > { %1240 = vmatprep.subr.bf16.mxu1 %v1239_v1  ;;  %v448_v47 = vadd.f32 %v1501_v34, %v425_v42  ;;  %v429_v55 = vmul.f32 %v1498_v30, %v406_v51  ;;  %v431_v58 = vmul.f32 %v1498_v30, %v408_v53 }
  0x21   : > { %1214 = vmatpush1.bf16.msra.mxu0 %v1213_v54  ;;  %v450_v54 = vadd.f32 %v1501_v34, %v427_v48  ;;  %v451_v56 = vadd.f32 %v1501_v34, %v428_v50 }
  0x22   : > { %1216 = vmatprep.subr.bf16.mxu0 %v1215_v57  ;;  %v430_v57 = vmul.f32 %v1498_v30, %v407_v52  ;;  %v452_v59 = vadd.f32 %v1501_v34, %v429_v55  ;;  %v454_v61 = vadd.f32 %v1501_v34, %v431_v58 }
  0x23   : > { %1242 = vmatpush3.bf16.msra.mxu1 %v1239_v1 }
  0x24   : > { %1244 = vmatprep.subr.bf16.mxu1 %v1243_v9  ;;  %v453_v60 = vadd.f32 %v1501_v34, %v430_v57 }
  0x25   : > { %1218 = vmatpush1.bf16.msra.mxu0 %v1217_v63  ;;  %v503_v63 = vld [vmem:[%s1787_s4] sm:$0x7] }
  0x26   : > { %1220 = vmatprep.subr.bf16.mxu0 %v1219_v2 }
  0x27   : > { %1246 = vmatpush3.bf16.msra.mxu1 %v1243_v9 }
  0x28   : > { %1248 = vmatprep.subr.bf16.mxu1 %v1247_v14 }
  0x29   : > { %1222 = vmatpush1.bf16.msra.mxu0 %v1221_v6 }
  0x2b   : > { %1250 = vmatpush3.bf16.msra.mxu1 %v1247_v14 }
  0x2c   : > { %585 = vmatmul.mubr.f32.vlgmr.msra.gmra.mrb[0].mxu0 %v439_v44  ;;  %1252 = vmatprep.subr.bf16.mxu1 %v1251_v20  ;;  %v426_v44 = vmul.f32 %v1498_v30, %v403_v40  ;;  %v505_v30 = vlaneseq }
  0x2d   : > { %590 = vmatprep.mubr.f32.mxu0 %v1336_v7 }
  0x2e   : > { %v449_v49 = vadd.f32 %v1501_v34, %v426_v44  ;;  %v506_v34 = vshrl.u32 %v505_v30, 7 }
  0x2f   : > { %1254 = vmatpush3.bf16.msra.mxu1 %v1251_v20 }
  0x30   : > { %591 = vmatmul.mubr.f32.gmra.mrb[2].mxu0 %v440_v17  ;;  %v507_v62 = vsub.s32 0, %v506_v34  ;;  %v511_v0 = vsub.s32 1, %v506_v34  ;;  %v515_v8 = vsub.s32 2, %v506_v34 }
  0x31   : > { %596 = vmatprep.mubr.f32.mxu0 %v1336_v7 }
  0x32   : > { %1168 = vmatmul.mubr.f32.vlgmr.msra.gmra.mrb[0].mxu1 %v440_v17  ;;  %v1648_v1 = vrot.slane %v503_v63, %v507_v62  ;;  %v1650_v2 = vrot.slane %v503_v63, %v511_v0  ;;  %v1672_v13 = vrot.slane %v503_v63, %v515_v8 }
  0x33   : > { %1170 = vmatprep.mubr.f32.mxu1 %v441_v21 }
  0x34   : > { %597 = vmatmul.mubr.f32.gmra.mrb[4].mxu0 %v441_v21 }
  0x35   : > { %602 = vmatprep.mubr.f32.mxu0 %v1336_v7 }
  0x36   : > { %1171 = vmatmul.mubr.f32.gmra.mrb[2].mxu1 %v442_v24 }
  0x37   : > { %1173 = vmatprep.mubr.f32.mxu1 %v443_v28 }
  0x38   : > { %603 = vmatmul.mubr.f32.gmra.mrb[6].mxu0 %v442_v24 }
  0x39   : > { %608 = vmatprep.mubr.f32.mxu0 %v1336_v7 }
  0x3a   : > { %1174 = vmatmul.mubr.f32.gmra.mrb[4].mxu1 %v444_v35 }
  0x3b   : > { %1176 = vmatprep.mubr.f32.mxu1 %v445_v37 }
  0x3c   : > { %609 = vmatmul.mubr.f32.gmra.mrb[8].mxu0 %v443_v28 }
  0x3d   : > { %614 = vmatprep.mubr.f32.mxu0 %v1336_v7 }
  0x3e   : > { %1177 = vmatmul.mubr.f32.gmra.mrb[6].mxu1 %v446_v41 }
  0x3f   : > { %1179 = vmatprep.mubr.f32.mxu1 %v447_v43 }
  0x40   : > { %615 = vmatmul.mubr.f32.gmra.mrb[10].mxu0 %v444_v35 }
  0x41   : > { %620 = vmatprep.mubr.f32.mxu0 %v1336_v7 }
  0x42   : > { %1180 = vmatmul.mubr.f32.gmra.mrb[8].mxu1 %v448_v47 }
  0x43   : > { %1182 = vmatprep.mubr.f32.mxu1 %v449_v49 }
  0x44   : > { %621 = vmatmul.mubr.f32.gmra.mrb[12].mxu0 %v445_v37 }
  0x45   : > { %626 = vmatprep.mubr.f32.mxu0 %v1336_v7 }
  0x46   : > { %1183 = vmatmul.mubr.f32.gmra.mrb[10].mxu1 %v450_v54 }
  0x47   : > { %1185 = vmatprep.mubr.f32.mxu1 %v451_v56 }
  0x48   : > { %627 = vmatmul.mubr.f32.gmra.mrb[14].mxu0 %v446_v41 }
  0x49   : > { %632 = vmatprep.mubr.f32.mxu0 %v1336_v7 }
  0x4a   : > { %1186 = vmatmul.mubr.f32.gmra.mrb[12].mxu1 %v452_v59 }
  0x4b   : > { %1188 = vmatprep.mubr.f32.mxu1 %v453_v60 }
  0x4c   : > { %633 = vmatmul.mubr.f32.gmra.mrb[16].mxu0 %v447_v43 }
  0x4d   : > { %638 = vmatprep.mubr.f32.mxu0 %v1336_v7 }
  0x4e   : > { %1189 = vmatmul.mubr.f32.gmra.mrb[14].mxu1 %v454_v61 }
  0x50   : > { %639 = vmatmul.mubr.f32.gmra.mrb[18].mxu0 %v448_v47 }
  0x51   : > { %644 = vmatprep.mubr.f32.mxu0 %v1336_v7 }
  0x54   : > { %645 = vmatmul.mubr.f32.gmra.mrb[20].mxu0 %v449_v49 }
  0x55   : > { %650 = vmatprep.mubr.f32.mxu0 %v1336_v7 }
  0x58   : > { %651 = vmatmul.mubr.f32.gmra.mrb[22].mxu0 %v450_v54 }
  0x59   : > { %656 = vmatprep.mubr.f32.mxu0 %v1336_v7 }
  0x5c   : > { %657 = vmatmul.mubr.f32.gmra.mrb[24].mxu0 %v451_v56 }
  0x5d   : > { %662 = vmatprep.mubr.f32.mxu0 %v1336_v7 }
  0x60   : > { %663 = vmatmul.mubr.f32.gmra.mrb[26].mxu0 %v452_v59 }
  0x61   : > { %668 = vmatprep.mubr.f32.mxu0 %v1336_v7 }
  0x64   : > { %669 = vmatmul.mubr.f32.gmra.mrb[28].mxu0 %v453_v60 }
  0x65   : > { %674 = vmatprep.mubr.f32.mxu0 %v1336_v7 }
  0x68   : > { %675 = vmatmul.mubr.f32.gmra.mrb[30].mxu0 %v454_v61 }
  0xff   : > { %v586_v7 = vpop.f32.mrb[0].mxu0 }
 0x100   : > { %v587_v3 = vadd.f32 %v586_v7, %v1648_v1  ;;  %v588_v4 = vpop.f32.mrb[1].mxu0 }
 0x101   : > { %v589_v5 = vadd.f32 %v588_v4, %v1650_v2 }
 0x102   : > { %826 = vst [vmem:[%s1656_s24] sm:$0xff] %v587_v3 }
 0x103   : > { %842 = vst [vmem:[%s1663_s14] sm:$0xff] %v589_v5  ;;  %v592_v6 = vpop.f32.mrb[2].mxu0 }
 0x104   : > { %v593_v9 = vadd.f32 %v592_v6, %v1648_v1  ;;  %v594_v10 = vpop.f32.mrb[3].mxu0 }
 0x105   : > { %v595_v11 = vadd.f32 %v594_v10, %v1650_v2  ;;  %v1169_v17 = vpop.f32.mrb[0].mxu1 }
 0x106   : > { %827 = vst [vmem:[%s1656_s24 + $0x8] sm:$0xff] %v593_v9  ;;  %v753_v19 = vadd.f32 %v1169_v17, %v1672_v13  ;;  %v747_v20 = vpop.f32.mrb[1].mxu1 }
 0x107   : > { %843 = vst [vmem:[%s1663_s14 + $0x8] sm:$0xff] %v595_v11  ;;  %v598_v12 = vpop.f32.mrb[4].mxu0  ;;  %v748_v23 = vadd.f32 %v747_v20, %v1672_v13 }
 0x108   : > { %v599_v14 = vadd.f32 %v598_v12, %v1648_v1  ;;  %v600_v15 = vpop.f32.mrb[5].mxu0  ;;  %859 = vst [vmem:[%s1681_s15 + $0x8] sm:$0xff] %v753_v19 }
 0x109   : > { %v601_v16 = vadd.f32 %v600_v15, %v1650_v2  ;;  %858 = vst [vmem:[%s1681_s15] sm:$0xff] %v748_v23  ;;  %v1172_v25 = vpop.f32.mrb[2].mxu1 }
 0x10a   : > { %828 = vst [vmem:[%s1656_s24 + $0x10] sm:$0xff] %v599_v14  ;;  %v763_v27 = vadd.f32 %v1172_v25, %v1672_v13  ;;  %v757_v28 = vpop.f32.mrb[3].mxu1 }
 0x10b   : > { %844 = vst [vmem:[%s1663_s14 + $0x10] sm:$0xff] %v601_v16  ;;  %v604_v18 = vpop.f32.mrb[6].mxu0  ;;  %v758_v32 = vadd.f32 %v757_v28, %v1672_v13 }
 0x10c   : > { %v605_v21 = vadd.f32 %v604_v18, %v1648_v1  ;;  %v606_v22 = vpop.f32.mrb[7].mxu0  ;;  %861 = vst [vmem:[%s1681_s15 + $0x18] sm:$0xff] %v763_v27 }
 0x10d   : > { %v607_v24 = vadd.f32 %v606_v22, %v1650_v2  ;;  %860 = vst [vmem:[%s1681_s15 + $0x10] sm:$0xff] %v758_v32  ;;  %v1175_v35 = vpop.f32.mrb[4].mxu1 }
 0x10e   : > { %829 = vst [vmem:[%s1656_s24 + $0x18] sm:$0xff] %v605_v21  ;;  %v773_v37 = vadd.f32 %v1175_v35, %v1672_v13  ;;  %v767_v38 = vpop.f32.mrb[5].mxu1 }
 0x10f   : > { %845 = vst [vmem:[%s1663_s14 + $0x18] sm:$0xff] %v607_v24  ;;  %v610_v26 = vpop.f32.mrb[8].mxu0  ;;  %v768_v41 = vadd.f32 %v767_v38, %v1672_v13 }
 0x110   : > { %v611_v29 = vadd.f32 %v610_v26, %v1648_v1  ;;  %v612_v31 = vpop.f32.mrb[9].mxu0  ;;  %863 = vst [vmem:[%s1681_s15 + $0x28] sm:$0xff] %v773_v37 }
 0x111   : > { %v613_v33 = vadd.f32 %v612_v31, %v1650_v2  ;;  %862 = vst [vmem:[%s1681_s15 + $0x20] sm:$0xff] %v768_v41  ;;  %v1178_v43 = vpop.f32.mrb[6].mxu1 }
 0x112   : > { %830 = vst [vmem:[%s1656_s24 + $0x20] sm:$0xff] %v611_v29  ;;  %v783_v45 = vadd.f32 %v1178_v43, %v1672_v13  ;;  %v777_v46 = vpop.f32.mrb[7].mxu1 }
 0x113   : > { %846 = vst [vmem:[%s1663_s14 + $0x20] sm:$0xff] %v613_v33  ;;  %v616_v36 = vpop.f32.mrb[10].mxu0  ;;  %v778_v49 = vadd.f32 %v777_v46, %v1672_v13 }
 0x114   : > { %v617_v39 = vadd.f32 %v616_v36, %v1648_v1  ;;  %v618_v40 = vpop.f32.mrb[11].mxu0  ;;  %865 = vst [vmem:[%s1681_s15 + $0x38] sm:$0xff] %v783_v45 }
 0x115   : > { %v619_v42 = vadd.f32 %v618_v40, %v1650_v2  ;;  %864 = vst [vmem:[%s1681_s15 + $0x30] sm:$0xff] %v778_v49  ;;  %v1181_v51 = vpop.f32.mrb[8].mxu1 }
 0x116   : > { %831 = vst [vmem:[%s1656_s24 + $0x28] sm:$0xff] %v617_v39  ;;  %v793_v53 = vadd.f32 %v1181_v51, %v1672_v13  ;;  %v787_v54 = vpop.f32.mrb[9].mxu1 }
 0x117   : > { %847 = vst [vmem:[%s1663_s14 + $0x28] sm:$0xff] %v619_v42  ;;  %v622_v44 = vpop.f32.mrb[12].mxu0  ;;  %v788_v57 = vadd.f32 %v787_v54, %v1672_v13 }
 0x118   : > { %v623_v47 = vadd.f32 %v622_v44, %v1648_v1  ;;  %v624_v48 = vpop.f32.mrb[13].mxu0  ;;  %867 = vst [vmem:[%s1681_s15 + $0x48] sm:$0xff] %v793_v53 }
 0x119   : > { %v625_v50 = vadd.f32 %v624_v48, %v1650_v2  ;;  %866 = vst [vmem:[%s1681_s15 + $0x40] sm:$0xff] %v788_v57  ;;  %v1184_v59 = vpop.f32.mrb[10].mxu1 }
 0x11a   : > { %832 = vst [vmem:[%s1656_s24 + $0x30] sm:$0xff] %v623_v47  ;;  %v803_v61 = vadd.f32 %v1184_v59, %v1672_v13  ;;  %v797_v30 = vpop.f32.mrb[11].mxu1 }
 0x11b   : > { %848 = vst [vmem:[%s1663_s14 + $0x30] sm:$0xff] %v625_v50  ;;  %v628_v52 = vpop.f32.mrb[14].mxu0  ;;  %v798_v63 = vadd.f32 %v797_v30, %v1672_v13 }
 0x11c   : > { %v629_v55 = vadd.f32 %v628_v52, %v1648_v1  ;;  %v630_v56 = vpop.f32.mrb[15].mxu0  ;;  %869 = vst [vmem:[%s1681_s15 + $0x58] sm:$0xff] %v803_v61 }
 0x11d   : > { %v631_v58 = vadd.f32 %v630_v56, %v1650_v2  ;;  %868 = vst [vmem:[%s1681_s15 + $0x50] sm:$0xff] %v798_v63  ;;  %v1187_v7 = vpop.f32.mrb[12].mxu1 }
 0x11e   : > { %833 = vst [vmem:[%s1656_s24 + $0x38] sm:$0xff] %v629_v55  ;;  %v813_v4 = vadd.f32 %v1187_v7, %v1672_v13  ;;  %v807_v5 = vpop.f32.mrb[13].mxu1 }
 0x11f   : > { %849 = vst [vmem:[%s1663_s14 + $0x38] sm:$0xff] %v631_v58  ;;  %v634_v60 = vpop.f32.mrb[16].mxu0  ;;  %v808_v9 = vadd.f32 %v807_v5, %v1672_v13 }
 0x120   : > { %v635_v34 = vadd.f32 %v634_v60, %v1648_v1  ;;  %v636_v62 = vpop.f32.mrb[17].mxu0  ;;  %871 = vst [vmem:[%s1681_s15 + $0x68] sm:$0xff] %v813_v4 }
 0x121   : > { %v637_v0 = vadd.f32 %v636_v62, %v1650_v2  ;;  %870 = vst [vmem:[%s1681_s15 + $0x60] sm:$0xff] %v808_v9  ;;  %v1190_v11 = vpop.f32.mrb[14].mxu1 }
 0x122   : > { %834 = vst [vmem:[%s1656_s24 + $0x40] sm:$0xff] %v635_v34  ;;  %v823_v14 = vadd.f32 %v1190_v11, %v1672_v13  ;;  %v817_v15 = vpop.f32.mrb[15].mxu1 }
 0x123   : > { %850 = vst [vmem:[%s1663_s14 + $0x40] sm:$0xff] %v637_v0  ;;  %v640_v3 = vpop.f32.mrb[18].mxu0  ;;  %v818_v18 = vadd.f32 %v817_v15, %v1672_v13 }
 0x124   : > { %v641_v6 = vadd.f32 %v640_v3, %v1648_v1  ;;  %v642_v8 = vpop.f32.mrb[19].mxu0  ;;  %873 = vst [vmem:[%s1681_s15 + $0x78] sm:$0xff] %v823_v14 }
 0x125   : > { %v643_v10 = vadd.f32 %v642_v8, %v1650_v2  ;;  %872 = vst [vmem:[%s1681_s15 + $0x70] sm:$0xff] %v818_v18 }
 0x126   : > { %835 = vst [vmem:[%s1656_s24 + $0x48] sm:$0xff] %v641_v6 }
 0x127   : > { %851 = vst [vmem:[%s1663_s14 + $0x48] sm:$0xff] %v643_v10  ;;  %v646_v12 = vpop.f32.mrb[20].mxu0 }
 0x128   : > { %v647_v16 = vadd.f32 %v646_v12, %v1648_v1  ;;  %v648_v17 = vpop.f32.mrb[21].mxu0 }
 0x129   : > { %v649_v19 = vadd.f32 %v648_v17, %v1650_v2 }
 0x12a   : > { %836 = vst [vmem:[%s1656_s24 + $0x50] sm:$0xff] %v647_v16 }
 0x12b   : > { %852 = vst [vmem:[%s1663_s14 + $0x50] sm:$0xff] %v649_v19  ;;  %v652_v20 = vpop.f32.mrb[22].mxu0 }
 0x12c   : > { %v653_v21 = vadd.f32 %v652_v20, %v1648_v1  ;;  %v654_v22 = vpop.f32.mrb[23].mxu0 }
 0x12d   : > { %v655_v23 = vadd.f32 %v654_v22, %v1650_v2 }
 0x12e   : > { %837 = vst [vmem:[%s1656_s24 + $0x58] sm:$0xff] %v653_v21 }
 0x12f   : > { %853 = vst [vmem:[%s1663_s14 + $0x58] sm:$0xff] %v655_v23  ;;  %v658_v24 = vpop.f32.mrb[24].mxu0 }
 0x130   : > { %v659_v13 = vadd.f32 %v658_v24, %v1648_v1  ;;  %v660_v25 = vpop.f32.mrb[25].mxu0 }
 0x131   : > { %v661_v26 = vadd.f32 %v660_v25, %v1650_v2 }
 0x132   : > { %838 = vst [vmem:[%s1656_s24 + $0x60] sm:$0xff] %v659_v13 }
 0x133   : > { %854 = vst [vmem:[%s1663_s14 + $0x60] sm:$0xff] %v661_v26  ;;  %v664_v27 = vpop.f32.mrb[26].mxu0 }
 0x134   : > { %v665_v28 = vadd.f32 %v664_v27, %v1648_v1  ;;  %v666_v29 = vpop.f32.mrb[27].mxu0 }
 0x135   : > { %v667_v31 = vadd.f32 %v666_v29, %v1650_v2 }
 0x136   : > { %839 = vst [vmem:[%s1656_s24 + $0x68] sm:$0xff] %v665_v28 }
 0x137   : > { %855 = vst [vmem:[%s1663_s14 + $0x68] sm:$0xff] %v667_v31  ;;  %v670_v32 = vpop.f32.mrb[28].mxu0 }
 0x138   : > { %v671_v33 = vadd.f32 %v670_v32, %v1648_v1  ;;  %v672_v35 = vpop.f32.mrb[29].mxu0 }
 0x139   : > { %v673_v36 = vadd.f32 %v672_v35, %v1650_v2 }
 0x13a   : > { %840 = vst [vmem:[%s1656_s24 + $0x70] sm:$0xff] %v671_v33 }
 0x13b   : > { %856 = vst [vmem:[%s1663_s14 + $0x70] sm:$0xff] %v673_v36  ;;  %v676_v37 = vpop.f32.mrb[30].mxu0 }
 0x13c   : > { %v677_v38 = vadd.f32 %v676_v37, %v1648_v1  ;;  %v678_v39 = vpop.f32.mrb[31].mxu0 }
 0x13d   : > { %v679_v40 = vadd.f32 %v678_v39, %v1650_v2 }
 0x13e   : > { %841 = vst [vmem:[%s1656_s24 + $0x78] sm:$0xff] %v677_v38 }
 0x13f   : > { %857 = vst [vmem:[%s1663_s14 + $0x78] sm:$0xff] %v679_v40 }
 0x140 PF: > { %s18_s28 = sadd.s32 1, %s1334_s28   ;;  %s1791_s24 = smov %s1326_s26 }
 0x141   : > { %p15_p7 = scmp.ge.s32.totalorder %s18_s28, 6   ;;  %s1792_s25 = smov %s1330_s27 }
 0x142   : > { %s1793_s26 = smov %s1796_s29  ;;  %s1794_s27 = smov %s1800_s30 }
 0x143   :  { %17 = sbr.rel (!%p15_p7) target bundleno = 3 (0x3), region = 100 }

// kernel: attn_block.5
= control target key start
LH: loop header
LB: loop body
LE: loop exit
PB: predicated region body
PF: predicated region fallthrough
CT: control target
= control target key end

     0   :  { %s4230_s21 = smov 0   ;;  %s4232_s22 = smov 0   ;;  %s5934_s0 = inlined_call_operand.vmem [shape: f32[2,256,128], index: 0, kind: input, shape index: {}]   ;;  %s5935_s1 = inlined_call_operand.vmem [shape: f32[2,256,128], index: 1, kind: input, shape index: {}]   ;;  %s5936_s2 = inlined_call_operand.vmem [shape: f32[2,256,128], index: 2, kind: input, shape index: {}]   ;;  %s5937_s3 = inlined_call_operand.vmem [shape: f32[2,128,256], index: 3, kind: input, shape index: {}]   ;;  %s5938_s4 = inlined_call_operand.vmem [shape: f32[128,128], index: 4, kind: input, shape index: {}]   ;;  %s5939_s5 = inlined_call_operand.vmem [shape: f32[128,1], index: 5, kind: input, shape index: {}]   ;;  %s5940_s6 = inlined_call_operand.vmem [shape: f32[2,128,256], index: 6, kind: output, shape index: {}]  }
   0x1   :  { %s4234_s23 = smov 0  }
   0x2 LB: > { %s28_s24 = sadd.s32 1, %s3927_s22  ;;  %p2506_p0 = scmp.ge.s32.totalorder %s3931_s23, 1  ;;  %s3931_s23 = sphi %s4234_s23, %s16_s23   ;;  %s3927_s22 = sphi %s4232_s22, %s6465_s22   ;;  %s3923_s21 = sphi %s4230_s21, %s6464_s21  }
   0x3   : > { %p30_p1 = scmp.ge.s32.totalorder %s28_s24, 2  ;;  %p270_p2 = scmp.lt.s32.totalorder %s3931_s23, 3 }
   0x5   : > { %s6467_s24 = smov (%p30_p1, %s28_s24), 0  ;;  %p271_p3 = pnand %p2506_p0, %p270_p2 }
   0x7   : > { %274 = sbr.rel (%p271_p3) target bundleno = 1083 (0x43b), region = 44 }
   0xe   : > { %p328_p4 = scmp.lt.s32.totalorder %s3923_s21, 1  ;;  %v4193_v0 = vmov 0.0   ;;  %v4378_v33 = vmov 0.0   ;;  %v4380_v34 = vmov 0.0   ;;  %v4382_v35 = vmov 0.0   ;;  %s4506_s17 = smov 0  }
   0xf   : > { %399 = vst [vmem:[#allocation2] sm:$0xff] %v4193_v0  ;;  %400 = vst [vmem:[#allocation2 + $0x8] sm:$0xff] %v4193_v0  ;;  %v4384_v36 = vmov 0.0   ;;  %v4386_v37 = vmov 0.0   ;;  %v4388_v38 = vmov 0.0   ;;  %v4390_v39 = vmov 0.0  }
  0x10   : > { %401 = vst [vmem:[#allocation2 + $0x10] sm:$0xff] %v4193_v0  ;;  %402 = vst [vmem:[#allocation2 + $0x18] sm:$0xff] %v4193_v0  ;;  %s6469_s21 = smov (!%p328_p4, %s3923_s21), 1  ;;  %v4392_v40 = vmov 0.0   ;;  %v4394_v41 = vmov 0.0   ;;  %v4396_v42 = vmov 0.0  }
  0x11   : > { %403 = vst [vmem:[#allocation2 + $0x20] sm:$0xff] %v4193_v0  ;;  %404 = vst [vmem:[#allocation2 + $0x28] sm:$0xff] %v4193_v0  ;;  %s4254_s25 = sshll.u32 %s6469_s21, 8  ;;  %v4398_v43 = vmov 0.0   ;;  %v4400_v44 = vmov 0.0   ;;  %v4402_v45 = vmov 0.0  }
  0x12   : > { %405 = vst [vmem:[#allocation2 + $0x30] sm:$0xff] %v4193_v0  ;;  %406 = vst [vmem:[#allocation2 + $0x38] sm:$0xff] %v4193_v0  ;;  %s4260_s28 = scalar_lea.vmem %s5934_s0, %s4254_s25  ;;  %s341_s7 = scalar_lea.vmem %s5935_s1, %s4254_s25  ;;  %v4404_v46 = vmov 0.0   ;;  %v4406_v47 = vmov 0.0   ;;  %v4408_v48 = vmov 0.0   ;;  %v4410_v49 = vmov 0.0  }
  0x13   : > { %407 = vst [vmem:[#allocation2 + $0x40] sm:$0xff] %v4193_v0  ;;  %408 = vst [vmem:[#allocation2 + $0x48] sm:$0xff] %v4193_v0  ;;  %s346_s10 = scalar_lea.vmem %s5936_s2, %s4254_s25  ;;  %s4274_s13 = scalar_lea.vmem %s5937_s3, %s4254_s25  ;;  %v4277_v1 = vld [vmem:[%s4260_s28] sm:$0xff]  ;;  %v4280_v2 = vld [vmem:[%s4260_s28 + $0x8] sm:$0xff]  ;;  %v4412_v50 = vmov 0.0   ;;  %v4414_v51 = vmov 0.0  }
  0x14   : > { %409 = vst [vmem:[#allocation2 + $0x50] sm:$0xff] %v4193_v0  ;;  %410 = vst [vmem:[#allocation2 + $0x58] sm:$0xff] %v4193_v0  ;;  %v4283_v3 = vld [vmem:[%s4260_s28 + $0x10] sm:$0xff]  ;;  %s4289_s16 = scalar_lea.vmem %s5940_s6, %s4254_s25  ;;  %v4292_v4 = vld [vmem:[%s4260_s28 + $0x18] sm:$0xff]  ;;  %v4416_v52 = vmov 0.0   ;;  %v4418_v53 = vmov 0.0  }
  0x15   : > { %411 = vst [vmem:[#allocation2 + $0x60] sm:$0xff] %v4193_v0  ;;  %412 = vst [vmem:[#allocation2 + $0x68] sm:$0xff] %v4193_v0  ;;  %v4295_v5 = vld [vmem:[%s4260_s28 + $0x20] sm:$0xff]  ;;  %v4298_v6 = vld [vmem:[%s4260_s28 + $0x28] sm:$0xff]  ;;  %v4420_v54 = vmov 0.0   ;;  %v4422_v55 = vmov 0.0  }
  0x16   : > { %413 = vst [vmem:[#allocation2 + $0x70] sm:$0xff] %v4193_v0  ;;  %414 = vst [vmem:[#allocation2 + $0x78] sm:$0xff] %v4193_v0  ;;  %v4301_v7 = vld [vmem:[%s4260_s28 + $0x30] sm:$0xff]  ;;  %v4304_v8 = vld [vmem:[%s4260_s28 + $0x38] sm:$0xff]  ;;  %v4424_v56 = vmov 0.0   ;;  %v4426_v57 = vmov 0.0  }
  0x17   : > { %415 = vst [vmem:[#allocation2 + $0x80] sm:$0xff] %v4193_v0  ;;  %416 = vst [vmem:[#allocation2 + $0x88] sm:$0xff] %v4193_v0  ;;  %v4307_v9 = vld [vmem:[%s4260_s28 + $0x40] sm:$0xff]  ;;  %v4310_v10 = vld [vmem:[%s4260_s28 + $0x48] sm:$0xff]  ;;  %v4428_v58 = vmov 0.0   ;;  %v4430_v59 = vmov 0.0  }
  0x18   : > { %417 = vst [vmem:[#allocation2 + $0x90] sm:$0xff] %v4193_v0  ;;  %418 = vst [vmem:[#allocation2 + $0x98] sm:$0xff] %v4193_v0  ;;  %v4313_v11 = vld [vmem:[%s4260_s28 + $0x50] sm:$0xff]  ;;  %v4316_v12 = vld [vmem:[%s4260_s28 + $0x58] sm:$0xff]  ;;  %v4432_v60 = vmov 0.0   ;;  %v4434_v61 = vmov 0.0  }
  0x19   : > { %419 = vst [vmem:[#allocation2 + $0xa0] sm:$0xff] %v4193_v0  ;;  %420 = vst [vmem:[#allocation2 + $0xa8] sm:$0xff] %v4193_v0  ;;  %v4319_v13 = vld [vmem:[%s4260_s28 + $0x60] sm:$0xff]  ;;  %v4322_v14 = vld [vmem:[%s4260_s28 + $0x68] sm:$0xff]  ;;  %v4436_v62 = vmov 0.0   ;;  %v4438_v63 = vmov 0.0  }
  0x1a   : > { %421 = vst [vmem:[#allocation2 + $0xb0] sm:$0xff] %v4193_v0  ;;  %422 = vst [vmem:[#allocation2 + $0xb8] sm:$0xff] %v4193_v0  ;;  %v4325_v15 = vld [vmem:[%s4260_s28 + $0x70] sm:$0xff]  ;;  %v4328_v16 = vld [vmem:[%s4260_s28 + $0x78] sm:$0xff] }
  0x1b   : > { %423 = vst [vmem:[#allocation2 + $0xc0] sm:$0xff] %v4193_v0  ;;  %424 = vst [vmem:[#allocation2 + $0xc8] sm:$0xff] %v4193_v0  ;;  %v4331_v17 = vld [vmem:[%s4260_s28 + $0x80] sm:$0xff]  ;;  %v4334_v18 = vld [vmem:[%s4260_s28 + $0x88] sm:$0xff] }
  0x1c   : > { %425 = vst [vmem:[#allocation2 + $0xd0] sm:$0xff] %v4193_v0  ;;  %426 = vst [vmem:[#allocation2 + $0xd8] sm:$0xff] %v4193_v0  ;;  %v4337_v19 = vld [vmem:[%s4260_s28 + $0x90] sm:$0xff]  ;;  %v4340_v20 = vld [vmem:[%s4260_s28 + $0x98] sm:$0xff] }
  0x1d   : > { %427 = vst [vmem:[#allocation2 + $0xe0] sm:$0xff] %v4193_v0  ;;  %428 = vst [vmem:[#allocation2 + $0xe8] sm:$0xff] %v4193_v0  ;;  %v4343_v21 = vld [vmem:[%s4260_s28 + $0xa0] sm:$0xff]  ;;  %v4346_v22 = vld [vmem:[%s4260_s28 + $0xa8] sm:$0xff] }
  0x1e   : > { %429 = vst [vmem:[#allocation2 + $0xf0] sm:$0xff] %v4193_v0  ;;  %430 = vst [vmem:[#allocation2 + $0xf8] sm:$0xff] %v4193_v0  ;;  %v4349_v23 = vld [vmem:[%s4260_s28 + $0xb0] sm:$0xff]  ;;  %v4352_v24 = vld [vmem:[%s4260_s28 + $0xb8] sm:$0xff]  ;;  %v4440_v0 = vmov 0.0  }
  0x1f   : > { %6005 = vst [vmem:[#allocation3_spill] sm:$0xff] %v4277_v1  ;;  %6006 = vst [vmem:[#allocation4_spill] sm:$0xff] %v4280_v2  ;;  %v4355_v25 = vld [vmem:[%s4260_s28 + $0xc0] sm:$0xff]  ;;  %v4358_v26 = vld [vmem:[%s4260_s28 + $0xc8] sm:$0xff]  ;;  %v4502_v2 = vmov -inf   ;;  %v4504_v1 = vmov -inf  }
  0x20   : > { %6007 = vst [vmem:[#allocation5_spill] sm:$0xff] %v4283_v3  ;;  %6008 = vst [vmem:[#allocation6_spill] sm:$0xff] %v4292_v4  ;;  %v4361_v27 = vld [vmem:[%s4260_s28 + $0xd0] sm:$0xff]  ;;  %v4364_v28 = vld [vmem:[%s4260_s28 + $0xd8] sm:$0xff]  ;;  %v4498_v4 = vmov -inf   ;;  %v4500_v3 = vmov -inf  }
  0x21   : > { %6009 = vst [vmem:[#allocation7_spill] sm:$0xff] %v4295_v5  ;;  %6010 = vst [vmem:[#allocation8_spill] sm:$0xff] %v4298_v6  ;;  %v4367_v29 = vld [vmem:[%s4260_s28 + $0xe0] sm:$0xff]  ;;  %v4370_v30 = vld [vmem:[%s4260_s28 + $0xe8] sm:$0xff]  ;;  %v4494_v6 = vmov -inf   ;;  %v4496_v5 = vmov -inf  }
  0x22   : > { %6011 = vst [vmem:[#allocation9_spill] sm:$0xff] %v4301_v7  ;;  %6012 = vst [vmem:[#allocation10_spill] sm:$0xff] %v4304_v8  ;;  %v4373_v31 = vld [vmem:[%s4260_s28 + $0xf0] sm:$0xff]  ;;  %v4376_v32 = vld [vmem:[%s4260_s28 + $0xf8] sm:$0xff]  ;;  %v4490_v8 = vmov -inf   ;;  %v4492_v7 = vmov -inf  }
  0x23   : > { %6013 = vst [vmem:[#allocation11_spill] sm:$0xff] %v4307_v9  ;;  %6014 = vst [vmem:[#allocation12_spill] sm:$0xff] %v4310_v10  ;;  %v4486_v10 = vmov -inf   ;;  %v4488_v9 = vmov -inf  }
  0x24   : > { %6015 = vst [vmem:[#allocation13_spill] sm:$0xff] %v4313_v11  ;;  %6016 = vst [vmem:[#allocation14_spill] sm:$0xff] %v4316_v12  ;;  %v4482_v12 = vmov -inf   ;;  %v4484_v11 = vmov -inf  }
  0x25   : > { %6017 = vst [vmem:[#allocation15_spill] sm:$0xff] %v4319_v13  ;;  %6018 = vst [vmem:[#allocation16_spill] sm:$0xff] %v4322_v14  ;;  %v4478_v14 = vmov -inf   ;;  %v4480_v13 = vmov -inf  }
  0x26   : > { %6019 = vst [vmem:[#allocation17_spill] sm:$0xff] %v4325_v15  ;;  %6020 = vst [vmem:[#allocation18_spill] sm:$0xff] %v4328_v16  ;;  %v4474_v16 = vmov -inf   ;;  %v4476_v15 = vmov -inf  }
  0x27   : > { %6021 = vst [vmem:[#allocation19_spill] sm:$0xff] %v4331_v17  ;;  %6022 = vst [vmem:[#allocation20_spill] sm:$0xff] %v4334_v18  ;;  %v4470_v18 = vmov -inf   ;;  %v4472_v17 = vmov -inf  }
  0x28   : > { %6023 = vst [vmem:[#allocation21_spill] sm:$0xff] %v4337_v19  ;;  %6024 = vst [vmem:[#allocation22_spill] sm:$0xff] %v4340_v20  ;;  %v4466_v20 = vmov -inf   ;;  %v4468_v19 = vmov -inf  }
  0x29   : > { %6025 = vst [vmem:[#allocation23_spill] sm:$0xff] %v4343_v21  ;;  %6026 = vst [vmem:[#allocation24_spill] sm:$0xff] %v4346_v22  ;;  %v4462_v22 = vmov -inf   ;;  %v4464_v21 = vmov -inf  }
  0x2a   : > { %6027 = vst [vmem:[#allocation25_spill] sm:$0xff] %v4349_v23  ;;  %6028 = vst [vmem:[#allocation26_spill] sm:$0xff] %v4352_v24  ;;  %v4458_v24 = vmov -inf   ;;  %v4460_v23 = vmov -inf  }
  0x2b   : > { %6029 = vst [vmem:[#allocation27_spill] sm:$0xff] %v4355_v25  ;;  %6030 = vst [vmem:[#allocation28_spill] sm:$0xff] %v4358_v26  ;;  %v4454_v26 = vmov -inf   ;;  %v4456_v25 = vmov -inf  }
  0x2c   : > { %6031 = vst [vmem:[#allocation29_spill] sm:$0xff] %v4361_v27  ;;  %6032 = vst [vmem:[#allocation30_spill] sm:$0xff] %v4364_v28  ;;  %v4450_v28 = vmov -inf   ;;  %v4452_v27 = vmov -inf  }
  0x2d   : > { %6033 = vst [vmem:[#allocation31_spill] sm:$0xff] %v4367_v29  ;;  %6034 = vst [vmem:[#allocation32_spill] sm:$0xff] %v4370_v30  ;;  %v4446_v30 = vmov -inf   ;;  %v4448_v29 = vmov -inf  }
  0x2e   : > { %6035 = vst [vmem:[#allocation33_spill] sm:$0xff] %v4373_v31  ;;  %6036 = vst [vmem:[#allocation34_spill] sm:$0xff] %v4376_v32  ;;  %v4442_v32 = vmov -inf   ;;  %v4444_v31 = vmov -inf  }
  0x2f   : > { %6037 = vst [vmem:[#allocation35_spill] sm:$0xff] %v4378_v33  ;;  %6038 = vst [vmem:[#allocation36_spill] sm:$0xff] %v4382_v35 }
  0x30   : > { %6039 = vst [vmem:[#allocation37_spill] sm:$0xff] %v4390_v39  ;;  %6040 = vst [vmem:[#allocation38_spill] sm:$0xff] %v4392_v40 }
  0x31   : > { %6041 = vst [vmem:[#allocation39_spill] sm:$0xff] %v4394_v41  ;;  %6042 = vst [vmem:[#allocation40_spill] sm:$0xff] %v4396_v42 }
  0x32   : > { %6043 = vst [vmem:[#allocation41_spill] sm:$0xff] %v4398_v43  ;;  %6044 = vst [vmem:[#allocation42_spill] sm:$0xff] %v4400_v44 }
  0x33   : > { %6045 = vst [vmem:[#allocation43_spill] sm:$0xff] %v4402_v45  ;;  %6046 = vst [vmem:[#allocation44_spill] sm:$0xff] %v4406_v47 }
  0x34   : > { %6047 = vst [vmem:[#allocation45_spill] sm:$0xff] %v4412_v50  ;;  %6048 = vst [vmem:[#allocation46_spill] sm:$0xff] %v4420_v54 }
  0x35   : > { %6049 = vst [vmem:[#allocation47_spill] sm:$0xff] %v4428_v58  ;;  %6050 = vst [vmem:[#allocation48_spill] sm:$0xff] %v4438_v63 }
  0x36   : > { %6051 = vst [vmem:[#allocation49_spill] sm:$0xff] %v4442_v32  ;;  %6052 = vst [vmem:[#allocation50_spill] sm:$0xff] %v4444_v31 }
  0x37   : > { %6053 = vst [vmem:[#allocation51_spill] sm:$0xff] %v4450_v28  ;;  %6054 = vst [vmem:[#allocation52_spill] sm:$0xff] %v4452_v27 }
  0x38   : > { %6055 = vst [vmem:[#allocation53_spill] sm:$0xff] %v4498_v4  ;;  %6056 = vst [vmem:[#allocation54_spill] sm:$0xff] %v4500_v3 }
  0x39   : > { %6057 = vst [vmem:[#allocation55_spill] sm:$0xff] %v4502_v2 }
  0x3a LB: >> { %v6079_v33 = vld [vmem:[#allocation35_spill] sm:$0xff]  ;;  %6081 = vst [vmem:[#allocation56_spill] sm:$0xff] %v3939_v34  ;;  %v6082_v35 = vld [vmem:[#allocation36_spill] sm:$0xff]  ;;  %6084 = vst [vmem:[#allocation57_spill] sm:$0xff] %v3947_v36  ;;  %s2517_s18 = sshll.u32 %s4191_s17, 6  ;;  %vm745_vm0 = vcmask 523264   ;;  %s4191_s17 = sphi %s4506_s17, %s6446_s17   ;;  %v4187_v1 = vphi %v4504_v1, %v6445_v1   ;;  %v4171_v5 = vphi %v4496_v5, %v6438_v5   ;;  %v4167_v6 = vphi %v4494_v6, %v6437_v6   ;;  %v4163_v7 = vphi %v4492_v7, %v6436_v7   ;;  %v4159_v8 = vphi %v4490_v8, %v6435_v8   ;;  %v4155_v9 = vphi %v4488_v9, %v6434_v9   ;;  %v4151_v10 = vphi %v4486_v10, %v6433_v10   ;;  %v4147_v11 = vphi %v4484_v11, %v6432_v11   ;;  %v4143_v12 = vphi %v4482_v12, %v6431_v12   ;;  %v4139_v13 = vphi %v4480_v13, %v6430_v13   ;;  %v4135_v14 = vphi %v4478_v14, %v6429_v14   ;;  %v4131_v15 = vphi %v4476_v15, %v6428_v15   ;;  %v4127_v16 = vphi %v4474_v16, %v6427_v16   ;;  %v4123_v17 = vphi %v4472_v17, %v6426_v17   ;;  %v4119_v18 = vphi %v4470_v18, %v6425_v18   ;;  %v4115_v19 = vphi %v4468_v19, %v6424_v19   ;;  %v4111_v20 = vphi %v4466_v20, %v6423_v20   ;;  %v4107_v21 = vphi %v4464_v21, %v6422_v21   ;;  %v4103_v22 = vphi %v4462_v22, %v6421_v22   ;;  %v4099_v23 = vphi %v4460_v23, %v6420_v23   ;;  %v4095_v24 = vphi %v4458_v24, %v6419_v24   ;;  %v4091_v25 = vphi %v4456_v25, %v6418_v25   ;;  %v4087_v26 = vphi %v4454_v26, %v6417_v26   ;;  %v4075_v29 = vphi %v4448_v29, %v6412_v29   ;;  %v4071_v30 = vphi %v4446_v30, %v6411_v30   ;;  %v4059_v0 = vphi %v4440_v0, %v6406_v0   ;;  %v4051_v62 = vphi %v4436_v62, %v6403_v62   ;;  %v4047_v61 = vphi %v4434_v61, %v6402_v61   ;;  %v4043_v60 = vphi %v4432_v60, %v6401_v60   ;;  %v4039_v59 = vphi %v4430_v59, %v6400_v59   ;;  %v4031_v57 = vphi %v4426_v57, %v6397_v57   ;;  %v4027_v56 = vphi %v4424_v56, %v6396_v56   ;;  %v4023_v55 = vphi %v4422_v55, %v6395_v55   ;;  %v4015_v53 = vphi %v4418_v53, %v6392_v53   ;;  %v4011_v52 = vphi %v4416_v52, %v6391_v52   ;;  %v4007_v51 = vphi %v4414_v51, %v6390_v51   ;;  %v3999_v49 = vphi %v4410_v49, %v6387_v49   ;;  %v3995_v48 = vphi %v4408_v48, %v6386_v48   ;;  %v3987_v46 = vphi %v4404_v46, %v6384_v46   ;;  %v3955_v38 = vphi %v4388_v38, %v6376_v38   ;;  %v3951_v37 = vphi %v4386_v37, %v6375_v37   ;;  %v3947_v36 = vphi %v4384_v36, %v6374_v36   ;;  %v3939_v34 = vphi %v4380_v34, %v6372_v34  }
  0x3b   : >> { %6080 = vst [vmem:[#allocation35_spill] sm:$0xff] %v6079_v33  ;;  %6083 = vst [vmem:[#allocation36_spill] sm:$0xff] %v6082_v35  ;;  %v6087_v39 = vld [vmem:[#allocation37_spill] sm:$0xff]  ;;  %v6089_v40 = vld [vmem:[#allocation38_spill] sm:$0xff]  ;;  %s502_s21 = scalar_lea.vmem %s341_s7, %s2517_s18  ;;  %s4792_s28 = scalar_lea.vmem %s346_s10, %s2517_s18 }
  0x3c   : >> { %6085 = vst [vmem:[#allocation58_spill] sm:$0xff] %v3951_v37  ;;  %6086 = vst [vmem:[#allocation59_spill] sm:$0xff] %v3955_v38  ;;  %v6091_v41 = vld [vmem:[#allocation39_spill] sm:$0xff]  ;;  %v6093_v42 = vld [vmem:[#allocation40_spill] sm:$0xff]  ;;  %s436_s29 = sadd.s32 1, %s4191_s17  }
  0x3d   : >> { %6088 = vst [vmem:[#allocation37_spill] sm:$0xff] %v6087_v39  ;;  %6090 = vst [vmem:[#allocation38_spill] sm:$0xff] %v6089_v40  ;;  %v6095_v43 = vld [vmem:[#allocation41_spill] sm:$0xff]  ;;  %v6097_v44 = vld [vmem:[#allocation42_spill] sm:$0xff]  ;;  %p5499_p5 = scmp.ge.s32.totalorder %s436_s29, 4   ;;  %s6446_s17 = smov %s436_s29 }
  0x3e   : >> { %6092 = vst [vmem:[#allocation39_spill] sm:$0xff] %v6091_v41  ;;  %6094 = vst [vmem:[#allocation40_spill] sm:$0xff] %v6093_v42  ;;  %v6099_v45 = vld [vmem:[#allocation43_spill] sm:$0xff]  ;;  %v6102_v47 = vld [vmem:[#allocation44_spill] sm:$0xff] }
  0x3f   : >> { %6096 = vst [vmem:[#allocation41_spill] sm:$0xff] %v6095_v43  ;;  %6098 = vst [vmem:[#allocation42_spill] sm:$0xff] %v6097_v44  ;;  %v6106_v50 = vld [vmem:[#allocation45_spill] sm:$0xff]  ;;  %v6111_v54 = vld [vmem:[#allocation46_spill] sm:$0xff] }
  0x40   : >> { %6100 = vst [vmem:[#allocation43_spill] sm:$0xff] %v6099_v45  ;;  %6101 = vst [vmem:[#allocation60_spill] sm:$0xff] %v3987_v46  ;;  %v6116_v58 = vld [vmem:[#allocation47_spill] sm:$0xff]  ;;  %v6122_v63 = vld [vmem:[#allocation48_spill] sm:$0xff] }
  0x41   : >> { %6103 = vst [vmem:[#allocation44_spill] sm:$0xff] %v6102_v47  ;;  %6104 = vst [vmem:[#allocation61_spill] sm:$0xff] %v3995_v48  ;;  %v6125_v32 = vld [vmem:[#allocation49_spill] sm:$0xff]  ;;  %v6127_v31 = vld [vmem:[#allocation50_spill] sm:$0xff] }
  0x42   : >> { %6105 = vst [vmem:[#allocation62_spill] sm:$0xff] %v3999_v49  ;;  %6107 = vst [vmem:[#allocation45_spill] sm:$0xff] %v6106_v50  ;;  %v6131_v28 = vld [vmem:[#allocation51_spill] sm:$0xff]  ;;  %v6133_v27 = vld [vmem:[#allocation52_spill] sm:$0xff] }
  0x43   : >> { %6108 = vst [vmem:[#allocation63_spill] sm:$0xff] %v4007_v51  ;;  %6109 = vst [vmem:[#allocation64_spill] sm:$0xff] %v4011_v52  ;;  %v6138_v4 = vld [vmem:[#allocation53_spill] sm:$0xff]  ;;  %v6140_v3 = vld [vmem:[#allocation54_spill] sm:$0xff] }
  0x44   : >> { %6110 = vst [vmem:[#allocation65_spill] sm:$0xff] %v4015_v53  ;;  %6112 = vst [vmem:[#allocation46_spill] sm:$0xff] %v6111_v54  ;;  %v6142_v2 = vld [vmem:[#allocation55_spill] sm:$0xff]  ;;  %v504_v35 = vld [vmem:[%s502_s21 + $0x8] sm:$0xff] }
  0x45   : >> { %6113 = vst [vmem:[#allocation66_spill] sm:$0xff] %v4023_v55  ;;  %6114 = vst [vmem:[#allocation67_spill] sm:$0xff] %v4027_v56  ;;  %v6144_v33 = vld [vmem:[#allocation3_spill] sm:$0xff]  ;;  %v505_v36 = vld [vmem:[%s502_s21 + $0x10] sm:$0xff] }
  0x46   : >> { %6115 = vst [vmem:[#allocation68_spill] sm:$0xff] %v4031_v57  ;;  %6117 = vst [vmem:[#allocation47_spill] sm:$0xff] %v6116_v58  ;;  %2717 = vmatprep.mubr.f32.mxu0 %v6144_v33  ;;  %v503_v34 = vld [vmem:[%s502_s21] sm:$0xff]  ;;  %v506_v38 = vld [vmem:[%s502_s21 + $0x18] sm:$0xff] }
  0x47   : >> { %6118 = vst [vmem:[#allocation69_spill] sm:$0xff] %v4039_v59  ;;  %6119 = vst [vmem:[#allocation70_spill] sm:$0xff] %v4043_v60  ;;  %v2829_v37 = vpack.c.bf16 %v504_v35, %v503_v34  ;;  %v2833_v39 = vpack.c.bf16 %v506_v38, %v505_v36  ;;  %v507_v40 = vld [vmem:[%s502_s21 + $0x20] sm:$0xff]  ;;  %v508_v41 = vld [vmem:[%s502_s21 + $0x28] sm:$0xff] }
  0x48   : >> { %6120 = vst [vmem:[#allocation71_spill] sm:$0xff] %v4047_v61  ;;  %6121 = vst [vmem:[#allocation72_spill] sm:$0xff] %v4051_v62  ;;  %v2837_v42 = vpack.c.bf16 %v508_v41, %v507_v40  ;;  %v509_v33 = vld [vmem:[%s502_s21 + $0x30] sm:$0xff]  ;;  %v510_v43 = vld [vmem:[%s502_s21 + $0x38] sm:$0xff] }
  0x49   : >> { %6123 = vst [vmem:[#allocation48_spill] sm:$0xff] %v6122_v63  ;;  %6124 = vst [vmem:[#allocation73_spill] sm:$0xff] %v4059_v0  ;;  %2830 = vmatprep.subr.bf16.mxu0 %v2829_v37  ;;  %v2841_v44 = vpack.c.bf16 %v510_v43, %v509_v33  ;;  %v6145_v45 = vld [vmem:[#allocation4_spill] sm:$0xff]  ;;  %v6146_v46 = vld [vmem:[#allocation5_spill] sm:$0xff] }
  0x4a   : >> { %6126 = vst [vmem:[#allocation49_spill] sm:$0xff] %v6125_v32  ;;  %6128 = vst [vmem:[#allocation50_spill] sm:$0xff] %v6127_v31  ;;  %2832 = vmatpush3.bf16.xpose.msra.mxu0 %v2829_v37  ;;  %v6147_v34 = vld [vmem:[#allocation6_spill] sm:$0xff]  ;;  %v6148_v35 = vld [vmem:[#allocation7_spill] sm:$0xff] }
  0x4b   : >> { %6129 = vst [vmem:[#allocation74_spill] sm:$0xff] %v4071_v30  ;;  %6130 = vst [vmem:[#allocation75_spill] sm:$0xff] %v4075_v29  ;;  %2834 = vmatprep.subr.bf16.mxu0 %v2833_v39  ;;  %v6149_v36 = vld [vmem:[#allocation8_spill] sm:$0xff]  ;;  %v6150_v37 = vld [vmem:[#allocation9_spill] sm:$0xff] }
  0x4c   : >> { %6132 = vst [vmem:[#allocation51_spill] sm:$0xff] %v6131_v28  ;;  %6134 = vst [vmem:[#allocation52_spill] sm:$0xff] %v6133_v27  ;;  %v6151_v38 = vld [vmem:[#allocation10_spill] sm:$0xff]  ;;  %v6153_v40 = vld [vmem:[#allocation12_spill] sm:$0xff] }
  0x4d   : >> { %6135 = vst [vmem:[#allocation76_spill] sm:$0xff] %v4087_v26  ;;  %6136 = vst [vmem:[#allocation77_spill] sm:$0xff] %v4091_v25  ;;  %v6154_v41 = vld [vmem:[#allocation13_spill] sm:$0xff]  ;;  %v6156_v43 = vld [vmem:[#allocation15_spill] sm:$0xff] }
  0x4e   : >> { %6137 = vst [vmem:[#allocation78_spill] sm:$0xff] %v4167_v6  ;;  %6139 = vst [vmem:[#allocation53_spill] sm:$0xff] %v6138_v4  ;;  %v6160_v33 = vld [vmem:[#allocation19_spill] sm:$0xff]  ;;  %v514_v54 = vld [vmem:[%s4792_s28 + $0x10] sm:$0xff] }
  0x4f   : >> { %6141 = vst [vmem:[#allocation54_spill] sm:$0xff] %v6140_v3  ;;  %6143 = vst [vmem:[#allocation55_spill] sm:$0xff] %v6142_v2  ;;  %v515_v55 = vld [vmem:[%s4792_s28 + $0x18] sm:$0xff]  ;;  %v517_v57 = vld [vmem:[%s4792_s28 + $0x28] sm:$0xff] }
  0x50   : >> { %v518_v59 = vld [vmem:[%s4792_s28 + $0x30] sm:$0xff]  ;;  %v519_v60 = vld [vmem:[%s4792_s28 + $0x38] sm:$0xff] }
  0x52   : >> { %2836 = vmatpush3.bf16.xpose.msra.mxu0 %v2833_v39  ;;  %v6152_v39 = vld [vmem:[#allocation11_spill] sm:$0xff] }
  0x53   : >> { %2838 = vmatprep.subr.bf16.mxu0 %v2837_v42 }
  0x5a   : >> { %2840 = vmatpush3.bf16.xpose.msra.mxu0 %v2837_v42  ;;  %v6155_v42 = vld [vmem:[#allocation14_spill] sm:$0xff] }
  0x5b   : >> { %2842 = vmatprep.subr.bf16.mxu0 %v2841_v44 }
  0x62   : >> { %2844 = vmatpush3.bf16.xpose.msra.mxu0 %v2841_v44  ;;  %v6157_v44 = vld [vmem:[#allocation16_spill] sm:$0xff] }
  0x69   : >> { %2718 = vmatmul.mubr.f32.vlgmr.msra.gmra.mrb[0].mxu0 %v6145_v45  ;;  %v6158_v45 = vld [vmem:[#allocation17_spill] sm:$0xff] }
  0x6a   : >> { %2720 = vmatprep.mubr.f32.mxu0 %v6146_v46  ;;  %v6159_v46 = vld [vmem:[#allocation18_spill] sm:$0xff] }
  0x6d   : >> { %2721 = vmatmul.mubr.f32.gmra.mrb[2].mxu0 %v6147_v34  ;;  %v6161_v34 = vld [vmem:[#allocation20_spill] sm:$0xff] }
  0x6e   : >> { %2723 = vmatprep.mubr.f32.mxu0 %v6148_v35  ;;  %v6162_v35 = vld [vmem:[#allocation21_spill] sm:$0xff] }
  0x71   : >> { %2724 = vmatmul.mubr.f32.gmra.mrb[4].mxu0 %v6149_v36  ;;  %v6163_v36 = vld [vmem:[#allocation22_spill] sm:$0xff] }
  0x72   : >> { %2726 = vmatprep.mubr.f32.mxu0 %v6150_v37  ;;  %v6164_v37 = vld [vmem:[#allocation23_spill] sm:$0xff] }
  0x75   : >> { %2727 = vmatmul.mubr.f32.gmra.mrb[6].mxu0 %v6151_v38  ;;  %v6165_v38 = vld [vmem:[#allocation24_spill] sm:$0xff] }
  0x76   : >> { %2729 = vmatprep.mubr.f32.mxu0 %v6152_v39  ;;  %v6166_v39 = vld [vmem:[#allocation25_spill] sm:$0xff] }
  0x79   : >> { %2730 = vmatmul.mubr.f32.gmra.mrb[8].mxu0 %v6153_v40  ;;  %v6167_v40 = vld [vmem:[#allocation26_spill] sm:$0xff] }
  0x7a   : >> { %2732 = vmatprep.mubr.f32.mxu0 %v6154_v41  ;;  %v6168_v41 = vld [vmem:[#allocation27_spill] sm:$0xff] }
  0x7d   : >> { %2733 = vmatmul.mubr.f32.gmra.mrb[10].mxu0 %v6155_v42  ;;  %v6169_v42 = vld [vmem:[#allocation28_spill] sm:$0xff] }
  0x7e   : >> { %2735 = vmatprep.mubr.f32.mxu0 %v6156_v43  ;;  %v6170_v43 = vld [vmem:[#allocation29_spill] sm:$0xff] }
  0x81   : >> { %2736 = vmatmul.mubr.f32.gmra.mrb[12].mxu0 %v6157_v44  ;;  %v6171_v44 = vld [vmem:[#allocation30_spill] sm:$0xff] }
  0x82   : >> { %2738 = vmatprep.mubr.f32.mxu0 %v6158_v45  ;;  %v6172_v45 = vld [vmem:[#allocation31_spill] sm:$0xff] }
  0x85   : >> { %2739 = vmatmul.mubr.f32.gmra.mrb[14].mxu0 %v6159_v46  ;;  %v6173_v46 = vld [vmem:[#allocation32_spill] sm:$0xff] }
  0x86   : >> { %2741 = vmatprep.mubr.f32.mxu0 %v6160_v33  ;;  %v6174_v33 = vld [vmem:[#allocation33_spill] sm:$0xff] }
  0x89   : >> { %2742 = vmatmul.mubr.f32.gmra.mrb[16].mxu0 %v6161_v34  ;;  %v6175_v34 = vld [vmem:[#allocation34_spill] sm:$0xff] }
  0x8a   : >> { %2744 = vmatprep.mubr.f32.mxu0 %v6162_v35 }
  0x8d   : >> { %2745 = vmatmul.mubr.f32.gmra.mrb[18].mxu0 %v6163_v36 }
  0x8e   : >> { %2747 = vmatprep.mubr.f32.mxu0 %v6164_v37 }
  0x91   : >> { %2748 = vmatmul.mubr.f32.gmra.mrb[20].mxu0 %v6165_v38 }
  0x92   : >> { %2750 = vmatprep.mubr.f32.mxu0 %v6166_v39 }
  0x95   : >> { %2751 = vmatmul.mubr.f32.gmra.mrb[22].mxu0 %v6167_v40 }
  0x96   : >> { %2753 = vmatprep.mubr.f32.mxu0 %v6168_v41 }
  0x99   : >> { %2754 = vmatmul.mubr.f32.gmra.mrb[24].mxu0 %v6169_v42 }
  0x9a   : >> { %2756 = vmatprep.mubr.f32.mxu0 %v6170_v43 }
  0x9d   : >> { %2757 = vmatmul.mubr.f32.gmra.mrb[26].mxu0 %v6171_v44 }
  0x9e   : >> { %2759 = vmatprep.mubr.f32.mxu0 %v6172_v45 }
  0xa1   : >> { %2760 = vmatmul.mubr.f32.gmra.mrb[28].mxu0 %v6173_v46 }
  0xa2   : >> { %2762 = vmatprep.mubr.f32.mxu0 %v6174_v33 }
  0xa5   : >> { %2763 = vmatmul.mubr.f32.gmra.mrb[30].mxu0 %v6175_v34 }
 0x13c   : >> { %v4743_v35 = vpop.f32.mrb[0].mxu0 }
 0x13d   : >> { %v4745_v36 = vpop.f32.mrb[1].mxu0  ;;  %v749_v40 = vsel %vm745_vm0, %v4743_v35, -inf }
 0x13e   : >> { %v746_v37 = vsel %vm745_vm0, %v4745_v36, -inf }
 0x13f   : >> { %747 = vmax.xlane.f32.xlu0 %v746_v37 }
 0x140   : >> { %v4749_v38 = vpop.f32.mrb[2].mxu0 }
 0x141   : >> { %v4751_v39 = vpop.f32.mrb[3].mxu0  ;;  %v755_v44 = vsel %vm745_vm0, %v4749_v38, -inf }
 0x142   : >> { %v752_v41 = vsel %vm745_vm0, %v4751_v39, -inf }
 0x143   : >> { %750 = vmax.xlane.f32.xlu0 %v749_v40  ;;  %753 = vmax.xlane.f32.xlu1 %v752_v41 }
 0x144   : >> { %v4757_v42 = vpop.f32.mrb[4].mxu0 }
 0x145   : >> { %v4759_v43 = vpop.f32.mrb[5].mxu0  ;;  %v761_v34 = vsel %vm745_vm0, %v4757_v42, -inf }
 0x146   : >> { %v758_v45 = vsel %vm745_vm0, %v4759_v43, -inf }
 0x147   : >> { %756 = vmax.xlane.f32.xlu1 %v755_v44  ;;  %759 = vmax.xlane.f32.xlu0 %v758_v45 }
 0x148   : >> { %v4765_v46 = vpop.f32.mrb[6].mxu0 }
 0x149   : >> { %v4767_v33 = vpop.f32.mrb[7].mxu0  ;;  %v767_v44 = vsel %vm745_vm0, %v4765_v46, -inf }
 0x14a   : >> { %v764_v37 = vsel %vm745_vm0, %v4767_v33, -inf }
 0x14b   : >> { %762 = vmax.xlane.f32.xlu1 %v761_v34  ;;  %765 = vmax.xlane.f32.xlu0 %v764_v37 }
 0x14c   : >> { %v4773_v40 = vpop.f32.mrb[8].mxu0 }
 0x14d   : >> { %v4775_v41 = vpop.f32.mrb[9].mxu0  ;;  %v773_v34 = vsel %vm745_vm0, %v4773_v40, -inf }
 0x14e   : >> { %v770_v45 = vsel %vm745_vm0, %v4775_v41, -inf }
 0x14f   : >> { %768 = vmax.xlane.f32.xlu1 %v767_v44  ;;  %771 = vmax.xlane.f32.xlu0 %v770_v45  ;;  %v512_v44 = vld [vmem:[%s4792_s28] sm:$0xff]  ;;  %v513_v45 = vld [vmem:[%s4792_s28 + $0x8] sm:$0xff] }
 0x150   : >> { %v4781_v47 = vpop.f32.mrb[10].mxu0  ;;  %v2845_v49 = vpack.c.bf16 %v513_v45, %v512_v44 }
 0x151   : >> { %v4783_v48 = vpop.f32.mrb[11].mxu0  ;;  %v779_v52 = vsel %vm745_vm0, %v4781_v47, -inf }
 0x152   : >> { %v776_v37 = vsel %vm745_vm0, %v4783_v48, -inf  ;;  %2846 = vmatprep.subr.bf16.mxu1 %v2845_v49 }
 0x153   : >> { %774 = vmax.xlane.f32.xlu1 %v773_v34  ;;  %777 = vmax.xlane.f32.xlu0 %v776_v37  ;;  %v2849_v34 = vpack.c.bf16 %v515_v55, %v514_v54 }
 0x154   : >> { %v4800_v50 = vpop.f32.mrb[12].mxu0  ;;  %2848 = vmatpush3.bf16.msra.mxu1 %v2845_v49  ;;  %v516_v49 = vld [vmem:[%s4792_s28 + $0x20] sm:$0xff] }
 0x155   : >> { %v4802_v51 = vpop.f32.mrb[13].mxu0  ;;  %2850 = vmatprep.subr.bf16.mxu1 %v2849_v34  ;;  %v785_v45 = vsel %vm745_vm0, %v4800_v50, -inf }
 0x156   : >> { %v782_v53 = vsel %vm745_vm0, %v4802_v51, -inf }
 0x157   : >> { %780 = vmax.xlane.f32.xlu1 %v779_v52  ;;  %783 = vmax.xlane.f32.xlu0 %v782_v53  ;;  %v2853_v52 = vpack.c.bf16 %v517_v57, %v516_v49 }
 0x158   : >> { %v4810_v37 = vpop.f32.mrb[14].mxu0  ;;  %2852 = vmatpush3.bf16.msra.mxu1 %v2849_v34  ;;  %v2857_v34 = vpack.c.bf16 %v519_v60, %v518_v59 }
 0x159   : >> { %v4812_v44 = vpop.f32.mrb[15].mxu0  ;;  %2854 = vmatprep.subr.bf16.mxu1 %v2853_v52  ;;  %v791_v55 = vsel %vm745_vm0, %v4810_v37, -inf }
 0x15a   : >> { %v788_v56 = vsel %vm745_vm0, %v4812_v44, -inf }
 0x15b   : >> { %786 = vmax.xlane.f32.xlu1 %v785_v45  ;;  %789 = vmax.xlane.f32.xlu0 %v788_v56 }
 0x15c   : >> { %v4820_v53 = vpop.f32.mrb[16].mxu0  ;;  %2856 = vmatpush3.bf16.msra.mxu1 %v2853_v52 }
 0x15d   : >> { %v4822_v54 = vpop.f32.mrb[17].mxu0  ;;  %2858 = vmatprep.subr.bf16.mxu1 %v2857_v34  ;;  %v797_v57 = vsel %vm745_vm0, %v4820_v53, -inf }
 0x15e   : >> { %v794_v58 = vsel %vm745_vm0, %v4822_v54, -inf }
 0x15f   : >> { %792 = vmax.xlane.f32.xlu1 %v791_v55  ;;  %795 = vmax.xlane.f32.xlu0 %v794_v58 }
 0x160   : >> { %v4830_v45 = vpop.f32.mrb[18].mxu0  ;;  %2860 = vmatpush3.bf16.msra.mxu1 %v2857_v34 }
 0x161   : >> { %v4832_v56 = vpop.f32.mrb[19].mxu0  ;;  %v803_v58 = vsel %vm745_vm0, %v4830_v45, -inf }
 0x162   : >> { %v800_v49 = vsel %vm745_vm0, %v4832_v56, -inf }
 0x163   : >> { %798 = vmax.xlane.f32.xlu1 %v797_v57  ;;  %801 = vmax.xlane.f32.xlu0 %v800_v49 }
 0x164   : >> { %v4838_v52 = vpop.f32.mrb[20].mxu0 }
 0x165   : >> { %v4840_v61 = vpop.f32.mrb[21].mxu0  ;;  %v809_v34 = vsel %vm745_vm0, %v4838_v52, -inf }
 0x166   : >> { %v806_v59 = vsel %vm745_vm0, %v4840_v61, -inf }
 0x167   : >> { %804 = vmax.xlane.f32.xlu1 %v803_v58  ;;  %807 = vmax.xlane.f32.xlu0 %v806_v59 }
 0x168   : >> { %v4846_v60 = vpop.f32.mrb[22].mxu0 }
 0x169   : >> { %v4848_v55 = vpop.f32.mrb[23].mxu0  ;;  %v815_v58 = vsel %vm745_vm0, %v4846_v60, -inf }
 0x16a   : >> { %v812_v57 = vsel %vm745_vm0, %v4848_v55, -inf }
 0x16b   : >> { %810 = vmax.xlane.f32.xlu1 %v809_v34  ;;  %813 = vmax.xlane.f32.xlu0 %v812_v57 }
 0x16c   : >> { %v4854_v49 = vpop.f32.mrb[24].mxu0 }
 0x16d   : >> { %6176 = vst [vmem:[#allocation79_spill] sm:$0xff] %v4854_v49  ;;  %v4856_v62 = vpop.f32.mrb[25].mxu0  ;;  %v821_v34 = vsel %vm745_vm0, %v4854_v49, -inf }
 0x16e   : >> { %v818_v59 = vsel %vm745_vm0, %v4856_v62, -inf }
 0x16f   : >> { %816 = vmax.xlane.f32.xlu1 %v815_v58  ;;  %819 = vmax.xlane.f32.xlu0 %v818_v59 }
 0x170   : >> { %v4862_v63 = vpop.f32.mrb[26].mxu0 }
 0x171   : >> { %6177 = vst [vmem:[#allocation80_spill] sm:$0xff] %v4862_v63  ;;  %v4864_v0 = vpop.f32.mrb[27].mxu0  ;;  %v827_v58 = vsel %vm745_vm0, %v4862_v63, -inf }
 0x172   : >> { %6178 = vst [vmem:[#allocation81_spill] sm:$0xff] %v4864_v0  ;;  %v824_v57 = vsel %vm745_vm0, %v4864_v0, -inf }
 0x173   : >> { %822 = vmax.xlane.f32.xlu1 %v821_v34  ;;  %825 = vmax.xlane.f32.xlu0 %v824_v57 }
 0x174   : >> { %v4870_v32 = vpop.f32.mrb[28].mxu0 }
 0x175   : >> { %6179 = vst [vmem:[#allocation82_spill] sm:$0xff] %v4870_v32  ;;  %v4872_v31 = vpop.f32.mrb[29].mxu0  ;;  %v833_v34 = vsel %vm745_vm0, %v4870_v32, -inf }
 0x176   : >> { %6180 = vst [vmem:[#allocation83_spill] sm:$0xff] %v4872_v31  ;;  %v830_v59 = vsel %vm745_vm0, %v4872_v31, -inf }
 0x177   : >> { %828 = vmax.xlane.f32.xlu1 %v827_v58  ;;  %831 = vmax.xlane.f32.xlu0 %v830_v59 }
 0x178   : >> { %v4878_v30 = vpop.f32.mrb[30].mxu0 }
 0x179   : >> { %v4880_v29 = vpop.f32.mrb[31].mxu0  ;;  %v839_v63 = vsel %vm745_vm0, %v4878_v30, -inf }
 0x17a   : >> { %6181 = vst [vmem:[#allocation84_spill] sm:$0xff] %v4880_v29  ;;  %v836_v57 = vsel %vm745_vm0, %v4880_v29, -inf  ;;  %v6184_v29 = vld [vmem:[#allocation55_spill] sm:$0xff] }
 0x17b   : >> { %834 = vmax.xlane.f32.xlu1 %v833_v34  ;;  %837 = vmax.xlane.f32.xlu0 %v836_v57  ;;  %v6187_v57 = vld [vmem:[#allocation54_spill] sm:$0xff] }
 0x17f   : >> { %840 = vmax.xlane.f32.xlu1 %v839_v63 }
 0x1cc   : >> { %v748_v28 = vpop.xlane.xlu0 %747 }
 0x1cd   : >> { %v4889_v58 = vmax.f32 %v4187_v1, %v748_v28  }
 0x1cf   : >> { %6182 = vst [vmem:[#allocation85_spill] sm:$0xff] %v4889_v58  ;;  %v6183_v2 = vmov %v4889_v58 }
 0x1d0   : >> { %v970_v31 = vsub.f32 %v4745_v36, %v6183_v2  ;;  %v751_v32 = vpop.xlane.xlu0 %750  ;;  %v754_v0 = vpop.xlane.xlu1 %753 }
 0x1d1   : >> { %v4896_v34 = vmax.f32 %v6184_v29, %v751_v32   ;;  %v4899_v27 = vmax.f32 %v6187_v57, %v754_v0  }
 0x1d2   : >> { %v1002_v49 = vmul.f32 1.442695, %v970_v31 }
 0x1d3   : >> { %6185 = vst [vmem:[#allocation55_spill] sm:$0xff] %v4896_v34  ;;  %v6186_v3 = vmov %v4896_v34  ;;  %6188 = vst [vmem:[#allocation54_spill] sm:$0xff] %v4899_v27  ;;  %v6189_v4 = vmov %v4899_v27  ;;  %v6190_v34 = vld [vmem:[#allocation53_spill] sm:$0xff] }
 0x1d4   : >> { %v971_v28 = vsub.f32 %v4743_v35, %v6186_v3  ;;  %3455 = vpow2.f32 %v1002_v49  ;;  %v972_v36 = vsub.f32 %v4751_v39, %v6189_v4  ;;  %v757_v31 = vpop.xlane.xlu1 %756  ;;  %v760_v59 = vpop.xlane.xlu0 %759 }
 0x1d5   : >> { %v4910_v2 = vmax.f32 %v6190_v34, %v757_v31   ;;  %v4913_v0 = vmax.f32 %v4171_v5, %v760_v59  }
 0x1d6   : >> { %v1004_v32 = vmul.f32 1.442695, %v971_v28  ;;  %v1006_v27 = vmul.f32 1.442695, %v972_v36 }
 0x1d7   : >> { %6191 = vst [vmem:[#allocation53_spill] sm:$0xff] %v4910_v2  ;;  %6192 = vst [vmem:[#allocation86_spill] sm:$0xff] %v4913_v0  ;;  %v6193_v63 = vmov %v4913_v0  ;;  %v973_v58 = vsub.f32 %v4749_v38, %v4910_v2 }
 0x1d8   : >> { %3457 = vpow2.f32 %v1004_v32  ;;  %v974_v49 = vsub.f32 %v4759_v43, %v6193_v63  ;;  %v763_v28 = vpop.xlane.xlu1 %762  ;;  %v766_v31 = vpop.xlane.xlu0 %765 }
 0x1d9   : >> { %v1008_v4 = vmul.f32 1.442695, %v973_v58  ;;  %v4924_v36 = vmax.f32 %v4167_v6, %v763_v28   ;;  %3459 = vpow2.f32 %v1006_v27  ;;  %v4927_v0 = vmax.f32 %v4163_v7, %v766_v31  }
 0x1da   : >> { %v1010_v59 = vmul.f32 1.442695, %v974_v49 }
 0x1db   : >> { %6194 = vst [vmem:[#allocation87_spill] sm:$0xff] %v4924_v36  ;;  %v6195_v3 = vmov %v4924_v36  ;;  %6196 = vst [vmem:[#allocation88_spill] sm:$0xff] %v4927_v0  ;;  %v6197_v35 = vmov %v4927_v0  ;;  %3461 = vpow2.f32 %v1008_v4 }
 0x1dc   : >> { %v975_v32 = vsub.f32 %v4757_v42, %v6195_v3  ;;  %v976_v58 = vsub.f32 %v4767_v33, %v6197_v35  ;;  %v769_v28 = vpop.xlane.xlu1 %768  ;;  %v772_v36 = vpop.xlane.xlu0 %771  ;;  %3463 = vpow2.f32 %v1010_v59 }
 0x1dd   : >> { %v4938_v49 = vmax.f32 %v4159_v8, %v769_v28   ;;  %v4941_v38 = vmax.f32 %v4155_v9, %v772_v36  }
 0x1de   : >> { %v1012_v27 = vmul.f32 1.442695, %v975_v32  ;;  %v3456_v31 = vpop.eup %3455  ;;  %v1014_v0 = vmul.f32 1.442695, %v976_v58 }
 0x1df   : >> { %6198 = vst [vmem:[#allocation89_spill] sm:$0xff] %v4938_v49  ;;  %v6199_v39 = vmov %v4938_v49  ;;  %6200 = vst [vmem:[#allocation90_spill] sm:$0xff] %v4941_v38  ;;  %v6201_v6 = vmov %v4941_v38  ;;  %2781 = vmatprep.mubr.msk.f32.mxu1 %vm745_vm0, %v3456_v31  ;;  %v1098_v33 = vsel %vm745_vm0, %v3456_v31, 0.0 }
 0x1e0   : >> { %v977_v42 = vsub.f32 %v4765_v46, %v6199_v39  ;;  %3465 = vpow2.f32 %v1012_v27  ;;  %v978_v59 = vsub.f32 %v4775_v41, %v6201_v6  ;;  %1099 = vadd.xlane.f32.xlu0 %v1098_v33  ;;  %v775_v58 = vpop.xlane.xlu1 %774  ;;  %v778_v38 = vpop.xlane.xlu0 %777 }
 0x1e1   : >> { %v4954_v36 = vmax.f32 %v4151_v10, %v775_v58   ;;  %3467 = vpow2.f32 %v1014_v0  ;;  %v4957_v43 = vmax.f32 %v4147_v11, %v778_v38  }
 0x1e2   : >> { %v1016_v28 = vmul.f32 1.442695, %v977_v42  ;;  %v3458_v49 = vpop.eup %3457  ;;  %v1018_v46 = vmul.f32 1.442695, %v978_v59 }
 0x1e3   : >> { %6202 = vst [vmem:[#allocation91_spill] sm:$0xff] %v4954_v36  ;;  %v6203_v4 = vmov %v4954_v36  ;;  %6204 = vst [vmem:[#allocation92_spill] sm:$0xff] %v4957_v43  ;;  %v6205_v39 = vmov %v4957_v43  ;;  %2782 = vmatmul.mubr.msk.f32.vlgmr.msra.gmra.mrb[0].mxu1 %vm745_vm0, %v3458_v49  ;;  %v1101_v41 = vsel %vm745_vm0, %v3458_v49, 0.0  ;;  %v3460_v42 = vpop.eup %3459 }
 0x1e4   : >> { %v979_v31 = vsub.f32 %v4773_v40, %v6203_v4  ;;  %3469 = vpow2.f32 %v1016_v28  ;;  %v980_v0 = vsub.f32 %v4783_v48, %v6205_v39  ;;  %1102 = vadd.xlane.f32.xlu1 %v1101_v41  ;;  %v781_v43 = vpop.xlane.xlu1 %780  ;;  %v784_v59 = vpop.xlane.xlu0 %783  ;;  %2784 = vmatprep.mubr.msk.f32.mxu1 %vm745_vm0, %v3460_v42  ;;  %v1104_v40 = vsel %vm745_vm0, %v3460_v42, 0.0 }
 0x1e5   : >> { %v3462_v38 = vpop.eup %3461  ;;  %3471 = vpow2.f32 %v1018_v46  ;;  %1105 = vadd.xlane.f32.xlu0 %v1104_v40  ;;  %v4972_v28 = vmax.f32 %v4143_v12, %v781_v43   ;;  %v4975_v49 = vmax.f32 %v4139_v13, %v784_v59  }
 0x1e6   : >> { %v1020_v58 = vmul.f32 1.442695, %v979_v31  ;;  %v1022_v36 = vmul.f32 1.442695, %v980_v0  ;;  %v1107_v48 = vsel %vm745_vm0, %v3462_v38, 0.0  ;;  %v3464_v41 = vpop.eup %3463 }
 0x1e7   : >> { %6206 = vst [vmem:[#allocation93_spill] sm:$0xff] %v4972_v28  ;;  %v6207_v27 = vmov %v4972_v28  ;;  %6208 = vst [vmem:[#allocation94_spill] sm:$0xff] %v4975_v49  ;;  %v6209_v32 = vmov %v4975_v49  ;;  %2785 = vmatmul.mubr.msk.f32.gmra.mrb[2].mxu1 %vm745_vm0, %v3462_v38  ;;  %v1110_v40 = vsel %vm745_vm0, %v3464_v41, 0.0 }
 0x1e8   : >> { %3473 = vpow2.f32 %v1020_v58  ;;  %v981_v46 = vsub.f32 %v4781_v47, %v6207_v27  ;;  %1108 = vadd.xlane.f32.xlu1 %v1107_v48  ;;  %v787_v42 = vpop.xlane.xlu1 %786  ;;  %v790_v0 = vpop.xlane.xlu0 %789  ;;  %v982_v59 = vsub.f32 %v4802_v51, %v6209_v32  ;;  %2787 = vmatprep.mubr.msk.f32.mxu1 %vm745_vm0, %v3464_v41 }
 0x1e9   : >> { %3475 = vpow2.f32 %v1022_v36  ;;  %1111 = vadd.xlane.f32.xlu0 %v1110_v40  ;;  %v4990_v28 = vmax.f32 %v4135_v14, %v787_v42   ;;  %v4993_v49 = vmax.f32 %v4131_v15, %v790_v0  }
 0x1ea   : >> { %v3466_v58 = vpop.eup %3465  ;;  %v1024_v38 = vmul.f32 1.442695, %v981_v46  ;;  %v1026_v47 = vmul.f32 1.442695, %v982_v59 }
 0x1eb   : >> { %6210 = vst [vmem:[#allocation95_spill] sm:$0xff] %v4990_v28  ;;  %v6211_v31 = vmov %v4990_v28  ;;  %6212 = vst [vmem:[#allocation96_spill] sm:$0xff] %v4993_v49  ;;  %v6213_v33 = vmov %v4993_v49  ;;  %2788 = vmatmul.mubr.msk.f32.gmra.mrb[4].mxu1 %vm745_vm0, %v3466_v58  ;;  %v1113_v48 = vsel %vm745_vm0, %v3466_v58, 0.0  ;;  %v3468_v51 = vpop.eup %3467 }
 0x1ec   : >> { %v983_v36 = vsub.f32 %v4800_v50, %v6211_v31  ;;  %1114 = vadd.xlane.f32.xlu1 %v1113_v48  ;;  %v793_v41 = vpop.xlane.xlu1 %792  ;;  %v796_v46 = vpop.xlane.xlu0 %795  ;;  %3477 = vpow2.f32 %v1024_v38  ;;  %v984_v0 = vsub.f32 %v4812_v44, %v6213_v33  ;;  %2790 = vmatprep.mubr.msk.f32.mxu1 %vm745_vm0, %v3468_v51  ;;  %v1116_v59 = vsel %vm745_vm0, %v3468_v51, 0.0 }
 0x1ed   : >> { %1117 = vadd.xlane.f32.xlu0 %v1116_v59  ;;  %v5008_v28 = vmax.f32 %v4127_v16, %v793_v41   ;;  %3479 = vpow2.f32 %v1026_v47  ;;  %v5011_v38 = vmax.f32 %v4123_v17, %v796_v46  }
 0x1ee   : >> { %v3470_v40 = vpop.eup %3469  ;;  %v1028_v58 = vmul.f32 1.442695, %v983_v36  ;;  %v1030_v50 = vmul.f32 1.442695, %v984_v0 }
 0x1ef   : >> { %6214 = vst [vmem:[#allocation97_spill] sm:$0xff] %v5008_v28  ;;  %v6215_v43 = vmov %v5008_v28  ;;  %6216 = vst [vmem:[#allocation98_spill] sm:$0xff] %v5011_v38  ;;  %v6217_v31 = vmov %v5011_v38  ;;  %2791 = vmatmul.mubr.msk.f32.gmra.mrb[6].mxu1 %vm745_vm0, %v3470_v40  ;;  %v3472_v49 = vpop.eup %3471  ;;  %v1119_v51 = vsel %vm745_vm0, %v3470_v40, 0.0 }
 0x1f0   : >> { %v985_v48 = vsub.f32 %v4810_v37, %v6215_v43  ;;  %v799_v36 = vpop.xlane.xlu1 %798  ;;  %v802_v59 = vpop.xlane.xlu0 %801  ;;  %3481 = vpow2.f32 %v1028_v58  ;;  %v986_v41 = vsub.f32 %v4822_v54, %v6217_v31  ;;  %1120 = vadd.xlane.f32.xlu1 %v1119_v51  ;;  %2793 = vmatprep.mubr.msk.f32.mxu1 %vm745_vm0, %v3472_v49  ;;  %v1122_v46 = vsel %vm745_vm0, %v3472_v49, 0.0 }
 0x1f1   : >> { %1123 = vadd.xlane.f32.xlu0 %v1122_v46  ;;  %v5026_v37 = vmax.f32 %v4119_v18, %v799_v36   ;;  %3483 = vpow2.f32 %v1030_v50  ;;  %v5029_v58 = vmax.f32 %v4115_v19, %v802_v59  }
 0x1f2   : >> { %v3474_v0 = vpop.eup %3473  ;;  %v1032_v28 = vmul.f32 1.442695, %v985_v48  ;;  %v1034_v40 = vmul.f32 1.442695, %v986_v41 }
 0x1f3   : >> { %6218 = vst [vmem:[#allocation99_spill] sm:$0xff] %v5026_v37  ;;  %v6219_v44 = vmov %v5026_v37  ;;  %6220 = vst [vmem:[#allocation100_spill] sm:$0xff] %v5029_v58  ;;  %v6221_v42 = vmov %v5029_v58  ;;  %2794 = vmatmul.mubr.msk.f32.gmra.mrb[8].mxu1 %vm745_vm0, %v3474_v0  ;;  %v3476_v38 = vpop.eup %3475  ;;  %v1125_v48 = vsel %vm745_vm0, %v3474_v0, 0.0 }
 0x1f4   : >> { %v987_v49 = vsub.f32 %v4820_v53, %v6219_v44  ;;  %v805_v51 = vpop.xlane.xlu1 %804  ;;  %v808_v46 = vpop.xlane.xlu0 %807  ;;  %3485 = vpow2.f32 %v1032_v28  ;;  %v988_v36 = vsub.f32 %v4832_v56, %v6221_v42  ;;  %1126 = vadd.xlane.f32.xlu1 %v1125_v48  ;;  %2796 = vmatprep.mubr.msk.f32.mxu1 %vm745_vm0, %v3476_v38  ;;  %v1128_v59 = vsel %vm745_vm0, %v3476_v38, 0.0 }
 0x1f5   : >> { %1129 = vadd.xlane.f32.xlu0 %v1128_v59  ;;  %v5044_v53 = vmax.f32 %v4111_v20, %v805_v51   ;;  %3487 = vpow2.f32 %v1034_v40  ;;  %v5047_v28 = vmax.f32 %v4107_v21, %v808_v46  }
 0x1f6   : >> { %v1036_v41 = vmul.f32 1.442695, %v987_v49  ;;  %v3478_v0 = vpop.eup %3477  ;;  %v1038_v37 = vmul.f32 1.442695, %v988_v36 }
 0x1f7   : >> { %6222 = vst [vmem:[#allocation101_spill] sm:$0xff] %v5044_v53  ;;  %v6223_v54 = vmov %v5044_v53  ;;  %6224 = vst [vmem:[#allocation102_spill] sm:$0xff] %v5047_v28  ;;  %v6225_v47 = vmov %v5047_v28  ;;  %2797 = vmatmul.mubr.msk.f32.gmra.mrb[10].mxu1 %vm745_vm0, %v3478_v0  ;;  %v1131_v38 = vsel %vm745_vm0, %v3478_v0, 0.0  ;;  %v3480_v51 = vpop.eup %3479 }
 0x1f8   : >> { %v989_v56 = vsub.f32 %v4830_v45, %v6223_v54  ;;  %v811_v49 = vpop.xlane.xlu1 %810  ;;  %v814_v48 = vpop.xlane.xlu0 %813  ;;  %3489 = vpow2.f32 %v1036_v41  ;;  %v990_v46 = vsub.f32 %v4840_v61, %v6225_v47  ;;  %1132 = vadd.xlane.f32.xlu1 %v1131_v38  ;;  %2799 = vmatprep.mubr.msk.f32.mxu1 %vm745_vm0, %v3480_v51  ;;  %v1134_v45 = vsel %vm745_vm0, %v3480_v51, 0.0 }
 0x1f9   : >> { %v5060_v36 = vmax.f32 %v4103_v22, %v811_v49   ;;  %3491 = vpow2.f32 %v1038_v37  ;;  %1135 = vadd.xlane.f32.xlu0 %v1134_v45  ;;  %v5069_v61 = vmax.f32 %v4099_v23, %v814_v48  }
 0x1fa   : >> { %v1040_v59 = vmul.f32 1.442695, %v989_v56  ;;  %v3482_v53 = vpop.eup %3481  ;;  %v1042_v0 = vmul.f32 1.442695, %v990_v46 }
 0x1fb   : >> { %6226 = vst [vmem:[#allocation103_spill] sm:$0xff] %v5060_v36  ;;  %v6227_v58 = vmov %v5060_v36  ;;  %6228 = vst [vmem:[#allocation104_spill] sm:$0xff] %v5069_v61  ;;  %v6229_v50 = vmov %v5069_v61  ;;  %2800 = vmatmul.mubr.msk.f32.gmra.mrb[12].mxu1 %vm745_vm0, %v3482_v53  ;;  %v1137_v56 = vsel %vm745_vm0, %v3482_v53, 0.0  ;;  %v3484_v51 = vpop.eup %3483  ;;  %v6236_v53 = vld [vmem:[#allocation52_spill] sm:$0xff] }
 0x1fc   : >> { %v991_v28 = vsub.f32 %v4838_v52, %v6227_v58  ;;  %v817_v38 = vpop.xlane.xlu1 %816  ;;  %v820_v49 = vpop.xlane.xlu0 %819  ;;  %3493 = vpow2.f32 %v1040_v59  ;;  %1138 = vadd.xlane.f32.xlu1 %v1137_v56  ;;  %v992_v48 = vsub.f32 %v4848_v55, %v6229_v50  ;;  %2802 = vmatprep.mubr.msk.f32.mxu1 %vm745_vm0, %v3484_v51  ;;  %v1140_v59 = vsel %vm745_vm0, %v3484_v51, 0.0 }
 0x1fd   : >> { %v5074_v37 = vmax.f32 %v4095_v24, %v817_v38   ;;  %v5077_v46 = vmax.f32 %v4091_v25, %v820_v49   ;;  %3495 = vpow2.f32 %v1042_v0  ;;  %1141 = vadd.xlane.f32.xlu0 %v1140_v59 }
 0x1fe   : >> { %v1044_v36 = vmul.f32 1.442695, %v991_v28  ;;  %v3486_v45 = vpop.eup %3485  ;;  %v1046_v56 = vmul.f32 1.442695, %v992_v48 }
 0x1ff   : >> { %6230 = vst [vmem:[#allocation105_spill] sm:$0xff] %v5074_v37  ;;  %v6231_v40 = vmov %v5074_v37  ;;  %6232 = vst [vmem:[#allocation106_spill] sm:$0xff] %v5077_v46  ;;  %v6233_v41 = vmov %v5077_v46  ;;  %2803 = vmatmul.mubr.msk.f32.gmra.mrb[14].mxu1 %vm745_vm0, %v3486_v45  ;;  %v3488_v49 = vpop.eup %3487  ;;  %v1143_v37 = vsel %vm745_vm0, %v3486_v45, 0.0 }
 0x200   : >> { %v993_v61 = vsub.f32 %v4846_v60, %v6231_v40  ;;  %v823_v55 = vpop.xlane.xlu1 %822  ;;  %v826_v38 = vpop.xlane.xlu0 %825  ;;  %3497 = vpow2.f32 %v1044_v36  ;;  %v994_v51 = vsub.f32 %v4856_v62, %v6233_v41  ;;  %2805 = vmatprep.mubr.msk.f32.mxu1 %vm745_vm0, %v3488_v49  ;;  %v1146_v60 = vsel %vm745_vm0, %v3488_v49, 0.0  ;;  %1144 = vadd.xlane.f32.xlu1 %v1143_v37  ;;  %v6239_v49 = vld [vmem:[#allocation79_spill] sm:$0xff] }
 0x201   : >> { %3499 = vpow2.f32 %v1046_v56  ;;  %v5098_v59 = vmax.f32 %v4087_v26, %v823_v55   ;;  %v5101_v52 = vmax.f32 %v6236_v53, %v826_v38   ;;  %1147 = vadd.xlane.f32.xlu0 %v1146_v60  ;;  %v6241_v60 = vld [vmem:[#allocation51_spill] sm:$0xff]  ;;  %v6244_v55 = vld [vmem:[#allocation80_spill] sm:$0xff] }
 0x202   : >> { %v1048_v0 = vmul.f32 1.442695, %v993_v61  ;;  %v3490_v46 = vpop.eup %3489  ;;  %v1050_v48 = vmul.f32 1.442695, %v994_v51 }
 0x203   : >> { %6234 = vst [vmem:[#allocation107_spill] sm:$0xff] %v5098_v59  ;;  %v6235_v28 = vmov %v5098_v59  ;;  %6237 = vst [vmem:[#allocation108_spill] sm:$0xff] %v5101_v52  ;;  %v6238_v25 = vmov %v5101_v52  ;;  %2806 = vmatmul.mubr.msk.f32.gmra.mrb[16].mxu1 %vm745_vm0, %v3490_v46  ;;  %v1149_v62 = vsel %vm745_vm0, %v3490_v46, 0.0  ;;  %v3492_v61 = vpop.eup %3491  ;;  %v6240_v52 = vld [vmem:[#allocation81_spill] sm:$0xff] }
 0x204   : >> { %v829_v36 = vpop.xlane.xlu1 %828  ;;  %v832_v45 = vpop.xlane.xlu0 %831  ;;  %3501 = vpow2.f32 %v1048_v0  ;;  %v995_v51 = vsub.f32 %v6239_v49, %v6235_v28  ;;  %v996_v38 = vsub.f32 %v6240_v52, %v6238_v25  ;;  %2808 = vmatprep.mubr.msk.f32.mxu1 %vm745_vm0, %v3492_v61  ;;  %v1152_v37 = vsel %vm745_vm0, %v3492_v61, 0.0  ;;  %1150 = vadd.xlane.f32.xlu1 %v1149_v62  ;;  %v6245_v52 = vld [vmem:[#allocation75_spill] sm:$0xff] }
 0x205   : >> { %v5116_v46 = vmax.f32 %v6241_v60, %v829_v36   ;;  %3503 = vpow2.f32 %v1050_v48  ;;  %1153 = vadd.xlane.f32.xlu0 %v1152_v37  ;;  %v5123_v25 = vmax.f32 %v6245_v52, %v832_v45  }
 0x206   : >> { %v3494_v0 = vpop.eup %3493  ;;  %v1052_v59 = vmul.f32 1.442695, %v995_v51  ;;  %v1054_v56 = vmul.f32 1.442695, %v996_v38  ;;  %v6247_v51 = vld [vmem:[#allocation74_spill] sm:$0xff]  ;;  %v6250_v38 = vld [vmem:[#allocation50_spill] sm:$0xff] }
 0x207   : >> { %6242 = vst [vmem:[#allocation109_spill] sm:$0xff] %v5116_v46  ;;  %v6243_v41 = vmov %v5116_v46  ;;  %6246 = vst [vmem:[#allocation110_spill] sm:$0xff] %v5123_v25  ;;  %2809 = vmatmul.mubr.msk.f32.gmra.mrb[18].mxu1 %vm745_vm0, %v3494_v0  ;;  %v3496_v46 = vpop.eup %3495  ;;  %v1155_v48 = vsel %vm745_vm0, %v3494_v0, 0.0 }
 0x208   : >> { %v997_v53 = vsub.f32 %v6244_v55, %v6243_v41  ;;  %v835_v61 = vpop.xlane.xlu1 %834  ;;  %v838_v36 = vpop.xlane.xlu0 %837  ;;  %3505 = vpow2.f32 %v1052_v59  ;;  %2811 = vmatprep.mubr.msk.f32.mxu1 %vm745_vm0, %v3496_v46  ;;  %v6253_v41 = vld [vmem:[#allocation83_spill] sm:$0xff]  ;;  %1156 = vadd.xlane.f32.xlu1 %v1155_v48  ;;  %v1158_v0 = vsel %vm745_vm0, %v3496_v46, 0.0  ;;  %v6254_v59 = vld [vmem:[#allocation82_spill] sm:$0xff] }
 0x209   : >> { %v5128_v62 = vmax.f32 %v6247_v51, %v835_v61   ;;  %v5131_v37 = vmax.f32 %v6250_v38, %v838_v36   ;;  %v998_v60 = vsub.f32 %v6253_v41, %v5123_v25  ;;  %3507 = vpow2.f32 %v1054_v56  ;;  %1159 = vadd.xlane.f32.xlu0 %v1158_v0  ;;  %v6255_v41 = vld [vmem:[#allocation84_spill] sm:$0xff] }
 0x20a   : >> { %v1056_v49 = vmul.f32 1.442695, %v997_v53  ;;  %v3498_v45 = vpop.eup %3497 }
 0x20b   : >> { %6248 = vst [vmem:[#allocation111_spill] sm:$0xff] %v5128_v62  ;;  %v6249_v28 = vmov %v5128_v62  ;;  %6251 = vst [vmem:[#allocation112_spill] sm:$0xff] %v5131_v37  ;;  %v6252_v26 = vmov %v5131_v37  ;;  %2812 = vmatmul.mubr.msk.f32.gmra.mrb[20].mxu1 %vm745_vm0, %v3498_v45  ;;  %v3500_v37 = vpop.eup %3499  ;;  %v1058_v55 = vmul.f32 1.442695, %v998_v60  ;;  %v1161_v61 = vsel %vm745_vm0, %v3498_v45, 0.0 }
 0x20c   : >> { %v999_v53 = vsub.f32 %v6254_v59, %v6249_v28  ;;  %v841_v62 = vpop.xlane.xlu1 %840  ;;  %v1000_v48 = vsub.f32 %v6255_v41, %v6252_v26  ;;  %3509 = vpow2.f32 %v1056_v49  ;;  %2814 = vmatprep.mubr.msk.f32.mxu1 %vm745_vm0, %v3500_v37  ;;  %1162 = vadd.xlane.f32.xlu1 %v1161_v61  ;;  %v1164_v0 = vsel %vm745_vm0, %v3500_v37, 0.0  ;;  %v6256_v59 = vld [vmem:[#allocation49_spill] sm:$0xff] }
 0x20d   : >> { %v5152_v36 = vmax.f32 %v6256_v59, %v841_v62   ;;  %3511 = vpow2.f32 %v1058_v55  ;;  %1165 = vadd.xlane.f32.xlu0 %v1164_v0 }
 0x20e   : >> { %v1060_v46 = vmul.f32 1.442695, %v999_v53  ;;  %v3502_v56 = vpop.eup %3501  ;;  %v1062_v38 = vmul.f32 1.442695, %v1000_v48 }
 0x20f   : >> { %6257 = vst [vmem:[#allocation49_spill] sm:$0xff] %v5152_v36  ;;  %v6258_v28 = vmov %v5152_v36  ;;  %2815 = vmatmul.mubr.msk.f32.gmra.mrb[22].mxu1 %vm745_vm0, %v3502_v56  ;;  %v1167_v60 = vsel %vm745_vm0, %v3502_v56, 0.0  ;;  %v3504_v49 = vpop.eup %3503 }
 0x210   : >> { %v1001_v53 = vsub.f32 %v4878_v30, %v6258_v28  ;;  %3513 = vpow2.f32 %v1060_v46  ;;  %2817 = vmatprep.mubr.msk.f32.mxu1 %vm745_vm0, %v3504_v49  ;;  %v1170_v61 = vsel %vm745_vm0, %v3504_v49, 0.0  ;;  %1168 = vadd.xlane.f32.xlu1 %v1167_v60 }
 0x211   : >> { %3515 = vpow2.f32 %v1062_v38  ;;  %1171 = vadd.xlane.f32.xlu0 %v1170_v61 }
 0x212   : >> { %v1064_v36 = vmul.f32 1.442695, %v1001_v53  ;;  %v3506_v55 = vpop.eup %3505 }
 0x213   : >> { %2818 = vmatmul.mubr.msk.f32.gmra.mrb[24].mxu1 %vm745_vm0, %v3506_v55  ;;  %v1173_v62 = vsel %vm745_vm0, %v3506_v55, 0.0  ;;  %v3508_v37 = vpop.eup %3507 }
 0x214   : >> { %3517 = vpow2.f32 %v1064_v36  ;;  %1174 = vadd.xlane.f32.xlu1 %v1173_v62  ;;  %2820 = vmatprep.mubr.msk.f32.mxu1 %vm745_vm0, %v3508_v37  ;;  %v1176_v30 = vsel %vm745_vm0, %v3508_v37, 0.0  ;;  %v6259_v36 = vld [vmem:[#allocation85_spill] sm:$0xff]  ;;  %v6261_v37 = vld [vmem:[#allocation55_spill] sm:$0xff] }
 0x215   : >> { %1177 = vadd.xlane.f32.xlu0 %v1176_v30  ;;  %v6260_v55 = vsub.f32 %v4187_v1, %v6259_v36  ;;  %v6262_v30 = vsub.f32 %v6184_v29, %v6261_v37 }
 0x216   : >> { %v3510_v41 = vpop.eup %3509 }
 0x217   : >> { %2821 = vmatmul.mubr.msk.f32.gmra.mrb[26].mxu1 %vm745_vm0, %v3510_v41  ;;  %v1179_v48 = vsel %vm745_vm0, %v3510_v41, 0.0  ;;  %v3512_v46 = vpop.eup %3511  ;;  %v906_v62 = vmul.f32 1.442695, %v6260_v55 }
 0x218   : >> { %1180 = vadd.xlane.f32.xlu1 %v1179_v48  ;;  %2823 = vmatprep.mubr.msk.f32.mxu1 %vm745_vm0, %v3512_v46  ;;  %v1182_v38 = vsel %vm745_vm0, %v3512_v46, 0.0  ;;  %v908_v48 = vmul.f32 1.442695, %v6262_v30  ;;  %v6263_v46 = vld [vmem:[#allocation54_spill] sm:$0xff] }
 0x219   : >> { %1183 = vadd.xlane.f32.xlu0 %v1182_v38  ;;  %3519 = vpow2.f32 %v906_v62  ;;  %v6264_v38 = vsub.f32 %v6187_v57, %v6263_v46  ;;  %v6269_v57 = vsub.f32 %v4163_v7, %v6197_v35  ;;  %v6273_v46 = vsub.f32 %v4155_v9, %v6201_v6 }
 0x21a   : >> { %v3514_v56 = vpop.eup %3513  ;;  %3521 = vpow2.f32 %v908_v48  ;;  %v6277_v9 = vsub.f32 %v4147_v11, %v6205_v39 }
 0x21b   : >> { %2824 = vmatmul.mubr.msk.f32.gmra.mrb[28].mxu1 %vm745_vm0, %v3514_v56  ;;  %v1185_v0 = vsel %vm745_vm0, %v3514_v56, 0.0  ;;  %v3516_v60 = vpop.eup %3515  ;;  %v910_v56 = vmul.f32 1.442695, %v6264_v38  ;;  %v918_v55 = vmul.f32 1.442695, %v6269_v57 }
 0x21c   : >> { %1186 = vadd.xlane.f32.xlu1 %v1185_v0  ;;  %2826 = vmatprep.mubr.msk.f32.mxu1 %vm745_vm0, %v3516_v60  ;;  %v1188_v49 = vsel %vm745_vm0, %v3516_v60, 0.0  ;;  %v6265_v0 = vsub.f32 %v6190_v34, %v4910_v2  ;;  %v6270_v34 = vld [vmem:[#allocation89_spill] sm:$0xff]  ;;  %v922_v38 = vmul.f32 1.442695, %v6273_v46 }
 0x21d   : >> { %1189 = vadd.xlane.f32.xlu0 %v1188_v49  ;;  %3523 = vpow2.f32 %v910_v56  ;;  %v6266_v49 = vsub.f32 %v4171_v5, %v6193_v63  ;;  %v6271_v62 = vsub.f32 %v4159_v8, %v6270_v34  ;;  %v6272_v5 = vld [vmem:[#allocation73_spill] sm:$0xff]  ;;  %v6275_v8 = vsub.f32 %v4151_v10, %v6203_v4 }
 0x21e   : >> { %v3518_v53 = vpop.eup %3517  ;;  %v912_v60 = vmul.f32 1.442695, %v6265_v0 }
 0x21f   : >> { %2827 = vmatmul.mubr.msk.f32.gmra.mrb[30].mxu1 %vm745_vm0, %v3518_v53  ;;  %v1191_v61 = vsel %vm745_vm0, %v3518_v53, 0.0  ;;  %v914_v1 = vmul.f32 1.442695, %v6266_v49  ;;  %v6267_v53 = vld [vmem:[#allocation78_spill] sm:$0xff]  ;;  %v920_v37 = vmul.f32 1.442695, %v6271_v62  ;;  %v6280_v62 = vsub.f32 %v4143_v12, %v6207_v27 }
 0x220   : >> { %1192 = vadd.xlane.f32.xlu1 %v1191_v61  ;;  %3525 = vpow2.f32 %v912_v60  ;;  %v6268_v61 = vsub.f32 %v6267_v53, %v6195_v3  ;;  %v924_v60 = vmul.f32 1.442695, %v6275_v8  ;;  %v6276_v49 = vld [vmem:[#allocation48_spill] sm:$0xff]  ;;  %v6285_v8 = vld [vmem:[#allocation70_spill] sm:$0xff] }
 0x221   : >> { %3527 = vpow2.f32 %v914_v1 }
 0x222   : >> { %v916_v29 = vmul.f32 1.442695, %v6268_v61  ;;  %v926_v61 = vmul.f32 1.442695, %v6277_v9 }
 0x223   : >> { %v5194_v36 = vpop.eup %3519 }
 0x224   : >> { %3529 = vpow2.f32 %v916_v29  ;;  %v1066_v30 = vmul.f32 %v6272_v5, %v5194_v36  ;;  %v5204_v48 = vpop.eup %3521  ;;  %v6282_v5 = vld [vmem:[#allocation71_spill] sm:$0xff] }
 0x225   : >> { %3531 = vpow2.f32 %v918_v55  ;;  %v1067_v1 = vmul.f32 %v6276_v49, %v5204_v48 }
 0x226   : >> { %3533 = vpow2.f32 %v920_v37  ;;  %v928_v37 = vmul.f32 1.442695, %v6280_v62 }
 0x227   : >> { %v5211_v7 = vpop.eup %3523  ;;  %3535 = vpow2.f32 %v922_v38  ;;  %v6283_v38 = vsub.f32 %v4139_v13, %v6209_v32 }
 0x228   : >> { %3537 = vpow2.f32 %v924_v60 }
 0x229   : >> { %3539 = vpow2.f32 %v926_v61 }
 0x22a   : >> { %v5218_v53 = vpop.eup %3525  ;;  %3541 = vpow2.f32 %v928_v37 }
 0x22b   : >> { %v5227_v34 = vpop.eup %3527  ;;  %v1069_v11 = vmul.f32 %v6282_v5, %v5218_v53 }
 0x22c   : >> { %v1070_v60 = vmul.f32 %v6285_v8, %v5227_v34 }
 0x26d   : >> { %v1100_v56 = vpop.xlane.xlu0 %1099 }
 0x26e   : >> { %v5209_v0 = vadd.f32 %v1100_v56, %v1066_v30   ;;  %v5236_v30 = vpop.eup %3529  ;;  %v930_v56 = vmul.f32 1.442695, %v6283_v38  ;;  %v6294_v38 = vld [vmem:[#allocation68_spill] sm:$0xff] }
 0x26f   : >> { %v5245_v12 = vpop.eup %3531 }
 0x270   : >> { %6274 = vst [vmem:[#allocation113_spill] sm:$0xff] %v5209_v0  ;;  %v6279_v0 = vld [vmem:[#allocation72_spill] sm:$0xff]  ;;  %3543 = vpow2.f32 %v930_v56  ;;  %v6295_v56 = vsub.f32 %v4127_v16, %v6215_v43 }
 0x271   : >> { %v1103_v29 = vpop.xlane.xlu1 %1102  ;;  %v1068_v55 = vmul.f32 %v6279_v0, %v5211_v7 }
 0x272   : >> { %v5223_v57 = vadd.f32 %v1103_v29, %v1067_v1   ;;  %v1106_v10 = vpop.xlane.xlu0 %1105  ;;  %v6286_v1 = vld [vmem:[#allocation95_spill] sm:$0xff] }
 0x273   : >> { %v5232_v62 = vadd.f32 %v1106_v10, %v1068_v55   ;;  %v6287_v9 = vsub.f32 %v4135_v14, %v6286_v1  ;;  %v5254_v55 = vpop.eup %3533  ;;  %v6291_v10 = vld [vmem:[#allocation47_spill] sm:$0xff]  ;;  %v6292_v14 = vsub.f32 %v4131_v15, %v6213_v33  ;;  %v6297_v15 = vsub.f32 %v4123_v17, %v6217_v31 }
 0x274   : >> { %6278 = vst [vmem:[#allocation114_spill] sm:$0xff] %v5223_v57  ;;  %v6289_v57 = vld [vmem:[#allocation69_spill] sm:$0xff]  ;;  %v5260_v5 = vpop.eup %3535  ;;  %v1073_v8 = vmul.f32 %v6294_v38, %v5254_v55  ;;  %v6303_v38 = vsub.f32 %v4115_v19, %v6221_v42  ;;  %v6308_v19 = vsub.f32 %v4107_v21, %v6225_v47  ;;  %v6332_v47 = vld [vmem:[#allocation44_spill] sm:$0xff] }
 0x275   : >> { %6281 = vst [vmem:[#allocation115_spill] sm:$0xff] %v5232_v62  ;;  %v1109_v46 = vpop.xlane.xlu1 %1108  ;;  %v932_v29 = vmul.f32 1.442695, %v6287_v9  ;;  %v1071_v0 = vmul.f32 %v6289_v57, %v5236_v30  ;;  %v1072_v62 = vmul.f32 %v6291_v10, %v5245_v12  ;;  %v934_v37 = vmul.f32 1.442695, %v6292_v14  ;;  %v6296_v57 = vld [vmem:[#allocation67_spill] sm:$0xff] }
 0x276   : >> { %v5241_v61 = vadd.f32 %v1109_v46, %v1069_v11   ;;  %v1112_v49 = vpop.xlane.xlu0 %1111  ;;  %v6300_v10 = vld [vmem:[#allocation66_spill] sm:$0xff]  ;;  %v6301_v14 = vsub.f32 %v4119_v18, %v6219_v44  ;;  %v1229_v44 = vld [vmem:[#allocation2 + $0x18] sm:$0xff] }
 0x277   : >> { %v5250_v60 = vadd.f32 %v1112_v49, %v1070_v60   ;;  %3545 = vpow2.f32 %v932_v29  ;;  %v936_v49 = vmul.f32 1.442695, %v6295_v56  ;;  %v938_v29 = vmul.f32 1.442695, %v6297_v15 }
 0x278   : >> { %6284 = vst [vmem:[#allocation116_spill] sm:$0xff] %v5241_v61  ;;  %3547 = vpow2.f32 %v934_v37 }
 0x279   : >> { %6288 = vst [vmem:[#allocation117_spill] sm:$0xff] %v5250_v60  ;;  %v1115_v13 = vpop.xlane.xlu1 %1114  ;;  %v5269_v60 = vpop.eup %3537  ;;  %3549 = vpow2.f32 %v936_v49  ;;  %v6306_v49 = vld [vmem:[#allocation65_spill] sm:$0xff] }
 0x27a   : >> { %v5256_v61 = vadd.f32 %v1115_v13, %v1071_v0   ;;  %v1118_v11 = vpop.xlane.xlu0 %1117  ;;  %v1074_v0 = vmul.f32 %v6296_v57, %v5260_v5  ;;  %v5276_v13 = vpop.eup %3539  ;;  %v1075_v16 = vmul.f32 %v6300_v10, %v5269_v60  ;;  %3551 = vpow2.f32 %v938_v29 }
 0x27b   : >> { %v5265_v46 = vadd.f32 %v1118_v11, %v1072_v62   ;;  %v5287_v62 = vpop.eup %3541  ;;  %v940_v11 = vmul.f32 1.442695, %v6301_v14  ;;  %v6307_v29 = vsub.f32 %v4111_v20, %v6223_v54  ;;  %v1230_v54 = vld [vmem:[#allocation2 + $0x20] sm:$0xff] }
 0x27c   : >> { %6290 = vst [vmem:[#allocation118_spill] sm:$0xff] %v5256_v61  ;;  %v1077_v18 = vmul.f32 %v6306_v49, %v5287_v62 }
 0x27d   : >> { %6293 = vst [vmem:[#allocation119_spill] sm:$0xff] %v5265_v46  ;;  %v1121_v9 = vpop.xlane.xlu1 %1120  ;;  %v6302_v46 = vld [vmem:[#allocation46_spill] sm:$0xff]  ;;  %3553 = vpow2.f32 %v940_v11  ;;  %v6312_v11 = vld [vmem:[#allocation63_spill] sm:$0xff] }
 0x27e   : >> { %v5281_v57 = vadd.f32 %v1121_v9, %v1073_v8   ;;  %v1124_v61 = vpop.xlane.xlu0 %1123  ;;  %v1076_v17 = vmul.f32 %v6302_v46, %v5276_v13  ;;  %v942_v8 = vmul.f32 1.442695, %v6303_v38 }
 0x27f   : >> { %v5283_v56 = vadd.f32 %v1124_v61, %v1074_v0   ;;  %v944_v61 = vmul.f32 1.442695, %v6307_v29 }
 0x280   : >> { %6298 = vst [vmem:[#allocation120_spill] sm:$0xff] %v5281_v57  ;;  %v5299_v57 = vpop.eup %3543  ;;  %3555 = vpow2.f32 %v942_v8  ;;  %v6313_v8 = vsub.f32 %v4103_v22, %v6227_v58  ;;  %v6317_v22 = vsub.f32 %v4095_v24, %v6231_v40 }
 0x281   : >> { %6299 = vst [vmem:[#allocation121_spill] sm:$0xff] %v5283_v56  ;;  %v1127_v37 = vpop.xlane.xlu1 %1126  ;;  %v5305_v15 = vpop.eup %3545  ;;  %3557 = vpow2.f32 %v944_v61 }
 0x282   : >> { %v5297_v56 = vadd.f32 %v1127_v37, %v1075_v16   ;;  %v1130_v9 = vpop.xlane.xlu0 %1129  ;;  %v946_v16 = vmul.f32 1.442695, %v6308_v19  ;;  %v6310_v37 = vld [vmem:[#allocation64_spill] sm:$0xff]  ;;  %v5317_v38 = vpop.eup %3547  ;;  %v1079_v20 = vmul.f32 %v6312_v11, %v5305_v15 }
 0x283   : >> { %v5301_v0 = vadd.f32 %v1130_v9, %v1076_v17   ;;  %v1078_v46 = vmul.f32 %v6310_v37, %v5299_v57  ;;  %v948_v9 = vmul.f32 1.442695, %v6313_v8  ;;  %v5331_v29 = vpop.eup %3549  ;;  %v952_v37 = vmul.f32 1.442695, %v6317_v22  ;;  %v6347_v22 = vld [vmem:[#allocation41_spill] sm:$0xff] }
 0x284   : >> { %6304 = vst [vmem:[#allocation122_spill] sm:$0xff] %v5297_v56  ;;  %3559 = vpow2.f32 %v946_v16 }
 0x285   : >> { %6305 = vst [vmem:[#allocation123_spill] sm:$0xff] %v5301_v0  ;;  %v1133_v10 = vpop.xlane.xlu1 %1132  ;;  %v6314_v0 = vsub.f32 %v4099_v23, %v6229_v50  ;;  %3561 = vpow2.f32 %v948_v9  ;;  %v6319_v23 = vld [vmem:[#allocation77_spill] sm:$0xff] }
 0x286   : >> { %v5313_v14 = vadd.f32 %v1133_v10, %v1077_v18   ;;  %v1136_v17 = vpop.xlane.xlu0 %1135  ;;  %v6316_v10 = vld [vmem:[#allocation45_spill] sm:$0xff] }
 0x287   : >> { %v5319_v56 = vadd.f32 %v1136_v17, %v1078_v46   ;;  %v950_v49 = vmul.f32 1.442695, %v6314_v0  ;;  %v1080_v19 = vmul.f32 %v6316_v10, %v5317_v38  ;;  %v6320_v46 = vld [vmem:[#allocation106_spill] sm:$0xff] }
 0x288   : >> { %6309 = vst [vmem:[#allocation124_spill] sm:$0xff] %v5313_v14  ;;  %v5335_v14 = vpop.eup %3551 }
 0x289   : >> { %6311 = vst [vmem:[#allocation125_spill] sm:$0xff] %v5319_v56  ;;  %v1139_v21 = vpop.xlane.xlu1 %1138  ;;  %3563 = vpow2.f32 %v950_v49  ;;  %v6321_v56 = vsub.f32 %v6319_v23, %v6320_v46 }
 0x28a   : >> { %v5329_v18 = vadd.f32 %v1139_v21, %v1079_v20   ;;  %v1142_v61 = vpop.xlane.xlu0 %1141  ;;  %v6322_v20 = vld [vmem:[#allocation62_spill] sm:$0xff]  ;;  %v5347_v21 = vpop.eup %3553  ;;  %3565 = vpow2.f32 %v952_v37 }
 0x28b   : >> { %v5340_v16 = vadd.f32 %v1142_v61, %v1080_v19   ;;  %v954_v11 = vmul.f32 1.442695, %v6321_v56  ;;  %v1081_v8 = vmul.f32 %v6322_v20, %v5331_v29  ;;  %v5351_v10 = vpop.eup %3555  ;;  %v6325_v19 = vld [vmem:[#allocation76_spill] sm:$0xff]  ;;  %v6326_v61 = vld [vmem:[#allocation107_spill] sm:$0xff]  ;;  %v6329_v56 = vld [vmem:[#allocation52_spill] sm:$0xff] }
 0x28c   : >> { %6315 = vst [vmem:[#allocation126_spill] sm:$0xff] %v5329_v18  ;;  %v6323_v18 = vld [vmem:[#allocation61_spill] sm:$0xff]  ;;  %v6330_v20 = vld [vmem:[#allocation108_spill] sm:$0xff]  ;;  %v5365_v58 = vpop.eup %3557 }
 0x28d   : >> { %6318 = vst [vmem:[#allocation127_spill] sm:$0xff] %v5340_v16  ;;  %v1145_v0 = vpop.xlane.xlu1 %1144  ;;  %v1082_v9 = vmul.f32 %v6323_v18, %v5335_v14  ;;  %v6327_v16 = vsub.f32 %v6325_v19, %v6326_v61  ;;  %3567 = vpow2.f32 %v954_v11  ;;  %v6331_v6 = vsub.f32 %v6329_v56, %v6330_v20  ;;  %v6334_v11 = vld [vmem:[#allocation51_spill] sm:$0xff] }
 0x28e   : >> { %v5353_v49 = vadd.f32 %v1145_v0, %v1081_v8   ;;  %v1148_v24 = vpop.xlane.xlu0 %1147  ;;  %v1083_v18 = vmul.f32 %v6332_v47, %v5347_v21  ;;  %v5369_v0 = vpop.eup %3559  ;;  %v6339_v56 = vld [vmem:[#allocation43_spill] sm:$0xff] }
 0x28f   : >> { %v956_v23 = vmul.f32 1.442695, %v6327_v16  ;;  %v5358_v46 = vadd.f32 %v1148_v24, %v1082_v9   ;;  %v958_v1 = vmul.f32 1.442695, %v6331_v6  ;;  %v6335_v24 = vld [vmem:[#allocation109_spill] sm:$0xff]  ;;  %v6338_v6 = vsub.f32 %v6245_v52, %v5123_v25  ;;  %v5383_v40 = vpop.eup %3561 }
 0x290   : >> { %6324 = vst [vmem:[#allocation128_spill] sm:$0xff] %v5353_v49  ;;  %v6333_v49 = vld [vmem:[#allocation60_spill] sm:$0xff]  ;;  %v6336_v19 = vsub.f32 %v6334_v11, %v6335_v24 }
 0x291   : >> { %6328 = vst [vmem:[#allocation129_spill] sm:$0xff] %v5358_v46  ;;  %v1151_v8 = vpop.xlane.xlu1 %1150  ;;  %v1084_v37 = vmul.f32 %v6333_v49, %v5351_v10  ;;  %3569 = vpow2.f32 %v956_v23  ;;  %v962_v16 = vmul.f32 1.442695, %v6338_v6  ;;  %v1085_v49 = vmul.f32 %v6339_v56, %v5365_v58 }
 0x292   : >> { %v5371_v47 = vadd.f32 %v1151_v8, %v1083_v18   ;;  %v1154_v9 = vpop.xlane.xlu0 %1153  ;;  %v960_v61 = vmul.f32 1.442695, %v6336_v19  ;;  %3571 = vpow2.f32 %v958_v1  ;;  %v6340_v8 = vld [vmem:[#allocation42_spill] sm:$0xff] }
 0x293   : >> { %v5376_v46 = vadd.f32 %v1154_v9, %v1084_v37   ;;  %v1086_v23 = vmul.f32 %v6340_v8, %v5369_v0  ;;  %v5387_v17 = vpop.eup %3563  ;;  %v6342_v1 = vld [vmem:[#allocation111_spill] sm:$0xff]  ;;  %v1087_v8 = vmul.f32 %v6347_v22, %v5383_v40  ;;  %v6353_v22 = vld [vmem:[#allocation39_spill] sm:$0xff] }
 0x294   : >> { %3573 = vpow2.f32 %v960_v61  ;;  %v6345_v19 = vld [vmem:[#allocation50_spill] sm:$0xff]  ;;  %v5401_v20 = vpop.eup %3565  ;;  %6385 = vst [vmem:[#allocation44_spill] sm:$0xff] %v5371_v47 }
 0x295   : >> { %v6337_v50 = vmov %v5376_v46  ;;  %v1157_v18 = vpop.xlane.xlu1 %1156  ;;  %v6343_v46 = vsub.f32 %v6247_v51, %v6342_v1  ;;  %3575 = vpow2.f32 %v962_v16  ;;  %v6346_v6 = vsub.f32 %v6345_v19, %v6252_v26  ;;  %v6350_v16 = vld [vmem:[#allocation49_spill] sm:$0xff] }
 0x296   : >> { %v5389_v11 = vadd.f32 %v1157_v18, %v1085_v49   ;;  %v1160_v37 = vpop.xlane.xlu0 %1159  ;;  %v6348_v18 = vld [vmem:[#allocation40_spill] sm:$0xff]  ;;  %v1089_v19 = vmul.f32 %v6353_v22, %v5401_v20 }
 0x297   : >> { %v964_v52 = vmul.f32 1.442695, %v6343_v46  ;;  %v5394_v9 = vadd.f32 %v1160_v37, %v1086_v23   ;;  %v966_v56 = vmul.f32 1.442695, %v6346_v6  ;;  %v1088_v61 = vmul.f32 %v6348_v18, %v5387_v17  ;;  %v6354_v18 = vld [vmem:[#allocation38_spill] sm:$0xff] }
 0x298   : >> { %v6341_v45 = vmov %v5389_v11  ;;  %v5405_v11 = vpop.eup %3567  ;;  %v6351_v37 = vsub.f32 %v6256_v59, %v6350_v16 }
 0x299   : >> { %v6344_v28 = vmov %v5394_v9  ;;  %v1163_v49 = vpop.xlane.xlu1 %1162  ;;  %3577 = vpow2.f32 %v964_v52  ;;  %v1090_v25 = vmul.f32 %v6354_v18, %v5405_v11  ;;  %6383 = vst [vmem:[#allocation43_spill] sm:$0xff] %v6341_v45 }
 0x29a   : >> { %v5407_v51 = vadd.f32 %v1163_v49, %v1087_v8   ;;  %v1166_v23 = vpop.xlane.xlu0 %1165  ;;  %v968_v46 = vmul.f32 1.442695, %v6351_v37  ;;  %3579 = vpow2.f32 %v966_v56  ;;  %v6358_v37 = vld [vmem:[#allocation59_spill] sm:$0xff]  ;;  %6382 = vst [vmem:[#allocation42_spill] sm:$0xff] %v6344_v28 }
 0x29b   : >> { %v5412_v9 = vadd.f32 %v1166_v23, %v1088_v61   ;;  %v5416_v6 = vpop.eup %3569  ;;  %v6357_v61 = vld [vmem:[#allocation37_spill] sm:$0xff] }
 0x29c   : >> { %v6349_v2 = vmov %v5407_v51  ;;  %v5420_v8 = vpop.eup %3571  ;;  %3581 = vpow2.f32 %v968_v46  ;;  %v1091_v56 = vmul.f32 %v6357_v61, %v5416_v6  ;;  %v6361_v46 = vld [vmem:[#allocation58_spill] sm:$0xff] }
 0x29d   : >> { %v6352_v63 = vmov %v5412_v9  ;;  %v1169_v24 = vpop.xlane.xlu1 %1168  ;;  %v1092_v9 = vmul.f32 %v6358_v37, %v5420_v8  ;;  %6381 = vst [vmem:[#allocation41_spill] sm:$0xff] %v6349_v2 }
 0x29e   : >> { %v5422_v49 = vadd.f32 %v1169_v24, %v1089_v19   ;;  %v1172_v52 = vpop.xlane.xlu0 %1171  ;;  %v5428_v51 = vpop.eup %3573  ;;  %6380 = vst [vmem:[#allocation40_spill] sm:$0xff] %v6352_v63 }
 0x29f   : >> { %v5424_v59 = vadd.f32 %v1172_v52, %v1090_v25   ;;  %v5432_v22 = vpop.eup %3575  ;;  %v1093_v25 = vmul.f32 %v6361_v46, %v5428_v51  ;;  %v6362_v52 = vld [vmem:[#allocation57_spill] sm:$0xff] }
 0x2a0   : >> { %v6355_v3 = vmov %v5422_v49 }
 0x2a1   : >> { %v6356_v35 = vmov %v5424_v59  ;;  %v1175_v23 = vpop.xlane.xlu1 %1174  ;;  %v1094_v59 = vmul.f32 %v6362_v52, %v5432_v22  ;;  %6379 = vst [vmem:[#allocation39_spill] sm:$0xff] %v6355_v3 }
 0x2a2   : >> { %v5434_v18 = vadd.f32 %v1175_v23, %v1091_v56   ;;  %v1178_v1 = vpop.xlane.xlu0 %1177  ;;  %v6365_v56 = vld [vmem:[#allocation36_spill] sm:$0xff]  ;;  %6378 = vst [vmem:[#allocation38_spill] sm:$0xff] %v6356_v35 }
 0x2a3   : >> { %v5436_v24 = vadd.f32 %v1178_v1, %v1092_v9   ;;  %v5440_v19 = vpop.eup %3577 }
 0x2a4   : >> { %v6359_v41 = vmov %v5434_v18  ;;  %v5444_v61 = vpop.eup %3579  ;;  %v1095_v1 = vmul.f32 %v6365_v56, %v5440_v19  ;;  %v6366_v18 = vld [vmem:[#allocation56_spill] sm:$0xff] }
 0x2a5   : >> { %v6360_v4 = vmov %v5436_v24  ;;  %v1181_v49 = vpop.xlane.xlu1 %1180  ;;  %v1096_v24 = vmul.f32 %v6366_v18, %v5444_v61  ;;  %6377 = vst [vmem:[#allocation37_spill] sm:$0xff] %v6359_v41 }
 0x2a6   : >> { %v5446_v37 = vadd.f32 %v1181_v49, %v1093_v25   ;;  %v1184_v26 = vpop.xlane.xlu0 %1183  ;;  %v5452_v23 = vpop.eup %3581  ;;  %v6369_v25 = vld [vmem:[#allocation35_spill] sm:$0xff] }
 0x2a7   : >> { %v5448_v16 = vadd.f32 %v1184_v26, %v1094_v59   ;;  %v1227_v26 = vld [vmem:[#allocation2 + $0x8] sm:$0xff] }
 0x2a8   : >> { %v6363_v39 = vmov %v5446_v37  ;;  %v1097_v37 = vmul.f32 %v6369_v25, %v5452_v23  ;;  %v1259_v59 = vmul.f32 %v5204_v48, %v1227_v26 }
 0x2a9   : >> { %v6364_v27 = vmov %v5448_v16  ;;  %v1187_v9 = vpop.xlane.xlu1 %1186  ;;  %v1226_v16 = vld [vmem:[#allocation2] sm:$0xff] }
 0x2aa   : >> { %v5456_v46 = vadd.f32 %v1187_v9, %v1095_v1   ;;  %v1190_v33 = vpop.xlane.xlu0 %1189  ;;  %v1258_v31 = vmul.f32 %v5194_v36, %v1226_v16  ;;  %v1228_v9 = vld [vmem:[#allocation2 + $0x10] sm:$0xff]  ;;  %v1262_v16 = vmul.f32 %v5227_v34, %v1230_v54 }
 0x2ab   : >> { %v5458_v52 = vadd.f32 %v1190_v33, %v1096_v24   ;;  %v1261_v24 = vmul.f32 %v5218_v53, %v1229_v44  ;;  %v1260_v25 = vmul.f32 %v5211_v7, %v1228_v9  ;;  %v1232_v44 = vld [vmem:[#allocation2 + $0x30] sm:$0xff] }
 0x2ac   : >> { %v6367_v32 = vmov %v5456_v46 }
 0x2ad   : >> { %v6368_v43 = vmov %v5458_v52  ;;  %v1193_v49 = vpop.xlane.xlu1 %1192  ;;  %6373 = vst [vmem:[#allocation36_spill] sm:$0xff] %v6367_v32 }
 0x2ae   : >> { %v5462_v33 = vadd.f32 %v1193_v49, %v1097_v37   ;;  %v1231_v37 = vld [vmem:[#allocation2 + $0x28] sm:$0xff] }
 0x2af   : >> { %v1263_v36 = vmul.f32 %v5236_v30, %v1231_v37  ;;  %v1234_v30 = vld [vmem:[#allocation2 + $0x40] sm:$0xff] }
 0x2b0   : >> { %6371 = vst [vmem:[#allocation35_spill] sm:$0xff] %v5462_v33 }
 0x2b6   : >> { %v2783_v56 = vpop.f32.mrb[0].mxu1 }
 0x2b7   : >> { %v1612_v18 = vadd.f32 %v2783_v56, %v1259_v59  ;;  %v1452_v1 = vpop.f32.mrb[1].mxu1 }
 0x2b8   : >> { %v1611_v46 = vadd.f32 %v1452_v1, %v1258_v31  ;;  %v1233_v31 = vld [vmem:[#allocation2 + $0x38] sm:$0xff]  ;;  %v1264_v1 = vmul.f32 %v5245_v12, %v1232_v44 }
 0x2b9   : >> { %1644 = vst [vmem:[#allocation2 + $0x8] sm:$0xff] %v1612_v18  ;;  %v1265_v7 = vmul.f32 %v5254_v55, %v1233_v31 }
 0x2ba   : >> { %1643 = vst [vmem:[#allocation2] sm:$0xff] %v1611_v46  ;;  %v2786_v52 = vpop.f32.mrb[2].mxu1 }
 0x2bb   : >> { %v1614_v49 = vadd.f32 %v2786_v52, %v1261_v24  ;;  %v1462_v42 = vpop.f32.mrb[3].mxu1  ;;  %v1266_v52 = vmul.f32 %v5260_v5, %v1234_v30  ;;  %v1243_v30 = vld [vmem:[#allocation2 + $0x88] sm:$0xff] }
 0x2bc   : >> { %v1613_v48 = vadd.f32 %v1462_v42, %v1260_v25  ;;  %v1235_v42 = vld [vmem:[#allocation2 + $0x48] sm:$0xff] }
 0x2bd   : >> { %1646 = vst [vmem:[#allocation2 + $0x18] sm:$0xff] %v1614_v49  ;;  %v1267_v54 = vmul.f32 %v5269_v60, %v1235_v42  ;;  %v1237_v49 = vld [vmem:[#allocation2 + $0x58] sm:$0xff]  ;;  %v1238_v60 = vld [vmem:[#allocation2 + $0x60] sm:$0xff]  ;;  %v1240_v42 = vld [vmem:[#allocation2 + $0x70] sm:$0xff] }
 0x2be   : >> { %1645 = vst [vmem:[#allocation2 + $0x10] sm:$0xff] %v1613_v48  ;;  %v2789_v26 = vpop.f32.mrb[4].mxu1  ;;  %v1236_v48 = vld [vmem:[#allocation2 + $0x50] sm:$0xff]  ;;  %v1269_v12 = vmul.f32 %v5287_v62, %v1237_v49 }
 0x2bf   : >> { %v1616_v59 = vadd.f32 %v2789_v26, %v1263_v36  ;;  %v1472_v56 = vpop.f32.mrb[5].mxu1  ;;  %v1268_v26 = vmul.f32 %v5276_v13, %v1236_v48 }
 0x2c0   : >> { %v1615_v53 = vadd.f32 %v1472_v56, %v1262_v16  ;;  %v1239_v16 = vld [vmem:[#allocation2 + $0x68] sm:$0xff] }
 0x2c1   : >> { %1648 = vst [vmem:[#allocation2 + $0x28] sm:$0xff] %v1616_v59  ;;  %v1271_v5 = vmul.f32 %v5305_v15, %v1239_v16  ;;  %v1242_v15 = vld [vmem:[#allocation2 + $0x80] sm:$0xff] }
 0x2c2   : >> { %1647 = vst [vmem:[#allocation2 + $0x20] sm:$0xff] %v1615_v53  ;;  %v2792_v18 = vpop.f32.mrb[6].mxu1  ;;  %v1270_v53 = vmul.f32 %v5299_v57, %v1238_v60  ;;  %v1275_v57 = vmul.f32 %v5347_v21, %v1243_v30  ;;  %v1246_v21 = vld [vmem:[#allocation2 + $0xa0] sm:$0xff] }
 0x2c3   : >> { %v1618_v9 = vadd.f32 %v2792_v18, %v1265_v7  ;;  %v1482_v46 = vpop.f32.mrb[7].mxu1  ;;  %v1241_v7 = vld [vmem:[#allocation2 + $0x78] sm:$0xff] }
 0x2c4   : >> { %v1617_v24 = vadd.f32 %v1482_v46, %v1264_v1  ;;  %v1273_v13 = vmul.f32 %v5331_v29, %v1241_v7  ;;  %v1272_v46 = vmul.f32 %v5317_v38, %v1240_v42  ;;  %v1244_v29 = vld [vmem:[#allocation2 + $0x90] sm:$0xff] }
 0x2c5   : >> { %1650 = vst [vmem:[#allocation2 + $0x38] sm:$0xff] %v1618_v9 }
 0x2c6   : >> { %1649 = vst [vmem:[#allocation2 + $0x30] sm:$0xff] %v1617_v24  ;;  %v2795_v34 = vpop.f32.mrb[8].mxu1 }
 0x2c7   : >> { %v1620_v25 = vadd.f32 %v2795_v34, %v1267_v54  ;;  %v1492_v37 = vpop.f32.mrb[9].mxu1 }
 0x2c8   : >> { %v1619_v55 = vadd.f32 %v1492_v37, %v1266_v52  ;;  %v1245_v37 = vld [vmem:[#allocation2 + $0x98] sm:$0xff] }
 0x2c9   : >> { %1652 = vst [vmem:[#allocation2 + $0x48] sm:$0xff] %v1620_v25  ;;  %v1274_v25 = vmul.f32 %v5335_v14, %v1242_v15  ;;  %v1277_v38 = vmul.f32 %v5365_v58, %v1245_v37  ;;  %v1248_v58 = vld [vmem:[#allocation2 + $0xb0] sm:$0xff] }
 0x2ca   : >> { %1651 = vst [vmem:[#allocation2 + $0x40] sm:$0xff] %v1619_v55  ;;  %v2798_v36 = vpop.f32.mrb[10].mxu1 }
 0x2cb   : >> { %v1622_v31 = vadd.f32 %v2798_v36, %v1269_v12  ;;  %v1502_v59 = vpop.f32.mrb[11].mxu1  ;;  %v1276_v36 = vmul.f32 %v5351_v10, %v1244_v29 }
 0x2cc   : >> { %v1621_v56 = vadd.f32 %v1502_v59, %v1268_v26  ;;  %v1247_v26 = vld [vmem:[#allocation2 + $0xa8] sm:$0xff] }
 0x2cd   : >> { %1654 = vst [vmem:[#allocation2 + $0x58] sm:$0xff] %v1622_v31  ;;  %v1279_v14 = vmul.f32 %v5383_v40, %v1247_v26 }
 0x2ce   : >> { %1653 = vst [vmem:[#allocation2 + $0x50] sm:$0xff] %v1621_v56  ;;  %v2801_v44 = vpop.f32.mrb[12].mxu1  ;;  %v1278_v56 = vmul.f32 %v5369_v0, %v1246_v21 }
 0x2cf   : >> { %v1624_v18 = vadd.f32 %v2801_v44, %v1271_v5  ;;  %v1512_v1 = vpop.f32.mrb[13].mxu1  ;;  %v1249_v5 = vld [vmem:[#allocation2 + $0xb8] sm:$0xff] }
 0x2d0   : >> { %v1623_v62 = vadd.f32 %v1512_v1, %v1270_v53  ;;  %v1281_v10 = vmul.f32 %v5401_v20, %v1249_v5  ;;  %v1280_v1 = vmul.f32 %v5387_v17, %v1248_v58  ;;  %v1252_v20 = vld [vmem:[#allocation2 + $0xd0] sm:$0xff]  ;;  %v6398_v58 = vld [vmem:[#allocation119_spill] sm:$0xff]  ;;  %v6413_v5 = vld [vmem:[#allocation109_spill] sm:$0xff] }
 0x2d1   : >> { %1656 = vst [vmem:[#allocation2 + $0x68] sm:$0xff] %v1624_v18  ;;  %6399 = vst [vmem:[#allocation47_spill] sm:$0xff] %v6398_v58  ;;  %v6439_v58 = vld [vmem:[#allocation53_spill] sm:$0xff] }
 0x2d2   : >> { %1655 = vst [vmem:[#allocation2 + $0x60] sm:$0xff] %v1623_v62  ;;  %v2804_v9 = vpop.f32.mrb[14].mxu1  ;;  %6414 = vst [vmem:[#allocation51_spill] sm:$0xff] %v6413_v5  ;;  %v6438_v5 = vld [vmem:[#allocation86_spill] sm:$0xff] }
 0x2d3   : >> { %v1626_v24 = vadd.f32 %v2804_v9, %v1273_v13  ;;  %v1522_v54 = vpop.f32.mrb[15].mxu1  ;;  %v1251_v13 = vld [vmem:[#allocation2 + $0xc8] sm:$0xff]  ;;  %v1250_v9 = vld [vmem:[#allocation2 + $0xc0] sm:$0xff]  ;;  %6440 = vst [vmem:[#allocation53_spill] sm:$0xff] %v6439_v58  ;;  %v6450_v58 = vld [vmem:[#allocation115_spill] sm:$0xff] (%p5499_p5) }
 0x2d4   : >> { %v1625_v34 = vadd.f32 %v1522_v54, %v1272_v46  ;;  %v1283_v0 = vmul.f32 %v5416_v6, %v1251_v13  ;;  %v1282_v30 = vmul.f32 %v5405_v11, %v1250_v9  ;;  %v6430_v13 = vld [vmem:[#allocation94_spill] sm:$0xff] }
 0x2d5   : >> { %1658 = vst [vmem:[#allocation2 + $0x78] sm:$0xff] %v1626_v24  ;;  %v1253_v24 = vld [vmem:[#allocation2 + $0xd8] sm:$0xff]  ;;  %v6434_v9 = vld [vmem:[#allocation90_spill] sm:$0xff] }
 0x2d6   : >> { %1657 = vst [vmem:[#allocation2 + $0x70] sm:$0xff] %v1625_v34  ;;  %v2807_v52 = vpop.f32.mrb[16].mxu1  ;;  %v1285_v17 = vmul.f32 %v5428_v51, %v1253_v24  ;;  %v1256_v51 = vld [vmem:[#allocation2 + $0xf0] sm:$0xff]  ;;  %v6419_v24 = vld [vmem:[#allocation105_spill] sm:$0xff] }
 0x2d7   : >> { %v1628_v49 = vadd.f32 %v2807_v52, %v1275_v57  ;;  %v1532_v55 = vpop.f32.mrb[17].mxu1  ;;  %v1284_v52 = vmul.f32 %v5420_v8, %v1252_v20  ;;  %v6423_v20 = vld [vmem:[#allocation101_spill] sm:$0xff] }
 0x2d8   : >> { %v1627_v48 = vadd.f32 %v1532_v55, %v1274_v25  ;;  %v1255_v25 = vld [vmem:[#allocation2 + $0xe8] sm:$0xff]  ;;  %v1254_v55 = vld [vmem:[#allocation2 + $0xe0] sm:$0xff] }
 0x2d9   : >> { %1660 = vst [vmem:[#allocation2 + $0x88] sm:$0xff] %v1628_v49  ;;  %v1287_v11 = vmul.f32 %v5440_v19, %v1255_v25  ;;  %v6404_v19 = vld [vmem:[#allocation114_spill] sm:$0xff] }
 0x2da   : >> { %1659 = vst [vmem:[#allocation2 + $0x80] sm:$0xff] %v1627_v48  ;;  %v2810_v12 = vpop.f32.mrb[18].mxu1  ;;  %v1286_v48 = vmul.f32 %v5432_v22, %v1254_v55  ;;  %v6388_v22 = vld [vmem:[#allocation127_spill] sm:$0xff]  ;;  %v6395_v55 = vld [vmem:[#allocation122_spill] sm:$0xff]  ;;  %6405 = vst [vmem:[#allocation48_spill] sm:$0xff] %v6404_v19 }
 0x2db   : >> { %v1630_v16 = vadd.f32 %v2810_v12, %v1277_v38  ;;  %v1542_v31 = vpop.f32.mrb[19].mxu1  ;;  %v1257_v38 = vld [vmem:[#allocation2 + $0xf8] sm:$0xff]  ;;  %6389 = vst [vmem:[#allocation45_spill] sm:$0xff] %v6388_v22  ;;  %v6418_v25 = vld [vmem:[#allocation106_spill] sm:$0xff]  ;;  %v6424_v19 = vld [vmem:[#allocation100_spill] sm:$0xff] }
 0x2dc   : >> { %v1629_v59 = vadd.f32 %v1542_v31, %v1276_v36  ;;  %v1289_v8 = vmul.f32 %v5452_v23, %v1257_v38  ;;  %v1288_v31 = vmul.f32 %v5444_v61, %v1256_v51  ;;  %v6376_v38 = vmov %v6360_v4  ;;  %v6390_v51 = vld [vmem:[#allocation126_spill] sm:$0xff]  ;;  %v6402_v61 = vld [vmem:[#allocation116_spill] sm:$0xff]  ;;  %v6421_v22 = vld [vmem:[#allocation103_spill] sm:$0xff] }
 0x2dd   : >> { %1662 = vst [vmem:[#allocation2 + $0x98] sm:$0xff] %v1630_v16  ;;  %v6407_v23 = vld [vmem:[#allocation49_spill] sm:$0xff]  ;;  %v1758_v38 = vld [vmem:[%s5939_s5 + $0x18] sm:$0xff] (%p5499_p5)  ;;  %v1760_v22 = vld [vmem:[%s5939_s5 + $0x28] sm:$0xff] (%p5499_p5) }
 0x2de   : >> { %1661 = vst [vmem:[#allocation2 + $0x90] sm:$0xff] %v1629_v59  ;;  %v2813_v60 = vpop.f32.mrb[20].mxu1  ;;  %6408 = vst [vmem:[#allocation49_spill] sm:$0xff] %v6407_v23  ;;  %v6420_v23 = vld [vmem:[#allocation104_spill] sm:$0xff] }
 0x2df   : >> { %v1632_v44 = vadd.f32 %v2813_v60, %v1279_v14  ;;  %v1552_v53 = vpop.f32.mrb[21].mxu1  ;;  %v6401_v60 = vld [vmem:[#allocation117_spill] sm:$0xff]  ;;  %v1759_v19 = vld [vmem:[%s5939_s5 + $0x20] sm:$0xff] (%p5499_p5) }
 0x2e0   : >> { %v1631_v7 = vadd.f32 %v1552_v53, %v1278_v56  ;;  %v6392_v53 = vld [vmem:[#allocation124_spill] sm:$0xff]  ;;  %v6396_v56 = vld [vmem:[#allocation121_spill] sm:$0xff] }
 0x2e1   : >> { %1664 = vst [vmem:[#allocation2 + $0xa8] sm:$0xff] %v1632_v44  ;;  %v6415_v44 = vld [vmem:[#allocation108_spill] sm:$0xff]  ;;  %v1692_v61 = vld [vmem:[#allocation2 + $0x88] sm:$0xff] (%p5499_p5) }
 0x2e2   : >> { %1663 = vst [vmem:[#allocation2 + $0xa0] sm:$0xff] %v1631_v7  ;;  %v2816_v18 = vpop.f32.mrb[22].mxu1  ;;  %6416 = vst [vmem:[#allocation52_spill] sm:$0xff] %v6415_v44  ;;  %v6436_v7 = vld [vmem:[#allocation88_spill] sm:$0xff]  ;;  %v6449_v44 = vld [vmem:[#allocation114_spill] sm:$0xff] (%p5499_p5) }
 0x2e3   : >> { %v1634_v42 = vadd.f32 %v2816_v18, %v1281_v10  ;;  %v1562_v62 = vpop.f32.mrb[23].mxu1  ;;  %v6425_v18 = vld [vmem:[#allocation99_spill] sm:$0xff]  ;;  %v1675_v60 = vld [vmem:[#allocation2] sm:$0xff] (%p5499_p5)  ;;  %v6452_v7 = vld [vmem:[#allocation117_spill] sm:$0xff] (%p5499_p5) }
 0x2e4   : >> { %v1633_v40 = vadd.f32 %v1562_v62, %v1280_v1  ;;  %v6403_v62 = vld [vmem:[#allocation115_spill] sm:$0xff]  ;;  %v5714_v56 = vld [vmem:[%s5938_s4] sm:$0xff] (%p5499_p5) }
 0x2e5   : >> { %1666 = vst [vmem:[#allocation2 + $0xb8] sm:$0xff] %v1634_v42  ;;  %v6433_v10 = vld [vmem:[#allocation91_spill] sm:$0xff]  ;;  %v6443_v42 = vld [vmem:[#allocation55_spill] sm:$0xff]  ;;  %2669 = vmatprep.mubr.f32.mxu0 (%p5499_p5), %v5714_v56  ;;  %v1693_v18 = vld [vmem:[#allocation2 + $0x90] sm:$0xff] (%p5499_p5) }
 0x2e6   : >> { %1665 = vst [vmem:[#allocation2 + $0xb0] sm:$0xff] %v1633_v40  ;;  %v2819_v46 = vpop.f32.mrb[24].mxu1  ;;  %v6441_v1 = vld [vmem:[#allocation54_spill] sm:$0xff]  ;;  %6444 = vst [vmem:[#allocation55_spill] sm:$0xff] %v6443_v42  ;;  %v6447_v40 = vld [vmem:[#allocation129_spill] sm:$0xff] (%p5499_p5) }
 0x2e7   : >> { %v1636_v54 = vadd.f32 %v2819_v46, %v1283_v0  ;;  %v1572_v15 = vpop.f32.mrb[25].mxu1  ;;  %v6384_v46 = vmov %v6337_v50  ;;  %v6406_v0 = vld [vmem:[#allocation113_spill] sm:$0xff]  ;;  %6442 = vst [vmem:[#allocation54_spill] sm:$0xff] %v6441_v1  ;;  %3585 = vrcp.f32 (%p5499_p5), %v6447_v40  ;;  %v1691_v42 = vld [vmem:[#allocation2 + $0x80] sm:$0xff] (%p5499_p5)  ;;  %v6453_v62 = vld [vmem:[#allocation118_spill] sm:$0xff] (%p5499_p5) }
 0x2e8   : >> { %v1635_v34 = vadd.f32 %v1572_v15, %v1282_v30  ;;  %v6411_v30 = vld [vmem:[#allocation111_spill] sm:$0xff]  ;;  %v6428_v15 = vld [vmem:[#allocation96_spill] sm:$0xff]  ;;  %v6445_v1 = vld [vmem:[#allocation85_spill] sm:$0xff]  ;;  %3587 = vrcp.f32 (%p5499_p5), %v5371_v47 }
 0x2e9   : >> { %1668 = vst [vmem:[#allocation2 + $0xc8] sm:$0xff] %v1636_v54  ;;  %v6393_v54 = vld [vmem:[#allocation123_spill] sm:$0xff]  ;;  %v6451_v1 = vld [vmem:[#allocation116_spill] sm:$0xff] (%p5499_p5) }
 0x2ea   : >> { %1667 = vst [vmem:[#allocation2 + $0xc0] sm:$0xff] %v1635_v34  ;;  %v2822_v57 = vpop.f32.mrb[26].mxu1  ;;  %v6372_v34 = vmov %v6368_v43  ;;  %6394 = vst [vmem:[#allocation46_spill] sm:$0xff] %v6393_v54  ;;  %v4194_v54 = vmov (%p5499_p5), 0   ;;  %v1694_v0 = vld [vmem:[#allocation2 + $0x98] sm:$0xff] (%p5499_p5)  ;;  %v1679_v40 = vld [vmem:[#allocation2 + $0x20] sm:$0xff] (%p5499_p5) }
 0x2eb   : >> { %v1638_v37 = vadd.f32 %v2822_v57, %v1285_v17  ;;  %v1582_v49 = vpop.f32.mrb[27].mxu1  ;;  %v6397_v57 = vld [vmem:[#allocation120_spill] sm:$0xff]  ;;  %v6426_v17 = vld [vmem:[#allocation98_spill] sm:$0xff]  ;;  %3584 = vset.pattern.permute.xlu1 (%p5499_p5), %v4194_v54  ;;  %3583 = vset.pattern.permute.xlu0 (%p5499_p5), %v4194_v54  ;;  %v1680_v54 = vld [vmem:[#allocation2 + $0x28] sm:$0xff] (%p5499_p5) }
 0x2ec   : >> { %v1637_v6 = vadd.f32 %v1582_v49, %v1284_v52  ;;  %v6387_v49 = vld [vmem:[#allocation128_spill] sm:$0xff]  ;;  %v6391_v52 = vld [vmem:[#allocation125_spill] sm:$0xff]  ;;  %v1677_v34 = vld [vmem:[#allocation2 + $0x10] sm:$0xff] (%p5499_p5) }
 0x2ed   : >> { %1670 = vst [vmem:[#allocation2 + $0xd8] sm:$0xff] %v1638_v37  ;;  %v6375_v37 = vmov %v6363_v39  ;;  %v1678_v17 = vld [vmem:[#allocation2 + $0x18] sm:$0xff] (%p5499_p5)  ;;  %v1757_v49 = vld [vmem:[%s5939_s5 + $0x10] sm:$0xff] (%p5499_p5) }
 0x2ee   : >> { %1669 = vst [vmem:[#allocation2 + $0xd0] sm:$0xff] %v1637_v6  ;;  %v2825_v29 = vpop.f32.mrb[28].mxu1  ;;  %v6437_v6 = vld [vmem:[#allocation87_spill] sm:$0xff]  ;;  %v1695_v37 = vld [vmem:[#allocation2 + $0xa0] sm:$0xff] (%p5499_p5)  ;;  %2040 = vperm.xlu1 (%p5499_p5), %3584, %v1757_v49   ;;  %v1768_v49 = vld [vmem:[%s5939_s5 + $0x68] sm:$0xff] (%p5499_p5) }
 0x2ef   : >> { %v1640_v12 = vadd.f32 %v2825_v29, %v1287_v11  ;;  %v1592_v36 = vpop.f32.mrb[29].mxu1  ;;  %v6412_v29 = vld [vmem:[#allocation110_spill] sm:$0xff]  ;;  %v6432_v11 = vld [vmem:[#allocation92_spill] sm:$0xff] }
 0x2f0   : >> { %v1639_v26 = vadd.f32 %v1592_v36, %v1286_v48  ;;  %v6374_v36 = vmov %v6364_v27  ;;  %v6386_v48 = vld [vmem:[#allocation129_spill] sm:$0xff]  ;;  %435 = sbr.rel (!%p5499_p5) target bundleno = 58 (0x3a), region = 92 }
 0x2f1   : >> { %1672 = vst [vmem:[#allocation2 + $0xe8] sm:$0xff] %v1640_v12  ;;  %v6431_v12 = vld [vmem:[#allocation93_spill] sm:$0xff]  ;;  %v3586_v47 = vpop.eup (%p5499_p5), %3585 }
 0x2f2   : >> { %1671 = vst [vmem:[#allocation2 + $0xe0] sm:$0xff] %v1639_v26  ;;  %v2828_v16 = vpop.f32.mrb[30].mxu1  ;;  %v6417_v26 = vld [vmem:[#allocation107_spill] sm:$0xff]  ;;  %v1819_v53 = vmul.f32 (%p5499_p5), %v3586_v47, %v1691_v42  ;;  %v1756_v12 = vld [vmem:[%s5939_s5 + $0x8] sm:$0xff] (%p5499_p5)  ;;  %2045 = vperm.xlu1 (%p5499_p5), %3584, %v1758_v38   ;;  %v1761_v42 = vld [vmem:[%s5939_s5 + $0x30] sm:$0xff] (%p5499_p5) }
 0x2f3   : >> { %v1642_v21 = vadd.f32 %v2828_v16, %v1289_v8  ;;  %v1602_v59 = vpop.f32.mrb[31].mxu1  ;;  %v6427_v16 = vld [vmem:[#allocation97_spill] sm:$0xff]  ;;  %v6454_v26 = vld [vmem:[#allocation119_spill] sm:$0xff] (%p5499_p5) }
 0x2f4   : >> { %v1641_v14 = vadd.f32 %v1602_v59, %v1288_v31  ;;  %v6400_v59 = vld [vmem:[#allocation118_spill] sm:$0xff]  ;;  %v6409_v31 = vld [vmem:[#allocation112_spill] sm:$0xff]  ;;  %v6435_v8 = vld [vmem:[#allocation89_spill] sm:$0xff] }
 0x2f5   : >> { %1674 = vst [vmem:[#allocation2 + $0xf8] sm:$0xff] %v1642_v21  ;;  %6410 = vst [vmem:[#allocation50_spill] sm:$0xff] %v6409_v31  ;;  %v6422_v21 = vld [vmem:[#allocation102_spill] sm:$0xff]  ;;  %v6448_v31 = vld [vmem:[#allocation113_spill] sm:$0xff] (%p5499_p5) }
 0x2f6   : >> { %1673 = vst [vmem:[#allocation2 + $0xf0] sm:$0xff] %v1641_v14  ;;  %v6429_v14 = vld [vmem:[#allocation95_spill] sm:$0xff]  ;;  %3589 = vrcp.f32 (%p5499_p5), %v6448_v31  ;;  %v6455_v16 = vld [vmem:[#allocation120_spill] sm:$0xff] (%p5499_p5)  ;;  %2055 = vperm.xlu1 (%p5499_p5), %3584, %v1760_v22  }
 0x2f7   : > { %3591 = vrcp.f32 %v6449_v44  ;;  %v1698_v44 = vld [vmem:[#allocation2 + $0xb8] sm:$0xff] }
 0x2f8   : > { %3593 = vrcp.f32 %v6337_v50  ;;  %v3588_v50 = vpop.eup %3587 }
 0x2f9   : > { %3595 = vrcp.f32 %v6341_v45  ;;  %v1676_v45 = vld [vmem:[#allocation2 + $0x8] sm:$0xff]  ;;  %v1820_v10 = vmul.f32 %v3588_v50, %v1692_v61  ;;  %v6457_v50 = vld [vmem:[#allocation122_spill] sm:$0xff] }
 0x2fa   : > { %3597 = vrcp.f32 %v6450_v58 }
 0x2fb   : > { %3599 = vrcp.f32 %v6451_v1  ;;  %v2861_v30 = vpack.c.bf16 %v1820_v10, %v1819_v53  ;;  %v1762_v1 = vld [vmem:[%s5939_s5 + $0x38] sm:$0xff]  ;;  %v1763_v10 = vld [vmem:[%s5939_s5 + $0x40] sm:$0xff] }
 0x2fc   : > { %3601 = vrcp.f32 %v6344_v28  ;;  %v5721_v28 = vld [vmem:[%s5938_s4 + $0x40] sm:$0xff]  ;;  %2065 = vperm.xlu1 %3584, %v1762_v1  }
 0x2fd   : > { %3603 = vrcp.f32 %v6349_v2  ;;  %2685 = vmatprep.mubr.f32.mxu1 %v5721_v28  ;;  %2862 = vmatprep.subr.bf16.mxu0 %v2861_v30 }
 0x2fe   : > { %3605 = vrcp.f32 %v6452_v7  ;;  %2893 = vmatprep.subr.bf16.mxu1 %v2861_v30 }
 0x2ff   : > { %3607 = vrcp.f32 %v6453_v62 }
 0x300   : > { %v3590_v2 = vpop.eup %3589  ;;  %3609 = vrcp.f32 %v6352_v63  ;;  %v1755_v63 = vld [vmem:[%s5939_s5] sm:$0xff] }
 0x301   : > { %v3592_v13 = vpop.eup %3591  ;;  %v1803_v9 = vmul.f32 %v3590_v2, %v1675_v60  ;;  %3611 = vrcp.f32 %v6355_v3  ;;  %v1696_v3 = vld [vmem:[#allocation2 + $0xa8] sm:$0xff]  ;;  %2030 = vperm.xlu0 %3583, %v1755_v63   ;;  %v1767_v63 = vld [vmem:[%s5939_s5 + $0x60] sm:$0xff] }
 0x302   : > { %v3594_v46 = vpop.eup %3593  ;;  %v1804_v24 = vmul.f32 %v3592_v13, %v1676_v45  ;;  %3613 = vrcp.f32 %v6454_v26  ;;  %v6456_v60 = vld [vmem:[#allocation121_spill] sm:$0xff]  ;;  %v1681_v13 = vld [vmem:[#allocation2 + $0x30] sm:$0xff] }
 0x303   : > { %v3596_v15 = vpop.eup %3595  ;;  %v1821_v20 = vmul.f32 %v3594_v46, %v1693_v18  ;;  %3615 = vrcp.f32 %v6455_v16  ;;  %v1764_v2 = vld [vmem:[%s5939_s5 + $0x48] sm:$0xff]  ;;  %v6461_v16 = vld [vmem:[#allocation126_spill] sm:$0xff] }
 0x304   : > { %v3598_v57 = vpop.eup %3597  ;;  %v2863_v52 = vpack.c.bf16 %v1804_v24, %v1803_v9  ;;  %v1822_v25 = vmul.f32 %v3596_v15, %v1694_v0  ;;  %3617 = vrcp.f32 %v6356_v35  ;;  %v1697_v35 = vld [vmem:[#allocation2 + $0xb0] sm:$0xff]  ;;  %v1682_v9 = vld [vmem:[#allocation2 + $0x38] sm:$0xff]  ;;  %v1700_v46 = vld [vmem:[#allocation2 + $0xc8] sm:$0xff]  ;;  %2075 = vperm.xlu1 %3584, %v1764_v2  }
 0x305   : > { %v3600_v55 = vpop.eup %3599  ;;  %v1805_v29 = vmul.f32 %v3598_v57, %v1677_v34  ;;  %2035 = vperm.xlu0 %3583, %v1756_v12   ;;  %3619 = vrcp.f32 %v6359_v41  ;;  %v1766_v24 = vld [vmem:[%s5939_s5 + $0x58] sm:$0xff]  ;;  %v1765_v15 = vld [vmem:[%s5939_s5 + $0x50] sm:$0xff]  ;;  %v6459_v57 = vld [vmem:[#allocation124_spill] sm:$0xff] }
 0x306   : > { %v3602_v6 = vpop.eup %3601  ;;  %2864 = vmatpush3.bf16.xpose.msra.mxu0 %v2863_v52  ;;  %2901 = vmatpush3.bf16.xpose.msra.mxu1 %v2863_v52  ;;  %v2865_v11 = vpack.c.bf16 %v1822_v25, %v1821_v20  ;;  %v1806_v48 = vmul.f32 %v3600_v55, %v1678_v17  ;;  %3621 = vrcp.f32 %v6456_v60  ;;  %v6458_v17 = vld [vmem:[#allocation123_spill] sm:$0xff] }
 0x307   : > { %v3604_v36 = vpop.eup %3603  ;;  %v1823_v51 = vmul.f32 %v3602_v6, %v1695_v37  ;;  %3623 = vrcp.f32 %v6457_v50  ;;  %v1683_v6 = vld [vmem:[#allocation2 + $0x40] sm:$0xff]  ;;  %v1770_v12 = vld [vmem:[%s5939_s5 + $0x78] sm:$0xff] }
 0x308   : > { %2866 = vmatprep.subr.bf16.mxu0 %v2865_v11  ;;  %2894 = vmatprep.subr.bf16.mxu1 %v2865_v11  ;;  %v1824_v8 = vmul.f32 %v3604_v36, %v1696_v3  ;;  %v3606_v21 = vpop.eup %3605  ;;  %v2867_v14 = vpack.c.bf16 %v1806_v48, %v1805_v29  ;;  %3625 = vrcp.f32 %v6360_v4  ;;  %v1699_v4 = vld [vmem:[#allocation2 + $0xc0] sm:$0xff]  ;;  %v1684_v11 = vld [vmem:[#allocation2 + $0x48] sm:$0xff]  ;;  %v1702_v48 = vld [vmem:[#allocation2 + $0xd8] sm:$0xff] }
 0x309   : > { %v3608_v59 = vpop.eup %3607  ;;  %2050 = vperm.xlu0 %3583, %v1759_v19   ;;  %v1807_v41 = vmul.f32 %v3606_v21, %v1679_v40  ;;  %3627 = vrcp.f32 %v6363_v39  ;;  %2085 = vperm.xlu1 %3584, %v1766_v24   ;;  %v1769_v36 = vld [vmem:[%s5939_s5 + $0x70] sm:$0xff]  ;;  %v1687_v50 = vld [vmem:[#allocation2 + $0x60] sm:$0xff]  ;;  %v1706_v2 = vld [vmem:[#allocation2 + $0xf8] sm:$0xff] }
 0x30a   : > { %v3610_v23 = vpop.eup %3609  ;;  %v2869_v5 = vpack.c.bf16 %v1824_v8, %v1823_v51  ;;  %v1808_v58 = vmul.f32 %v3608_v59, %v1680_v54  ;;  %3629 = vrcp.f32 %v6458_v17  ;;  %v6460_v8 = vld [vmem:[#allocation125_spill] sm:$0xff]  ;;  %v1703_v54 = vld [vmem:[#allocation2 + $0xe0] sm:$0xff] }
 0x30b   : > { %v3612_v31 = vpop.eup %3611  ;;  %v1825_v61 = vmul.f32 %v3610_v23, %v1697_v35  ;;  %3631 = vrcp.f32 %v6459_v57  ;;  %v1685_v23 = vld [vmem:[#allocation2 + $0x50] sm:$0xff]  ;;  %v1748_v17 = vld [vmem:[%s5938_s4 + $0x48] sm:$0xff] }
 0x30c   : > { %v1826_v47 = vmul.f32 %v3612_v31, %v1698_v44  ;;  %v3614_v53 = vpop.eup %3613  ;;  %v2871_v7 = vpack.c.bf16 %v1808_v58, %v1807_v41  ;;  %3633 = vrcp.f32 %v6364_v27  ;;  %v1701_v27 = vld [vmem:[#allocation2 + $0xd0] sm:$0xff]  ;;  %v1704_v31 = vld [vmem:[#allocation2 + $0xe8] sm:$0xff]  ;;  %v6462_v58 = vld [vmem:[#allocation127_spill] sm:$0xff] }
 0x30d   : > { %2060 = vperm.xlu0 %3583, %v1761_v42   ;;  %v3616_v45 = vpop.eup %3615  ;;  %v1809_v39 = vmul.f32 %v3614_v53, %v1681_v13  ;;  %3635 = vrcp.f32 %v6367_v32  ;;  %2095 = vperm.xlu1 %3584, %v1768_v49   ;;  %v6463_v42 = vld [vmem:[#allocation128_spill] sm:$0xff]  ;;  %v1688_v53 = vld [vmem:[#allocation2 + $0x68] sm:$0xff]  ;;  %v1741_v57 = vld [vmem:[%s5938_s4 + $0x10] sm:$0xff] }
 0x30e   : > { %2868 = vmatpush3.bf16.xpose.msra.mxu0 %v2867_v14  ;;  %2902 = vmatpush3.bf16.xpose.msra.mxu1 %v2867_v14  ;;  %v3618_v18 = vpop.eup %3617  ;;  %v2873_v62 = vpack.c.bf16 %v1826_v47, %v1825_v61  ;;  %v1810_v30 = vmul.f32 %v3616_v45, %v1682_v9  ;;  %3637 = vrcp.f32 %v6460_v8  ;;  %v1744_v49 = vld [vmem:[%s5938_s4 + $0x28] sm:$0xff] }
 0x30f   : > { %2870 = vmatprep.subr.bf16.mxu0 %v2869_v5  ;;  %2895 = vmatprep.subr.bf16.mxu1 %v2869_v5  ;;  %v3620_v0 = vpop.eup %3619  ;;  %v1827_v20 = vmul.f32 %v3618_v18, %v1699_v4  ;;  %3639 = vrcp.f32 %v6461_v16  ;;  %v1686_v5 = vld [vmem:[#allocation2 + $0x58] sm:$0xff]  ;;  %v1708_v16 = vld [vmem:[%s4274_s13 + $0x8] sm:$0xff] }
 0x310   : > { %v1828_v34 = vmul.f32 %v3620_v0, %v1700_v46  ;;  %v3622_v52 = vpop.eup %3621  ;;  %v2875_v37 = vpack.c.bf16 %v1810_v30, %v1809_v39  ;;  %3641 = vrcp.f32 %v6368_v43  ;;  %v1689_v39 = vld [vmem:[#allocation2 + $0x70] sm:$0xff]  ;;  %v1690_v30 = vld [vmem:[#allocation2 + $0x78] sm:$0xff] }
 0x311   : > { %2070 = vperm.xlu0 %3583, %v1763_v10   ;;  %v3624_v25 = vpop.eup %3623  ;;  %v1811_v32 = vmul.f32 %v3622_v52, %v1683_v6  ;;  %2105 = vperm.xlu1 %3584, %v1770_v12   ;;  %3643 = vrcp.f32 %v5462_v33  ;;  %v1749_v52 = vld [vmem:[%s5938_s4 + $0x50] sm:$0xff]  ;;  %v1746_v6 = vld [vmem:[%s5938_s4 + $0x38] sm:$0xff] }
 0x312   : > { %v3626_v55 = vpop.eup %3625  ;;  %v2877_v3 = vpack.c.bf16 %v1828_v34, %v1827_v20  ;;  %v1812_v38 = vmul.f32 %v3624_v25, %v1684_v11  ;;  %3645 = vrcp.f32 %v6462_v58  ;;  %v1740_v34 = vld [vmem:[%s5938_s4 + $0x8] sm:$0xff]  ;;  %v1743_v25 = vld [vmem:[%s5938_s4 + $0x20] sm:$0xff]  ;;  %v1754_v11 = vld [vmem:[%s5938_s4 + $0x78] sm:$0xff] }
 0x313   : > { %v3628_v29 = vpop.eup %3627  ;;  %v1829_v51 = vmul.f32 %v3626_v55, %v1701_v27  ;;  %3647 = vrcp.f32 %v6463_v42  ;;  %v1745_v55 = vld [vmem:[%s5938_s4 + $0x30] sm:$0xff]  ;;  %v1710_v58 = vld [vmem:[%s4274_s13 + $0x18] sm:$0xff] }
 0x314   : > { %v1830_v26 = vmul.f32 %v3628_v29, %v1702_v48  ;;  %v3630_v21 = vpop.eup %3629  ;;  %v2879_v14 = vpack.c.bf16 %v1812_v38, %v1811_v32 }
 0x315   : > { %2080 = vperm.xlu0 %3583, %v1765_v15   ;;  %v3632_v59 = vpop.eup %3631  ;;  %v1813_v35 = vmul.f32 %v3630_v21, %v1685_v23  ;;  %v1724_v21 = vld [vmem:[%s4274_s13 + $0x88] sm:$0xff] }
 0x316   : > { %2872 = vmatpush3.bf16.xpose.msra.mxu0 %v2871_v7  ;;  %2903 = vmatpush3.bf16.xpose.msra.mxu1 %v2871_v7  ;;  %v3634_v22 = vpop.eup %3633  ;;  %v2881_v19 = vpack.c.bf16 %v1830_v26, %v1829_v51  ;;  %v1814_v44 = vmul.f32 %v3632_v59, %v1686_v5  ;;  %v1705_v7 = vld [vmem:[#allocation2 + $0xf0] sm:$0xff]  ;;  %v1707_v51 = vld [vmem:[%s4274_s13] sm:$0xff] }
 0x317   : > { %2874 = vmatprep.subr.bf16.mxu0 %v2873_v62  ;;  %2896 = vmatprep.subr.bf16.mxu1 %v2873_v62  ;;  %v3636_v40 = vpop.eup %3635  ;;  %v1831_v43 = vmul.f32 %v3634_v22, %v1703_v54  ;;  %v1723_v26 = vld [vmem:[%s4274_s13 + $0x80] sm:$0xff] }
 0x318   : > { %v1832_v41 = vmul.f32 %v3636_v40, %v1704_v31  ;;  %v3638_v1 = vpop.eup %3637  ;;  %v2883_v61 = vpack.c.bf16 %v1814_v44, %v1813_v35  ;;  %v1709_v35 = vld [vmem:[%s4274_s13 + $0x10] sm:$0xff] }
 0x319   : > { %2090 = vperm.xlu0 %3583, %v1767_v63   ;;  %v3640_v33 = vpop.eup %3639  ;;  %v1815_v10 = vmul.f32 %v3638_v1, %v1687_v50  ;;  %v1752_v63 = vld [vmem:[%s5938_s4 + $0x68] sm:$0xff]  ;;  %v1725_v44 = vld [vmem:[%s4274_s13 + $0x90] sm:$0xff]  ;;  %v1726_v1 = vld [vmem:[%s4274_s13 + $0x98] sm:$0xff] }
 0x31a   : > { %v3642_v47 = vpop.eup %3641  ;;  %v2885_v60 = vpack.c.bf16 %v1832_v41, %v1831_v43  ;;  %v1816_v18 = vmul.f32 %v3640_v33, %v1688_v53 }
 0x31b   : > { %v3644_v45 = vpop.eup %3643  ;;  %v1833_v62 = vmul.f32 %v3642_v47, %v1705_v7 }
 0x31c   : > { %v1834_v13 = vmul.f32 %v3644_v45, %v1706_v2  ;;  %v3646_v9 = vpop.eup %3645  ;;  %v2887_v0 = vpack.c.bf16 %v1816_v18, %v1815_v10  ;;  %v1711_v18 = vld [vmem:[%s4274_s13 + $0x20] sm:$0xff] }
 0x31d   : > { %2100 = vperm.xlu0 %3583, %v1769_v36   ;;  %v3648_v4 = vpop.eup %3647  ;;  %v1817_v24 = vmul.f32 %v3646_v9, %v1689_v39 }
 0x31e   : > { %2876 = vmatpush3.bf16.xpose.msra.mxu0 %v2875_v37  ;;  %2904 = vmatpush3.bf16.xpose.msra.mxu1 %v2875_v37  ;;  %v2889_v46 = vpack.c.bf16 %v1834_v13, %v1833_v62  ;;  %v1818_v15 = vmul.f32 %v3648_v4, %v1690_v30  ;;  %v1751_v37 = vld [vmem:[%s5938_s4 + $0x60] sm:$0xff]  ;;  %v1728_v4 = vld [vmem:[%s4274_s13 + $0xa8] sm:$0xff] }
 0x31f   : > { %2878 = vmatprep.subr.bf16.mxu0 %v2877_v3  ;;  %2897 = vmatprep.subr.bf16.mxu1 %v2877_v3  ;;  %v1753_v3 = vld [vmem:[%s5938_s4 + $0x70] sm:$0xff]  ;;  %v1727_v62 = vld [vmem:[%s4274_s13 + $0xa0] sm:$0xff] }
 0x320   : > { %v2891_v20 = vpack.c.bf16 %v1818_v15, %v1817_v24 }
 0x326   : > { %2880 = vmatpush3.bf16.xpose.msra.mxu0 %v2879_v14  ;;  %2905 = vmatpush3.bf16.xpose.msra.mxu1 %v2879_v14 }
 0x327   : > { %2882 = vmatprep.subr.bf16.mxu0 %v2881_v19  ;;  %2898 = vmatprep.subr.bf16.mxu1 %v2881_v19 }
 0x32e   : > { %2884 = vmatpush3.bf16.xpose.msra.mxu0 %v2883_v61  ;;  %2906 = vmatpush3.bf16.xpose.msra.mxu1 %v2883_v61 }
 0x32f   : > { %2886 = vmatprep.subr.bf16.mxu0 %v2885_v60  ;;  %2899 = vmatprep.subr.bf16.mxu1 %v2885_v60 }
 0x336   : > { %2888 = vmatpush3.bf16.xpose.msra.mxu0 %v2887_v0  ;;  %2907 = vmatpush3.bf16.xpose.msra.mxu1 %v2887_v0  ;;  %v1712_v0 = vld [vmem:[%s4274_s13 + $0x28] sm:$0xff] }
 0x337   : > { %2890 = vmatprep.subr.bf16.mxu0 %v2889_v46  ;;  %2900 = vmatprep.subr.bf16.mxu1 %v2889_v46 }
 0x33e   : > { %2892 = vmatpush3.bf16.xpose.msra.mxu0 %v2891_v20  ;;  %2908 = vmatpush3.bf16.xpose.msra.mxu1 %v2891_v20 }
 0x345   : > { %2670 = vmatmul.mubr.f32.vlgmr.msra.gmra.mrb[0].mxu0 %v5714_v56  ;;  %2686 = vmatmul.mubr.f32.vlgmr.msra.gmra.mrb[0].mxu1 %v5721_v28  ;;  %v1742_v56 = vld [vmem:[%s5938_s4 + $0x18] sm:$0xff] }
 0x346   : > { %2671 = vmatprep.mubr.f32.mxu0 %v1740_v34  ;;  %2687 = vmatprep.mubr.f32.mxu1 %v1748_v17  ;;  %v1750_v28 = vld [vmem:[%s5938_s4 + $0x58] sm:$0xff] }
 0x349   : > { %2672 = vmatmul.mubr.f32.gmra.mrb[2].mxu0 %v1740_v34  ;;  %2688 = vmatmul.mubr.f32.gmra.mrb[2].mxu1 %v1748_v17 }
 0x34a   : > { %2673 = vmatprep.mubr.f32.mxu0 %v1741_v57  ;;  %2689 = vmatprep.mubr.f32.mxu1 %v1749_v52 }
 0x34d   : > { %2674 = vmatmul.mubr.f32.gmra.mrb[4].mxu0 %v1741_v57  ;;  %2690 = vmatmul.mubr.f32.gmra.mrb[4].mxu1 %v1749_v52 }
 0x34e   : > { %2675 = vmatprep.mubr.f32.mxu0 %v1742_v56  ;;  %2691 = vmatprep.mubr.f32.mxu1 %v1750_v28 }
 0x351   : > { %2676 = vmatmul.mubr.f32.gmra.mrb[6].mxu0 %v1742_v56  ;;  %2692 = vmatmul.mubr.f32.gmra.mrb[6].mxu1 %v1750_v28  ;;  %v1713_v28 = vld [vmem:[%s4274_s13 + $0x30] sm:$0xff] }
 0x352   : > { %2677 = vmatprep.mubr.f32.mxu0 %v1743_v25  ;;  %2693 = vmatprep.mubr.f32.mxu1 %v1751_v37 }
 0x355   : > { %2678 = vmatmul.mubr.f32.gmra.mrb[8].mxu0 %v1743_v25  ;;  %2694 = vmatmul.mubr.f32.gmra.mrb[8].mxu1 %v1751_v37  ;;  %v1729_v25 = vld [vmem:[%s4274_s13 + $0xb0] sm:$0xff] }
 0x356   : > { %2679 = vmatprep.mubr.f32.mxu0 %v1744_v49  ;;  %2695 = vmatprep.mubr.f32.mxu1 %v1752_v63 }
 0x359   : > { %2680 = vmatmul.mubr.f32.gmra.mrb[10].mxu0 %v1744_v49  ;;  %2696 = vmatmul.mubr.f32.gmra.mrb[10].mxu1 %v1752_v63  ;;  %v1714_v63 = vld [vmem:[%s4274_s13 + $0x38] sm:$0xff] }
 0x35a   : > { %2681 = vmatprep.mubr.f32.mxu0 %v1745_v55  ;;  %2697 = vmatprep.mubr.f32.mxu1 %v1753_v3 }
 0x35d   : > { %2682 = vmatmul.mubr.f32.gmra.mrb[12].mxu0 %v1745_v55  ;;  %2698 = vmatmul.mubr.f32.gmra.mrb[12].mxu1 %v1753_v3  ;;  %v1730_v55 = vld [vmem:[%s4274_s13 + $0xb8] sm:$0xff] }
 0x35e   : > { %2683 = vmatprep.mubr.f32.mxu0 %v1746_v6  ;;  %2699 = vmatprep.mubr.f32.mxu1 %v1754_v11 }
 0x361   : > { %2684 = vmatmul.mubr.f32.gmra.mrb[14].mxu0 %v1746_v6  ;;  %2700 = vmatmul.mubr.f32.gmra.mrb[14].mxu1 %v1754_v11 }
 0x36d   : > { %v5837_v27 = vpop.permute.xlu1 %2040 }
 0x371   : > { %v5839_v32 = vpop.permute.xlu1 %2045 }
 0x375   : > { %v5843_v12 = vpop.permute.xlu1 %2055 }
 0x37b   : > { %v5849_v8 = vpop.permute.xlu1 %2065 }
 0x380   : > { %v2031_v29 = vpop.permute.xlu0 %2030 }
 0x383   : > { %v2076_v7 = vpop.permute.xlu1 %2075 }
 0x384   : > { %v2036_v48 = vpop.permute.xlu0 %2035 }
 0x388   : > { %v5841_v38 = vpop.permute.xlu0 %2050 }
 0x38c   : > { %v5845_v36 = vpop.permute.xlu0 %2060 }
 0x390   : > { %v2071_v40 = vpop.permute.xlu0 %2070 }
 0x394   : > { %v2081_v57 = vpop.permute.xlu0 %2080 }
 0x418   : > { %v1901_v59 = vpop.f32.mrb[0].mxu0  ;;  %v1949_v14 = vpop.f32.mrb[0].mxu1 }
 0x419   : > { %v1996_v22 = vadd.f32 %v1901_v59, %v1707_v51  ;;  %v2012_v19 = vadd.f32 %v1949_v14, %v1723_v26  ;;  %v1903_v23 = vpop.f32.mrb[1].mxu0  ;;  %v1951_v5 = vpop.f32.mrb[1].mxu1 }
 0x41a   : > { %v1997_v54 = vadd.f32 %v1903_v23, %v1708_v16  ;;  %v2013_v31 = vadd.f32 %v1951_v5, %v1724_v21  ;;  %v2086_v21 = vpop.permute.xlu1 %2085  ;;  %v1716_v5 = vld [vmem:[%s4274_s13 + $0x48] sm:$0xff] }
 0x41b   : > { %v2108_v43 = vadd.f32 %v2031_v29, %v1996_v22  ;;  %v2124_v41 = vadd.f32 %v2071_v40, %v2012_v19  ;;  %v1731_v22 = vld [vmem:[%s4274_s13 + $0xc0] sm:$0xff] }
 0x41c   : > { %v2109_v42 = vadd.f32 %v2031_v29, %v1997_v54  ;;  %v2125_v33 = vadd.f32 %v2071_v40, %v2013_v31  ;;  %v1907_v61 = vpop.f32.mrb[2].mxu0  ;;  %v1955_v47 = vpop.f32.mrb[2].mxu1  ;;  %v1732_v40 = vld [vmem:[%s4274_s13 + $0xc8] sm:$0xff] }
 0x41d   : > { %2140 = vst [vmem:[%s4289_s16] sm:$0xff] %v2108_v43  ;;  %2156 = vst [vmem:[%s4289_s16 + $0x80] sm:$0xff] %v2124_v41  ;;  %v1998_v60 = vadd.f32 %v1907_v61, %v1709_v35  ;;  %v2014_v50 = vadd.f32 %v1955_v47, %v1725_v44  ;;  %v1909_v53 = vpop.f32.mrb[3].mxu0  ;;  %v1957_v45 = vpop.f32.mrb[3].mxu1  ;;  %v1733_v47 = vld [vmem:[%s4274_s13 + $0xd0] sm:$0xff] }
 0x41e   : > { %2141 = vst [vmem:[%s4289_s16 + $0x8] sm:$0xff] %v2109_v42  ;;  %2157 = vst [vmem:[%s4289_s16 + $0x88] sm:$0xff] %v2125_v33  ;;  %v1999_v2 = vadd.f32 %v1909_v53, %v1710_v58  ;;  %v2015_v10 = vadd.f32 %v1957_v45, %v1726_v1  ;;  %v2091_v42 = vpop.permute.xlu0 %2090  ;;  %v1718_v53 = vld [vmem:[%s4274_s13 + $0x58] sm:$0xff] }
 0x41f   : > { %v2110_v13 = vadd.f32 %v2036_v48, %v1998_v60  ;;  %v2126_v9 = vadd.f32 %v2076_v7, %v2014_v50  ;;  %v1734_v45 = vld [vmem:[%s4274_s13 + $0xd8] sm:$0xff] }
 0x420   : > { %v2111_v46 = vadd.f32 %v2036_v48, %v1999_v2  ;;  %v2127_v39 = vadd.f32 %v2076_v7, %v2015_v10  ;;  %v1913_v30 = vpop.f32.mrb[4].mxu0  ;;  %v1961_v24 = vpop.f32.mrb[4].mxu1 }
 0x421   : > { %2142 = vst [vmem:[%s4289_s16 + $0x10] sm:$0xff] %v2110_v13  ;;  %2158 = vst [vmem:[%s4289_s16 + $0x90] sm:$0xff] %v2126_v9  ;;  %v2000_v15 = vadd.f32 %v1913_v30, %v1711_v18  ;;  %v2016_v20 = vadd.f32 %v1961_v24, %v1727_v62  ;;  %v1915_v34 = vpop.f32.mrb[5].mxu0  ;;  %v1963_v17 = vpop.f32.mrb[5].mxu1  ;;  %v1735_v30 = vld [vmem:[%s4274_s13 + $0xe0] sm:$0xff] }
 0x422   : > { %2143 = vst [vmem:[%s4289_s16 + $0x18] sm:$0xff] %v2111_v46  ;;  %2159 = vst [vmem:[%s4289_s16 + $0x98] sm:$0xff] %v2127_v39  ;;  %v2001_v52 = vadd.f32 %v1915_v34, %v1712_v0  ;;  %v2017_v56 = vadd.f32 %v1963_v17, %v1728_v4  ;;  %v2096_v4 = vpop.permute.xlu1 %2095  ;;  %v1736_v34 = vld [vmem:[%s4274_s13 + $0xe8] sm:$0xff] }
 0x423   : > { %v2112_v37 = vadd.f32 %v5837_v27, %v2000_v15  ;;  %v2128_v49 = vadd.f32 %v2081_v57, %v2016_v20  ;;  %v1720_v20 = vld [vmem:[%s4274_s13 + $0x68] sm:$0xff] }
 0x424   : > { %v2113_v3 = vadd.f32 %v5837_v27, %v2001_v52  ;;  %v2129_v6 = vadd.f32 %v2081_v57, %v2017_v56  ;;  %v1919_v11 = vpop.f32.mrb[6].mxu0  ;;  %v1967_v29 = vpop.f32.mrb[6].mxu1  ;;  %v1715_v27 = vld [vmem:[%s4274_s13 + $0x40] sm:$0xff] }
 0x425   : > { %2144 = vst [vmem:[%s4289_s16 + $0x20] sm:$0xff] %v2112_v37  ;;  %2160 = vst [vmem:[%s4289_s16 + $0xa0] sm:$0xff] %v2128_v49  ;;  %v2002_v48 = vadd.f32 %v1919_v11, %v1713_v28  ;;  %v2018_v51 = vadd.f32 %v1967_v29, %v1729_v25  ;;  %v1921_v26 = vpop.f32.mrb[7].mxu0  ;;  %v1969_v16 = vpop.f32.mrb[7].mxu1 }
 0x426   : > { %2145 = vst [vmem:[%s4289_s16 + $0x28] sm:$0xff] %v2113_v3  ;;  %2161 = vst [vmem:[%s4289_s16 + $0xa8] sm:$0xff] %v2129_v6  ;;  %v2003_v59 = vadd.f32 %v1921_v26, %v1714_v63  ;;  %v2019_v14 = vadd.f32 %v1969_v16, %v1730_v55  ;;  %v2101_v63 = vpop.permute.xlu0 %2100  ;;  %v1737_v6 = vld [vmem:[%s4274_s13 + $0xf0] sm:$0xff] }
 0x427   : > { %v2114_v19 = vadd.f32 %v5839_v32, %v2002_v48  ;;  %v2130_v23 = vadd.f32 %v2086_v21, %v2018_v51  ;;  %v1722_v48 = vld [vmem:[%s4274_s13 + $0x78] sm:$0xff] }
 0x428   : > { %v2115_v54 = vadd.f32 %v5839_v32, %v2003_v59  ;;  %v2131_v31 = vadd.f32 %v2086_v21, %v2019_v14  ;;  %v1925_v35 = vpop.f32.mrb[8].mxu0  ;;  %v1973_v44 = vpop.f32.mrb[8].mxu1  ;;  %v1717_v32 = vld [vmem:[%s4274_s13 + $0x50] sm:$0xff]  ;;  %v1738_v51 = vld [vmem:[%s4274_s13 + $0xf8] sm:$0xff] }
 0x429   : > { %2146 = vst [vmem:[%s4289_s16 + $0x30] sm:$0xff] %v2114_v19  ;;  %2162 = vst [vmem:[%s4289_s16 + $0xb0] sm:$0xff] %v2130_v23  ;;  %v2004_v43 = vadd.f32 %v1925_v35, %v1715_v27  ;;  %v2020_v41 = vadd.f32 %v1973_v44, %v1731_v22  ;;  %v1927_v58 = vpop.f32.mrb[9].mxu0  ;;  %v1975_v1 = vpop.f32.mrb[9].mxu1 }
 0x42a   : > { %2147 = vst [vmem:[%s4289_s16 + $0x38] sm:$0xff] %v2115_v54  ;;  %2163 = vst [vmem:[%s4289_s16 + $0xb8] sm:$0xff] %v2131_v31  ;;  %v2005_v33 = vadd.f32 %v1927_v58, %v1716_v5  ;;  %v2021_v61 = vadd.f32 %v1975_v1, %v1732_v40  ;;  %v2106_v23 = vpop.permute.xlu1 %2105 }
 0x42b   : > { %v2116_v60 = vadd.f32 %v5841_v38, %v2004_v43  ;;  %v2132_v50 = vadd.f32 %v2091_v42, %v2020_v41 }
 0x42c   : > { %v2117_v7 = vadd.f32 %v5841_v38, %v2005_v33  ;;  %v2133_v2 = vadd.f32 %v2091_v42, %v2021_v61  ;;  %v1931_v10 = vpop.f32.mrb[10].mxu0  ;;  %v1979_v18 = vpop.f32.mrb[10].mxu1  ;;  %v1719_v38 = vld [vmem:[%s4274_s13 + $0x60] sm:$0xff] }
 0x42d   : > { %2148 = vst [vmem:[%s4289_s16 + $0x40] sm:$0xff] %v2116_v60  ;;  %2164 = vst [vmem:[%s4289_s16 + $0xc0] sm:$0xff] %v2132_v50  ;;  %v2006_v62 = vadd.f32 %v1931_v10, %v1717_v32  ;;  %v2022_v13 = vadd.f32 %v1979_v18, %v1733_v47  ;;  %v1933_v9 = vpop.f32.mrb[11].mxu0  ;;  %v1981_v0 = vpop.f32.mrb[11].mxu1 }
 0x42e   : > { %2149 = vst [vmem:[%s4289_s16 + $0x48] sm:$0xff] %v2117_v7  ;;  %2165 = vst [vmem:[%s4289_s16 + $0xc8] sm:$0xff] %v2133_v2  ;;  %v2007_v46 = vadd.f32 %v1933_v9, %v1718_v53  ;;  %v2023_v39 = vadd.f32 %v1981_v0, %v1734_v45 }
 0x42f   : > { %v2118_v24 = vadd.f32 %v5843_v12, %v2006_v62  ;;  %v2134_v15 = vadd.f32 %v2096_v4, %v2022_v13 }
 0x430   : > { %v2119_v17 = vadd.f32 %v5843_v12, %v2007_v46  ;;  %v2135_v57 = vadd.f32 %v2096_v4, %v2023_v39  ;;  %v1937_v52 = vpop.f32.mrb[12].mxu0  ;;  %v1985_v56 = vpop.f32.mrb[12].mxu1  ;;  %v1721_v12 = vld [vmem:[%s4274_s13 + $0x70] sm:$0xff] }
 0x431   : > { %2150 = vst [vmem:[%s4289_s16 + $0x50] sm:$0xff] %v2118_v24  ;;  %2166 = vst [vmem:[%s4289_s16 + $0xd0] sm:$0xff] %v2134_v15  ;;  %v2008_v28 = vadd.f32 %v1937_v52, %v1719_v38  ;;  %v2024_v25 = vadd.f32 %v1985_v56, %v1735_v30  ;;  %v1939_v37 = vpop.f32.mrb[13].mxu0  ;;  %v1987_v49 = vpop.f32.mrb[13].mxu1 }
 0x432   : > { %2151 = vst [vmem:[%s4289_s16 + $0x58] sm:$0xff] %v2119_v17  ;;  %2167 = vst [vmem:[%s4289_s16 + $0xd8] sm:$0xff] %v2135_v57  ;;  %v2009_v55 = vadd.f32 %v1939_v37, %v1720_v20  ;;  %v2025_v3 = vadd.f32 %v1987_v49, %v1736_v34 }
 0x433   : > { %v2120_v11 = vadd.f32 %v5845_v36, %v2008_v28  ;;  %v2136_v29 = vadd.f32 %v2101_v63, %v2024_v25 }
 0x434   : > { %v2121_v26 = vadd.f32 %v5845_v36, %v2009_v55  ;;  %v2137_v16 = vadd.f32 %v2101_v63, %v2025_v3  ;;  %v1943_v21 = vpop.f32.mrb[14].mxu0  ;;  %v1991_v59 = vpop.f32.mrb[14].mxu1 }
 0x435   : > { %2152 = vst [vmem:[%s4289_s16 + $0x60] sm:$0xff] %v2120_v11  ;;  %2168 = vst [vmem:[%s4289_s16 + $0xe0] sm:$0xff] %v2136_v29  ;;  %v2010_v14 = vadd.f32 %v1943_v21, %v1721_v12  ;;  %v2026_v27 = vadd.f32 %v1991_v59, %v1737_v6  ;;  %v1945_v22 = vpop.f32.mrb[15].mxu0  ;;  %v1993_v19 = vpop.f32.mrb[15].mxu1 }
 0x436   : > { %2153 = vst [vmem:[%s4289_s16 + $0x68] sm:$0xff] %v2121_v26  ;;  %2169 = vst [vmem:[%s4289_s16 + $0xe8] sm:$0xff] %v2137_v16  ;;  %v2011_v5 = vadd.f32 %v1945_v22, %v1722_v48  ;;  %v2027_v40 = vadd.f32 %v1993_v19, %v1738_v51 }
 0x437   : > { %v2122_v36 = vadd.f32 %v5849_v8, %v2010_v14  ;;  %v2138_v54 = vadd.f32 %v2106_v23, %v2026_v27 }
 0x438   : > { %v2123_v31 = vadd.f32 %v5849_v8, %v2011_v5  ;;  %v2139_v35 = vadd.f32 %v2106_v23, %v2027_v40 }
 0x439   : > { %2154 = vst [vmem:[%s4289_s16 + $0x70] sm:$0xff] %v2122_v36  ;;  %2170 = vst [vmem:[%s4289_s16 + $0xf0] sm:$0xff] %v2138_v54 }
 0x43a   : > { %2155 = vst [vmem:[%s4289_s16 + $0x78] sm:$0xff] %v2123_v31  ;;  %2171 = vst [vmem:[%s4289_s16 + $0xf8] sm:$0xff] %v2139_v35 }
 0x43b PF: > { %s16_s23 = sadd.s32 1, %s3931_s23   ;;  %s6464_s21 = smov %s3927_s22 }
 0x43c   : > { %p13_p6 = scmp.ge.s32.totalorder %s16_s23, 4   ;;  %s6465_s22 = smov %s6467_s24 }
 0x43e   :  { %15 = sbr.rel (!%p13_p6) target bundleno = 2 (0x2), region = 103 }

</bundles_post_ra>
